<compile_context>
chip_gen: v5e
topology: v5e:2x2
jax: 0.10.0
libtpu: 0.0.40
codegen_flags: <defaults>
</compile_context>

<pallas_src>
import functools

import jax
import jax.numpy as jnp
from jax.experimental import pallas as pl
from jax.experimental.pallas import tpu as pltpu

BN_EPS = 1e-5
LANE = 128
BF16_SUBLANE = 16


def _round_up(n, m):
    return ((n + m - 1) // m) * m


# --------------------------------------------------------------------------
# Kernel
# --------------------------------------------------------------------------
def _bn_relu(h, gamma, beta):
    """Training-mode BatchNorm (biased variance, centered form) folded into a
    single scale/shift, followed by ReLU.  All f32."""
    inv_n = 1.0 / h.shape[0]
    mu = jnp.sum(h, axis=0, keepdims=True) * inv_n
    centered = h - mu
    var = jnp.sum(centered * centered, axis=0, keepdims=True) * inv_n
    scale = gamma * jax.lax.rsqrt(var + BN_EPS)
    return jnp.maximum(centered * scale + beta, 0.0)


def actor_kernel(
    x_ref,                      # (B, S_k)      f32   (VMEM)
    w1_ref, g1_ref, be1_ref,    # (S_k, F1p) bf16, (1, F1p) f32, (1, F1p) f32
    w2_hbm, g2_ref, be2_ref,    # (F1p, F2p) bf16 in HBM, (1, F2p) f32 x2
    w3_hbm, b3_ref,             # (F2p, Ap)  bf16 in HBM, (1, Ap) f32
    out_ref,                    # (B, Ap)       f32   (VMEM)
    w2_vmem, w3_vmem, sem_ref,  # scratch: VMEM weight buffers + DMA sems
):
    bf16 = jnp.bfloat16

    # Kick off the layer-2 / layer-3 weight DMAs so they overlap layer-1
    # (and layer-2) compute instead of serializing before the body.
    w2_cp = pltpu.make_async_copy(w2_hbm, w2_vmem, sem_ref.at[0])
    w3_cp = pltpu.make_async_copy(w3_hbm, w3_vmem, sem_ref.at[1])
    w2_cp.start()
    w3_cp.start()

    # fc1 (bias dropped: cancelled by BN mean subtraction) + bn1 + relu.
    # x is cast to bf16 in-kernel; K = state_size (no 128-pad needed).
    x = x_ref[...].astype(bf16)
    h1 = jnp.dot(x, w1_ref[...], preferred_element_type=jnp.float32)
    h1 = _bn_relu(h1, g1_ref[...], be1_ref[...])

    # fc2 (bias dropped) + bn2 + relu
    w2_cp.wait()
    h2 = jnp.dot(h1.astype(bf16), w2_vmem[...], preferred_element_type=jnp.float32)
    h2 = _bn_relu(h2, g2_ref[...], be2_ref[...])

    # fc3 + tanh  (output kept lane-dense at Ap = 128 columns)
    w3_cp.wait()
    h3 = jnp.dot(h2.astype(bf16), w3_vmem[...], preferred_element_type=jnp.float32)
    out_ref[...] = jnp.tanh(h3 + b3_ref[...])


# --------------------------------------------------------------------------
# Wrapper (jitted: pad / pallas_call / slice trace as one computation)
# --------------------------------------------------------------------------
@functools.partial(jax.jit, static_argnames=("action_size",))
def actor_forward(x, packed_params, action_size):
    """x: (B, state_size) f32.  packed_params: output of pack_actor_params."""
    (w1, g1, be1, w2, g2, be2, w3, b3) = packed_params
    batch = x.shape[0]
    s_k = w1.shape[0]        # layer-1 contracting dim (>= state_size)
    f1p = w2.shape[0]
    f2p = w3.shape[0]
    a_pad = w3.shape[1]

    # No-op when state_size is already a multiple of the bf16 sublane (16).
    if x.shape[1] != s_k:
        x = jnp.pad(x, ((0, 0), (0, s_k - x.shape[1])))

    vmem = pl.BlockSpec(memory_space=pltpu.MemorySpace.VMEM)
    hbm = pl.BlockSpec(memory_space=pl.ANY)   # manual DMA inside the kernel

    out_padded = pl.pallas_call(
        actor_kernel,
        out_shape=jax.ShapeDtypeStruct((batch, a_pad), jnp.float32),
        in_specs=[
            vmem,                 # x
            vmem, vmem, vmem,     # w1, g1, be1
            hbm, vmem, vmem,      # w2 (HBM), g2, be2
            hbm, vmem,            # w3 (HBM), b3
        ],
        out_specs=vmem,
        scratch_shapes=[
            pltpu.VMEM((f1p, f2p), jnp.bfloat16),    # w2 staging
            pltpu.VMEM((f2p, a_pad), jnp.bfloat16),  # w3 staging
            pltpu.SemaphoreType.DMA((2,)),
        ],
        compiler_params=pltpu.CompilerParams(vmem_limit_bytes=32 * 1024 * 1024),
    )(x, w1, g1, be1, w2, g2, be2, w3, b3)

    return out_padded[:, :action_size]


# --------------------------------------------------------------------------
# Parameter init (mirrors the PyTorch module) + packing for the kernel
# --------------------------------------------------------------------------
def init_actor_params(key, state_size, action_size, fc1_units, fc2_units):
    """Logical f32 params, PyTorch-equivalent:
       kaiming_uniform_(fan_in, relu) weights, bias filled with 0.1,
       BatchNorm gamma=1, beta=0.  Weights stored (in, out)."""
    k1, k2, k3 = jax.random.split(key, 3)

    def kaiming_uniform(k, fan_in, fan_out):
        bound = jnp.sqrt(6.0 / fan_in)   # gain(relu)*sqrt(3/fan_in)
        return jax.random.uniform(
            k, (fan_in, fan_out), jnp.float32, minval=-bound, maxval=bound
        )

    w1 = kaiming_uniform(k1, state_size, fc1_units)
    b1 = jnp.full((1, fc1_units), 0.1, jnp.float32)
    w2 = kaiming_uniform(k2, fc1_units, fc2_units)
    b2 = jnp.full((1, fc2_units), 0.1, jnp.float32)
    w3 = kaiming_uniform(k3, fc2_units, action_size)
    b3 = jnp.full((1, action_size), 0.1, jnp.float32)

    g1 = jnp.ones((1, fc1_units), jnp.float32)
    be1 = jnp.zeros((1, fc1_units), jnp.float32)
    g2 = jnp.ones((1, fc2_units), jnp.float32)
    be2 = jnp.zeros((1, fc2_units), jnp.float32)

    return (w1, b1, g1, be1, w2, b2, g2, be2, w3, b3)


def pack_actor_params(params, state_size, action_size, fc1_units, fc2_units):
    """Zero-pad hidden/output feature dims to multiples of 128 lanes, pad
    the layer-1 contracting dim only to the bf16 sublane tile (16), cast
    matmul weights to bf16, and drop the pre-BN biases.

    NOTE: dropping fc1/fc2 biases is exact ONLY for training-mode
    (batch-statistics) BatchNorm; do not reuse these packed params for
    eval-mode BN."""
    (w1, _b1, g1, be1, w2, _b2, g2, be2, w3, b3) = params
    s_k = _round_up(state_size, BF16_SUBLANE)
    f1_pad = _round_up(fc1_units, LANE)
    f2_pad = _round_up(fc2_units, LANE)
    a_pad = _round_up(action_size, LANE)

    def pad2(a, rows, cols):
        return jnp.pad(a, ((0, rows - a.shape[0]), (0, cols - a.shape[1])))

    w1p = pad2(w1, s_k, f1_pad).astype(jnp.bfloat16)
    w2p = pad2(w2, f1_pad, f2_pad).astype(jnp.bfloat16)
    w3p = pad2(w3, f2_pad, a_pad).astype(jnp.bfloat16)
    g1p = pad2(g1, 1, f1_pad)
    be1p = pad2(be1, 1, f1_pad)
    g2p = pad2(g2, 1, f2_pad)
    be2p = pad2(be2, 1, f2_pad)
    b3p = pad2(b3, 1, a_pad)
    return (w1p, g1p, be1p, w2p, g2p, be2p, w3p, b3p)


# --------------------------------------------------------------------------
# References
# --------------------------------------------------------------------------
def actor_reference_f32(x, params):
    """Exact PyTorch semantics in f32 (including the pre-BN biases)."""
    (w1, b1, g1, be1, w2, b2, g2, be2, w3, b3) = params

    def bn(h, g, b):
        mu = jnp.mean(h, axis=0, keepdims=True)
        var = jnp.mean((h - mu) ** 2, axis=0, keepdims=True)
        return (h - mu) / jnp.sqrt(var + BN_EPS) * g + b

    h1 = jnp.maximum(bn(x @ w1 + b1, g1, be1), 0.0)
    h2 = jnp.maximum(bn(h1 @ w2 + b2, g2, be2), 0.0)
    return jnp.tanh(h2 @ w3 + b3)


def actor_reference_mirrored(x, params):
    """Pure-JAX reference that mirrors the kernel's numerics (bf16 dot
    inputs, f32 accumulation, centered one-pass BN, no b1/b2)."""
    (w1, _b1, g1, be1, w2, _b2, g2, be2, w3, b3) = params
    bf16 = jnp.bfloat16

    def bn_relu(h, g, b):
        mu = jnp.mean(h, axis=0, keepdims=True)
        c = h - mu
        var = jnp.mean(c * c, axis=0, keepdims=True)
        scale = g * jax.lax.rsqrt(var + BN_EPS)
        return jnp.maximum(c * scale + b, 0.0)

    h1 = bn_relu(
        jnp.dot(x.astype(bf16), w1.astype(bf16), preferred_element_type=jnp.float32),
        g1, be1)
    h2 = bn_relu(
        jnp.dot(h1.astype(bf16), w2.astype(bf16), preferred_element_type=jnp.float32),
        g2, be2)
    h3 = jnp.dot(h2.astype(bf16), w3.astype(bf16), preferred_element_type=jnp.float32)
    return jnp.tanh(h3 + b3)


# --------------------------------------------------------------------------
if __name__ == "__main__":
    # Batch of 256 fills the 256-wide MXU rows on v6e/v7x (128 already
    # saturates v5e); feature sizes are the module's defaults.
    BATCH = 256
    STATE_SIZE = 16
    ACTION_SIZE = 8
    FC1_UNITS = 350
    FC2_UNITS = 280

    key = jax.random.PRNGKey(0)
    k_params, k_x = jax.random.split(key)

    params = init_actor_params(k_params, STATE_SIZE, ACTION_SIZE, FC1_UNITS, FC2_UNITS)
    packed = pack_actor_params(params, STATE_SIZE, ACTION_SIZE, FC1_UNITS, FC2_UNITS)
    x = jax.random.normal(k_x, (BATCH, STATE_SIZE), jnp.float32)

    out = actor_forward(x, packed, ACTION_SIZE)
    out = jax.block_until_ready(out)
    assert out.shape == (BATCH, ACTION_SIZE), out.shape

    # Tight check against a reference with identical numerics (bf16 dots,
    # centered one-pass BN, dropped pre-BN biases).
    ref_mirror = actor_reference_mirrored(x, params)
    err_mirror = float(jnp.max(jnp.abs(out - ref_mirror)))
    assert err_mirror < 1e-4, f"mirrored-ref mismatch: {err_mirror}"

    # Sanity check against the full-f32 PyTorch-semantic reference
    # (looser tolerance: only difference is bf16 weight/activation rounding).
    ref_f32 = actor_reference_f32(x, params)
    err_f32 = float(jnp.max(jnp.abs(out - ref_f32)))
    assert err_f32 < 5e-2, f"f32-ref mismatch: {err_f32}"

    print("KERNEL_OK")
</pallas_src>

<mosaic_0001>
module attributes {stable_mosaic.version = 11 : i64} {
  func.func @actor_kernel(%arg0: memref<256x16xf32, #tpu.memory_space<vmem>>, %arg1: memref<16x384xbf16, #tpu.memory_space<vmem>>, %arg2: memref<1x384xf32, #tpu.memory_space<vmem>>, %arg3: memref<1x384xf32, #tpu.memory_space<vmem>>, %arg4: memref<384x384xbf16, #tpu.memory_space<any>>, %arg5: memref<1x384xf32, #tpu.memory_space<vmem>>, %arg6: memref<1x384xf32, #tpu.memory_space<vmem>>, %arg7: memref<384x128xbf16, #tpu.memory_space<any>>, %arg8: memref<1x128xf32, #tpu.memory_space<vmem>>, %arg9: memref<256x128xf32, #tpu.memory_space<vmem>>, %arg10: memref<384x384xbf16, #tpu.memory_space<vmem>>, %arg11: memref<384x128xbf16, #tpu.memory_space<vmem>>, %arg12: memref<2x!tpu.dma_semaphore, #tpu.memory_space<semaphore_mem>>) attributes {dimension_semantics = [], scalar_prefetch = 0 : i64, scratch_operands = 3 : i64, tpu.core_type = #tpu.core_type<tc>} {
    %c0_i32 = arith.constant 0 : i32
    %0 = tpu.memref_slice %arg12[%c0_i32] : memref<2x!tpu.dma_semaphore, #tpu.memory_space<semaphore_mem>> -> memref<1x!tpu.dma_semaphore, #tpu.memory_space<semaphore_mem>>
    %1 = tpu.memref_squeeze %0 : memref<1x!tpu.dma_semaphore, #tpu.memory_space<semaphore_mem>> -> memref<!tpu.dma_semaphore, #tpu.memory_space<semaphore_mem>>
    tpu.enqueue_dma source(%arg4 : memref<384x384xbf16, #tpu.memory_space<any>>) target(%arg10 : memref<384x384xbf16, #tpu.memory_space<vmem>>) target_semaphore(%1 : memref<!tpu.dma_semaphore, #tpu.memory_space<semaphore_mem>>)
    %c1_i32 = arith.constant 1 : i32
    %2 = tpu.memref_slice %arg12[%c1_i32] : memref<2x!tpu.dma_semaphore, #tpu.memory_space<semaphore_mem>> -> memref<1x!tpu.dma_semaphore, #tpu.memory_space<semaphore_mem>>
    %3 = tpu.memref_squeeze %2 : memref<1x!tpu.dma_semaphore, #tpu.memory_space<semaphore_mem>> -> memref<!tpu.dma_semaphore, #tpu.memory_space<semaphore_mem>>
    tpu.enqueue_dma source(%arg7 : memref<384x128xbf16, #tpu.memory_space<any>>) target(%arg11 : memref<384x128xbf16, #tpu.memory_space<vmem>>) target_semaphore(%3 : memref<!tpu.dma_semaphore, #tpu.memory_space<semaphore_mem>>)
    %c0 = arith.constant 0 : index
    %c0_0 = arith.constant 0 : index
    %4 = vector.load %arg0[%c0, %c0_0] : memref<256x16xf32, #tpu.memory_space<vmem>>, vector<256x16xf32>
    %5 = arith.truncf %4 : vector<256x16xf32> to vector<256x16xbf16>
    %c0_1 = arith.constant 0 : index
    %c0_2 = arith.constant 0 : index
    %6 = vector.load %arg1[%c0_1, %c0_2] : memref<16x384xbf16, #tpu.memory_space<vmem>>, vector<16x384xbf16>
    %cst = arith.constant dense<0.000000e+00> : vector<256x384xf32>
    %7 = tpu.matmul %5, %6, %cst {dimension_numbers = #tpu.dot_dimension_numbers<[1], [0], [0], [1], [0, 0, 1, 1], [], []>} : vector<256x16xbf16>, vector<16x384xbf16>, vector<256x384xf32> -> vector<256x384xf32>
    %c0_3 = arith.constant 0 : index
    %c0_4 = arith.constant 0 : index
    %8 = vector.load %arg2[%c0_3, %c0_4] : memref<1x384xf32, #tpu.memory_space<vmem>>, vector<1x384xf32>
    %c0_5 = arith.constant 0 : index
    %c0_6 = arith.constant 0 : index
    %9 = vector.load %arg3[%c0_5, %c0_6] : memref<1x384xf32, #tpu.memory_space<vmem>>, vector<1x384xf32>
    %cst_7 = arith.constant dense<0.000000e+00> : vector<384xf32>
    %10 = vector.multi_reduction <add>, %7, %cst_7 [0] : vector<256x384xf32> to vector<384xf32>
    %11 = vector.shape_cast %10 : vector<384xf32> to vector<1x384xf32>
    %cst_8 = arith.constant 3.906250e-03 : f32
    %12 = vector.broadcast %cst_8 : f32 to vector<1x384xf32>
    %13 = arith.mulf %11, %12 : vector<1x384xf32>
    %14 = vector.broadcast %13 : vector<1x384xf32> to vector<256x384xf32>
    %15 = arith.subf %7, %14 : vector<256x384xf32>
    %16 = arith.mulf %15, %15 : vector<256x384xf32>
    %cst_9 = arith.constant dense<0.000000e+00> : vector<384xf32>
    %17 = vector.multi_reduction <add>, %16, %cst_9 [0] : vector<256x384xf32> to vector<384xf32>
    %18 = vector.shape_cast %17 : vector<384xf32> to vector<1x384xf32>
    %cst_10 = arith.constant 3.906250e-03 : f32
    %19 = vector.broadcast %cst_10 : f32 to vector<1x384xf32>
    %20 = arith.mulf %18, %19 : vector<1x384xf32>
    %cst_11 = arith.constant 9.99999974E-6 : f32
    %21 = vector.broadcast %cst_11 : f32 to vector<1x384xf32>
    %22 = arith.addf %20, %21 : vector<1x384xf32>
    %23 = math.rsqrt %22 : vector<1x384xf32>
    %24 = arith.mulf %8, %23 : vector<1x384xf32>
    %25 = vector.broadcast %24 : vector<1x384xf32> to vector<256x384xf32>
    %26 = arith.mulf %15, %25 : vector<256x384xf32>
    %27 = vector.broadcast %9 : vector<1x384xf32> to vector<256x384xf32>
    %28 = arith.addf %26, %27 : vector<256x384xf32>
    %cst_12 = arith.constant 0.000000e+00 : f32
    %29 = vector.broadcast %cst_12 : f32 to vector<256x384xf32>
    %30 = arith.maximumf %28, %29 : vector<256x384xf32>
    %c0_i32_13 = arith.constant 0 : i32
    %31 = tpu.memref_slice %arg12[%c0_i32_13] : memref<2x!tpu.dma_semaphore, #tpu.memory_space<semaphore_mem>> -> memref<1x!tpu.dma_semaphore, #tpu.memory_space<semaphore_mem>>
    %32 = tpu.memref_squeeze %31 : memref<1x!tpu.dma_semaphore, #tpu.memory_space<semaphore_mem>> -> memref<!tpu.dma_semaphore, #tpu.memory_space<semaphore_mem>>
    tpu.wait_dma2 semaphore(%32 : memref<!tpu.dma_semaphore, #tpu.memory_space<semaphore_mem>>) src(%arg4 : memref<384x384xbf16, #tpu.memory_space<any>>) dst(%arg10 : memref<384x384xbf16, #tpu.memory_space<vmem>>)
    %33 = arith.truncf %30 : vector<256x384xf32> to vector<256x384xbf16>
    %c0_14 = arith.constant 0 : index
    %c0_15 = arith.constant 0 : index
    %34 = vector.load %arg10[%c0_14, %c0_15] : memref<384x384xbf16, #tpu.memory_space<vmem>>, vector<384x384xbf16>
    %cst_16 = arith.constant dense<0.000000e+00> : vector<256x384xf32>
    %35 = tpu.matmul %33, %34, %cst_16 {dimension_numbers = #tpu.dot_dimension_numbers<[1], [0], [0], [1], [0, 0, 1, 1], [], []>} : vector<256x384xbf16>, vector<384x384xbf16>, vector<256x384xf32> -> vector<256x384xf32>
    %c0_17 = arith.constant 0 : index
    %c0_18 = arith.constant 0 : index
    %36 = vector.load %arg5[%c0_17, %c0_18] : memref<1x384xf32, #tpu.memory_space<vmem>>, vector<1x384xf32>
    %c0_19 = arith.constant 0 : index
    %c0_20 = arith.constant 0 : index
    %37 = vector.load %arg6[%c0_19, %c0_20] : memref<1x384xf32, #tpu.memory_space<vmem>>, vector<1x384xf32>
    %cst_21 = arith.constant dense<0.000000e+00> : vector<384xf32>
    %38 = vector.multi_reduction <add>, %35, %cst_21 [0] : vector<256x384xf32> to vector<384xf32>
    %39 = vector.shape_cast %38 : vector<384xf32> to vector<1x384xf32>
    %cst_22 = arith.constant 3.906250e-03 : f32
    %40 = vector.broadcast %cst_22 : f32 to vector<1x384xf32>
    %41 = arith.mulf %39, %40 : vector<1x384xf32>
    %42 = vector.broadcast %41 : vector<1x384xf32> to vector<256x384xf32>
    %43 = arith.subf %35, %42 : vector<256x384xf32>
    %44 = arith.mulf %43, %43 : vector<256x384xf32>
    %cst_23 = arith.constant dense<0.000000e+00> : vector<384xf32>
    %45 = vector.multi_reduction <add>, %44, %cst_23 [0] : vector<256x384xf32> to vector<384xf32>
    %46 = vector.shape_cast %45 : vector<384xf32> to vector<1x384xf32>
    %cst_24 = arith.constant 3.906250e-03 : f32
    %47 = vector.broadcast %cst_24 : f32 to vector<1x384xf32>
    %48 = arith.mulf %46, %47 : vector<1x384xf32>
    %cst_25 = arith.constant 9.99999974E-6 : f32
    %49 = vector.broadcast %cst_25 : f32 to vector<1x384xf32>
    %50 = arith.addf %48, %49 : vector<1x384xf32>
    %51 = math.rsqrt %50 : vector<1x384xf32>
    %52 = arith.mulf %36, %51 : vector<1x384xf32>
    %53 = vector.broadcast %52 : vector<1x384xf32> to vector<256x384xf32>
    %54 = arith.mulf %43, %53 : vector<256x384xf32>
    %55 = vector.broadcast %37 : vector<1x384xf32> to vector<256x384xf32>
    %56 = arith.addf %54, %55 : vector<256x384xf32>
    %cst_26 = arith.constant 0.000000e+00 : f32
    %57 = vector.broadcast %cst_26 : f32 to vector<256x384xf32>
    %58 = arith.maximumf %56, %57 : vector<256x384xf32>
    %c1_i32_27 = arith.constant 1 : i32
    %59 = tpu.memref_slice %arg12[%c1_i32_27] : memref<2x!tpu.dma_semaphore, #tpu.memory_space<semaphore_mem>> -> memref<1x!tpu.dma_semaphore, #tpu.memory_space<semaphore_mem>>
    %60 = tpu.memref_squeeze %59 : memref<1x!tpu.dma_semaphore, #tpu.memory_space<semaphore_mem>> -> memref<!tpu.dma_semaphore, #tpu.memory_space<semaphore_mem>>
    tpu.wait_dma2 semaphore(%60 : memref<!tpu.dma_semaphore, #tpu.memory_space<semaphore_mem>>) src(%arg7 : memref<384x128xbf16, #tpu.memory_space<any>>) dst(%arg11 : memref<384x128xbf16, #tpu.memory_space<vmem>>)
    %61 = arith.truncf %58 : vector<256x384xf32> to vector<256x384xbf16>
    %c0_28 = arith.constant 0 : index
    %c0_29 = arith.constant 0 : index
    %62 = vector.load %arg11[%c0_28, %c0_29] : memref<384x128xbf16, #tpu.memory_space<vmem>>, vector<384x128xbf16>
    %cst_30 = arith.constant dense<0.000000e+00> : vector<256x128xf32>
    %63 = tpu.matmul %61, %62, %cst_30 {dimension_numbers = #tpu.dot_dimension_numbers<[1], [0], [0], [1], [0, 0, 1, 1], [], []>} : vector<256x384xbf16>, vector<384x128xbf16>, vector<256x128xf32> -> vector<256x128xf32>
    %c0_31 = arith.constant 0 : index
    %c0_32 = arith.constant 0 : index
    %64 = vector.load %arg8[%c0_31, %c0_32] : memref<1x128xf32, #tpu.memory_space<vmem>>, vector<1x128xf32>
    %65 = vector.broadcast %64 : vector<1x128xf32> to vector<256x128xf32>
    %66 = arith.addf %63, %65 : vector<256x128xf32>
    %67 = math.tanh %66 : vector<256x128xf32>
    %c0_33 = arith.constant 0 : index
    %c0_34 = arith.constant 0 : index
    %68 = vector.load %arg9[%c0_33, %c0_34] : memref<256x128xf32, #tpu.memory_space<vmem>>, vector<256x128xf32>
    tpu.vector_store %arg9[%c0_33, %c0_34], %67 {strides = array<i32>} : memref<256x128xf32, #tpu.memory_space<vmem>>, vector<256x128xf32>,
    return
  }
}

</mosaic_0001>

<bundles_post_ra>
// kernel: actor_forward.1
= control target key start
LH: loop header
LB: loop body
LE: loop exit
PB: predicated region body
PF: predicated region fallthrough
CT: control target
= control target key end

     0   :  { %s4611_s12 = smov [#allocation2]   ;;  %s9216_s0 = inlined_call_operand.vmem [shape: f32[256,16], index: 0, kind: input, shape index: {}]   ;;  %s9217_s1 = inlined_call_operand.vmem [shape: bf16[16,384], index: 1, kind: input, shape index: {}]   ;;  %s9218_s2 = inlined_call_operand.vmem [shape: f32[1,384], index: 2, kind: input, shape index: {}]   ;;  %s9219_s3 = inlined_call_operand.vmem [shape: f32[1,384], index: 3, kind: input, shape index: {}]   ;;  %s9220_s4 = inlined_call_operand.hbm [shape: bf16[384,384], index: 4, kind: input, shape index: {}]   ;;  %s9221_s5 = inlined_call_operand.vmem [shape: f32[1,384], index: 5, kind: input, shape index: {}]   ;;  %s9222_s6 = inlined_call_operand.vmem [shape: f32[1,384], index: 6, kind: input, shape index: {}]   ;;  %s9223_s8 = inlined_call_operand.vmem [shape: f32[1,128], index: 8, kind: input, shape index: {}]   ;;  %s9224_s9 = inlined_call_operand.vmem [shape: f32[256,128], index: 9, kind: output, shape index: {}]   ;;  %s9225_s7 = inlined_call_operand.vmem [shape: bf16[384,128], index: 7, kind: input, shape index: {}]  }
   0x1   :  { %s36_s11 = sshll.u32 %s9220_s4, 4  ;;  %s38_s13 = sshll.u32 %s4611_s12, 4  ;;  %v53_v0 = vld [vmem:[%s9225_s7] sm:$0xff]  ;;  %v55_v1 = vld [vmem:[%s9225_s7 + $0x8] sm:$0xff]  ;;  %v57_v2 = vld [vmem:[%s9225_s7 + $0x10] sm:$0xff]  ;;  %s37_s11 = int_to_ptr.hbm [resolvable:$true] %s36_s11  ;;  %s39_s13 = int_to_ptr.vmem [resolvable:$true] %s38_s13 }
   0x2   :  { %54 = vst [vmem:[#allocation3 + $0xb0] sm:$0xff] %v53_v0  ;;  %v59_v3 = vld [vmem:[%s9225_s7 + $0x18] sm:$0xff]  ;;  %41 = dma.hbm_to_vmem [thread:$0]  %s37_s11, 9216, %s39_s13, [#allocation4]  ;;  %v61_v4 = vld [vmem:[%s9225_s7 + $0x20] sm:$0xff]  ;;  %v63_v5 = vld [vmem:[%s9225_s7 + $0x28] sm:$0xff] }
   0x3   :  { %56 = vst [vmem:[#allocation3] sm:$0xff] %v55_v1  ;;  %v65_v6 = vld [vmem:[%s9225_s7 + $0x30] sm:$0xff]  ;;  %v67_v7 = vld [vmem:[%s9225_s7 + $0x38] sm:$0xff]  ;;  %v69_v8 = vld [vmem:[%s9225_s7 + $0x40] sm:$0xff] }
   0x4   :  { %58 = vst [vmem:[#allocation3 + $0x10] sm:$0xff] %v57_v2  ;;  %v71_v9 = vld [vmem:[%s9225_s7 + $0x48] sm:$0xff]  ;;  %v73_v10 = vld [vmem:[%s9225_s7 + $0x50] sm:$0xff]  ;;  %v75_v11 = vld [vmem:[%s9225_s7 + $0x58] sm:$0xff] }
   0x5   :  { %60 = vst [vmem:[#allocation3 + $0x48] sm:$0xff] %v59_v3  ;;  %v77_v12 = vld [vmem:[%s9225_s7 + $0x60] sm:$0xff]  ;;  %v79_v13 = vld [vmem:[%s9225_s7 + $0x68] sm:$0xff]  ;;  %v81_v14 = vld [vmem:[%s9225_s7 + $0x70] sm:$0xff] }
   0x6   :  { %62 = vst [vmem:[#allocation3 + $0x60] sm:$0xff] %v61_v4  ;;  %v83_v15 = vld [vmem:[%s9225_s7 + $0x78] sm:$0xff]  ;;  %v85_v16 = vld [vmem:[%s9225_s7 + $0x80] sm:$0xff]  ;;  %v87_v17 = vld [vmem:[%s9225_s7 + $0x88] sm:$0xff] }
   0x7   :  { %64 = vst [vmem:[#allocation3 + $0x28] sm:$0xff] %v63_v5  ;;  %v89_v18 = vld [vmem:[%s9225_s7 + $0x90] sm:$0xff]  ;;  %v91_v19 = vld [vmem:[%s9225_s7 + $0x98] sm:$0xff]  ;;  %v93_v20 = vld [vmem:[%s9225_s7 + $0xa0] sm:$0xff] }
   0x8   :  { %66 = vst [vmem:[#allocation3 + $0x40] sm:$0xff] %v65_v6  ;;  %v95_v21 = vld [vmem:[%s9225_s7 + $0xa8] sm:$0xff]  ;;  %v97_v22 = vld [vmem:[%s9225_s7 + $0xb0] sm:$0xff]  ;;  %v99_v23 = vld [vmem:[%s9225_s7 + $0xb8] sm:$0xff] }
   0x9   :  { %68 = vst [vmem:[#allocation3 + $0x78] sm:$0xff] %v67_v7 }
   0xa   :  { %70 = vst [vmem:[#allocation3 + $0x88] sm:$0xff] %v69_v8 }
   0xb   :  { %72 = vst [vmem:[#allocation3 + $0x90] sm:$0xff] %v71_v9 }
   0xc   :  { %74 = vst [vmem:[#allocation3 + $0x18] sm:$0xff] %v73_v10 }
   0xd   :  { %76 = vst [vmem:[#allocation3 + $0x98] sm:$0xff] %v75_v11 }
   0xe   :  { %78 = vst [vmem:[#allocation3 + $0x38] sm:$0xff] %v77_v12 }
   0xf   :  { %80 = vst [vmem:[#allocation3 + $0x50] sm:$0xff] %v79_v13 }
  0x10   :  { %82 = vst [vmem:[#allocation3 + $0x70] sm:$0xff] %v81_v14 }
  0x11   :  { %84 = vst [vmem:[#allocation3 + $0xa0] sm:$0xff] %v83_v15 }
  0x12   :  { %86 = vst [vmem:[#allocation3 + $0xa8] sm:$0xff] %v85_v16 }
  0x13   :  { %88 = vst [vmem:[#allocation3 + $0x68] sm:$0xff] %v87_v17 }
  0x14   :  { %90 = vst [vmem:[#allocation3 + $0x30] sm:$0xff] %v89_v18 }
  0x15   :  { %92 = vst [vmem:[#allocation3 + $0x58] sm:$0xff] %v91_v19 }
  0x16   :  { %94 = vst [vmem:[#allocation3 + $0x80] sm:$0xff] %v93_v20 }
  0x17   :  { %96 = vst [vmem:[#allocation3 + $0xb8] sm:$0xff] %v95_v21 }
  0x18   :  { %98 = vst [vmem:[#allocation3 + $0x20] sm:$0xff] %v97_v22 }
  0x19   :  { %100 = vst [vmem:[#allocation3 + $0x8] sm:$0xff] %v99_v23 }
  0x1a   :  { %106 = vsyncadd [#allocation4 + $0x1], 3072  ;;  %v3959_v24 = vld [vmem:[%s9217_s1] sm:$0xf]  ;;  %v4404_v25 = vld [vmem:[%s9217_s1 + $0x8] sm:$0xf0] }
  0x1b   :  { %v3960_v26 = vor.u32 %v4404_v25, %v3959_v24  ;;  %v4403_v27 = vld [vmem:[%s9217_s1 + $0x4] sm:$0xf]  ;;  %v3961_v28 = vld [vmem:[%s9217_s1 + $0xc] sm:$0xf0]  ;;  %v3967_v29 = vld [vmem:[%s9217_s1 + $0x8] sm:$0xf] }
  0x1c   :  { %v3964_v30 = vor.u32 %v4403_v27, %v3961_v28  ;;  %v4405_v31 = vld [vmem:[%s9217_s1 + $0x10] sm:$0xf0]  ;;  %v107_v32 = vld [vmem:[%s9216_s0] sm:$0xff]  ;;  %v108_v33 = vld [vmem:[%s9216_s0 + $0x8] sm:$0xff]  ;;  %vm175_vm0 = vcmask 130048   ;;  %vm951_vm6 = vcmask 1040384  }
  0x1d   :  { %231 = vmatpush.bf16.msra.mxu0 %v3960_v26  ;;  %v3968_v34 = vor.u32 %v4405_v31, %v3967_v29  ;;  %v139_v35 = vpack.c.bf16 %v108_v33, %v107_v32  ;;  %4502 = vmatpush.bf16.msra.mxu3 %v3960_v26  ;;  %v131_v36 = vld [vmem:[%s9216_s0 + $0xc0] sm:$0xff]  ;;  %v132_v37 = vld [vmem:[%s9216_s0 + $0xc8] sm:$0xff]  ;;  %v109_v39 = vld [vmem:[%s9216_s0 + $0x10] sm:$0xff]  ;;  %vm953_vm11 = vcmask 1041408  }
  0x1e   :  { %320 = vmatpush.bf16.msra.mxu1 %v3964_v30  ;;  %v4767_v38 = vpack.c.bf16 %v132_v37, %v131_v36  ;;  %v110_v40 = vld [vmem:[%s9216_s0 + $0x18] sm:$0xff]  ;;  %v133_v41 = vld [vmem:[%s9216_s0 + $0xd0] sm:$0xff]  ;;  %v111_v45 = vld [vmem:[%s9216_s0 + $0x20] sm:$0xff] }
  0x1f   :  { %409 = vmatpush.bf16.msra.mxu2 %v3968_v34  ;;  %v134_v42 = vld [vmem:[%s9216_s0 + $0xd8] sm:$0xff]  ;;  %v140_v43 = vpack.c.bf16 %v110_v40, %v109_v39  ;;  %v112_v46 = vld [vmem:[%s9216_s0 + $0x28] sm:$0xff]  ;;  %v135_v47 = vld [vmem:[%s9216_s0 + $0xe0] sm:$0xff] }
  0x20   :  { %3969 = vmatmul.msk.bf16.vlgmr.msra.gmra.mxu0 %vm175_vm0, %v139_v35  ;;  %3981 = vmatmul.msk.bf16.vlgmr.msra.gmra.mxu3 %vm175_vm0, %v4767_v38  ;;  %v4786_v44 = vpack.c.bf16 %v134_v42, %v133_v41  ;;  %v136_v48 = vld [vmem:[%s9216_s0 + $0xe8] sm:$0xff]  ;;  %v141_v49 = vpack.c.bf16 %v112_v46, %v111_v45  ;;  %v113_v51 = vld [vmem:[%s9216_s0 + $0x30] sm:$0xff]  ;;  %v114_v52 = vld [vmem:[%s9216_s0 + $0x38] sm:$0xff] }
  0x21   :  { %4503 = vmatpush.bf16.msrb.mxu3 %v3964_v30  ;;  %3985 = vmatmul.msk.bf16.vlgmr.msra.gmra.mxu1 %vm175_vm0, %v139_v35  ;;  %v4805_v50 = vpack.c.bf16 %v136_v48, %v135_v47  ;;  %v137_v53 = vld [vmem:[%s9216_s0 + $0xf0] sm:$0xff]  ;;  %v138_v54 = vld [vmem:[%s9216_s0 + $0xf8] sm:$0xff]  ;;  %v142_v55 = vpack.c.bf16 %v114_v52, %v113_v51  ;;  %v115_v57 = vld [vmem:[%s9216_s0 + $0x40] sm:$0xff] }
  0x22   :  { %4001 = vmatmul.msk.bf16.vlgmr.msra.gmra.mxu2 %vm175_vm0, %v139_v35  ;;  %v4824_v56 = vpack.c.bf16 %v138_v54, %v137_v53  ;;  %v116_v58 = vld [vmem:[%s9216_s0 + $0x48] sm:$0xff]  ;;  %v117_v60 = vld [vmem:[%s9216_s0 + $0x50] sm:$0xff]  ;;  %v118_v61 = vld [vmem:[%s9216_s0 + $0x58] sm:$0xff] }
  0x23   :  { %v143_v59 = vpack.c.bf16 %v116_v58, %v115_v57  ;;  %v144_v62 = vpack.c.bf16 %v118_v61, %v117_v60  ;;  %v119_v63 = vld [vmem:[%s9216_s0 + $0x60] sm:$0xff]  ;;  %v120_v0 = vld [vmem:[%s9216_s0 + $0x68] sm:$0xff]  ;;  %v121_v2 = vld [vmem:[%s9216_s0 + $0x70] sm:$0xff] }
  0x24   :  { %v145_v1 = vpack.c.bf16 %v120_v0, %v119_v63  ;;  %v122_v3 = vld [vmem:[%s9216_s0 + $0x78] sm:$0xff]  ;;  %v123_v5 = vld [vmem:[%s9216_s0 + $0x80] sm:$0xff]  ;;  %v124_v6 = vld [vmem:[%s9216_s0 + $0x88] sm:$0xff] }
  0x25   :  { %4504 = vmatpush.bf16.msra.mxu3 %v3968_v34  ;;  %v146_v4 = vpack.c.bf16 %v122_v3, %v121_v2  ;;  %v147_v7 = vpack.c.bf16 %v124_v6, %v123_v5  ;;  %v125_v14 = vld [vmem:[%s9216_s0 + $0x90] sm:$0xff]  ;;  %v126_v15 = vld [vmem:[%s9216_s0 + $0x98] sm:$0xff]  ;;  %v127_v24 = vld [vmem:[%s9216_s0 + $0xa0] sm:$0xff] }
  0x26   :  { %v148_v16 = vpack.c.bf16 %v126_v15, %v125_v14  ;;  %v128_v25 = vld [vmem:[%s9216_s0 + $0xa8] sm:$0xff]  ;;  %v129_v35 = vld [vmem:[%s9216_s0 + $0xb0] sm:$0xff]  ;;  %v130_v36 = vld [vmem:[%s9216_s0 + $0xb8] sm:$0xff] }
  0x27   :  { %v149_v27 = vpack.c.bf16 %v128_v25, %v127_v24  ;;  %v150_v37 = vpack.c.bf16 %v130_v36, %v129_v35 }
  0x30   :  { %3970 = vmatmul.msk.bf16.gmra.mxu0 %vm175_vm0, %v140_v43  ;;  %3982 = vmatmul.msk.bf16.gmra.mxu3 %vm175_vm0, %v4786_v44 }
  0x31   :  { %3986 = vmatmul.msk.bf16.gmra.mxu1 %vm175_vm0, %v140_v43 }
  0x32   :  { %4002 = vmatmul.msk.bf16.gmra.mxu2 %vm175_vm0, %v140_v43 }
  0x40   :  { %3971 = vmatmul.msk.bf16.gmra.mxu0 %vm175_vm0, %v141_v49  ;;  %3983 = vmatmul.msk.bf16.gmra.mxu3 %vm175_vm0, %v4805_v50 }
  0x41   :  { %3987 = vmatmul.msk.bf16.gmra.mxu1 %vm175_vm0, %v141_v49 }
  0x42   :  { %4003 = vmatmul.msk.bf16.gmra.mxu2 %vm175_vm0, %v141_v49 }
  0x50   :  { %3972 = vmatmul.msk.bf16.gmra.mxu0 %vm175_vm0, %v142_v55  ;;  %3984 = vmatmul.msk.bf16.gmra.mxu3 %vm175_vm0, %v4824_v56 }
  0x51   :  { %3988 = vmatmul.msk.bf16.gmra.mxu1 %vm175_vm0, %v142_v55 }
  0x52   :  { %4004 = vmatmul.msk.bf16.gmra.mxu2 %vm175_vm0, %v142_v55 }
  0x60   :  { %3973 = vmatmul.msk.bf16.gmra.mxu0 %vm175_vm0, %v143_v59  ;;  %3997 = vmatmul.msk.bf16.vlgmr.msrb.gmra.mxu3 %vm175_vm0, %v4767_v38 }
  0x61   :  { %3989 = vmatmul.msk.bf16.gmra.mxu1 %vm175_vm0, %v143_v59 }
  0x62   :  { %4005 = vmatmul.msk.bf16.gmra.mxu2 %vm175_vm0, %v143_v59 }
  0x70   :  { %3974 = vmatmul.msk.bf16.gmra.mxu0 %vm175_vm0, %v144_v62  ;;  %3998 = vmatmul.msk.bf16.gmra.mxu3 %vm175_vm0, %v4786_v44 }
  0x71   :  { %3990 = vmatmul.msk.bf16.gmra.mxu1 %vm175_vm0, %v144_v62 }
  0x72   :  { %4006 = vmatmul.msk.bf16.gmra.mxu2 %vm175_vm0, %v144_v62 }
  0x80   :  { %3975 = vmatmul.msk.bf16.gmra.mxu0 %vm175_vm0, %v145_v1  ;;  %3999 = vmatmul.msk.bf16.gmra.mxu3 %vm175_vm0, %v4805_v50 }
  0x81   :  { %3991 = vmatmul.msk.bf16.gmra.mxu1 %vm175_vm0, %v145_v1 }
  0x82   :  { %4007 = vmatmul.msk.bf16.gmra.mxu2 %vm175_vm0, %v145_v1 }
  0x90   :  { %3976 = vmatmul.msk.bf16.gmra.mxu0 %vm175_vm0, %v146_v4  ;;  %4000 = vmatmul.msk.bf16.gmra.mxu3 %vm175_vm0, %v4824_v56 }
  0x91   :  { %3992 = vmatmul.msk.bf16.gmra.mxu1 %vm175_vm0, %v146_v4 }
  0x92   :  { %4008 = vmatmul.msk.bf16.gmra.mxu2 %vm175_vm0, %v146_v4 }
  0x9d   :  { %v4881_v8 = vpop.f32.mrf.mxu0 }
  0x9e   :  { %v4883_v9 = vpop.f32.mrf.mxu1 }
  0x9f   :  { %9593 = vst [vmem:[#allocation12_spill] sm:$0xff] %v4883_v9 }
  0xa0   :  { %3977 = vmatmul.msk.bf16.gmra.mxu0 %vm175_vm0, %v147_v7  ;;  %4013 = vmatmul.msk.bf16.vlgmr.msra.gmra.mxu3 %vm175_vm0, %v4767_v38 }
  0xa1   :  { %3993 = vmatmul.msk.bf16.gmra.mxu1 %vm175_vm0, %v147_v7 }
  0xa2   :  { %4009 = vmatmul.msk.bf16.gmra.mxu2 %vm175_vm0, %v147_v7 }
  0xa3   :  { %v4896_v13 = vpop.f32.mrf.mxu3 }
  0xa5   :  { %v4890_v10 = vpop.f32.mrf.mxu2  ;;  %v4892_v11 = vpop.f32.mrf.mxu0 }
  0xa6   :  { %9594 = vst [vmem:[#allocation13_spill] sm:$0xff] %v4890_v10  ;;  %v4894_v12 = vpop.f32.mrf.mxu1 }
  0xa7   :  { %9595 = vst [vmem:[#allocation14_spill] sm:$0xff] %v4892_v11 }
  0xa8   :  { %9596 = vst [vmem:[#allocation15_spill] sm:$0xff] %v4894_v12 }
  0xab   :  { %v4911_v20 = vpop.f32.mrf.mxu3 }
  0xad   :  { %v4904_v17 = vpop.f32.mrf.mxu2  ;;  %v4906_v18 = vpop.f32.mrf.mxu0 }
  0xae   :  { %9597 = vst [vmem:[#allocation16_spill] sm:$0xff] %v4904_v17  ;;  %v4908_v19 = vpop.f32.mrf.mxu1 }
  0xaf   :  { %9598 = vst [vmem:[#allocation17_spill] sm:$0xff] %v4906_v18 }
  0xb0   :  { %9599 = vst [vmem:[#allocation18_spill] sm:$0xff] %v4908_v19  ;;  %3978 = vmatmul.msk.bf16.gmra.mxu0 %vm175_vm0, %v148_v16  ;;  %4014 = vmatmul.msk.bf16.gmra.mxu3 %vm175_vm0, %v4786_v44 }
  0xb1   :  { %3994 = vmatmul.msk.bf16.gmra.mxu1 %vm175_vm0, %v148_v16 }
  0xb2   :  { %4010 = vmatmul.msk.bf16.gmra.mxu2 %vm175_vm0, %v148_v16 }
  0xb3   :  { %v4929_v26 = vpop.f32.mrf.mxu3 }
  0xb4   :  { %9602 = vst [vmem:[#allocation21_spill] sm:$0xff] %v4929_v26 }
  0xb5   :  { %v4917_v21 = vpop.f32.mrf.mxu2  ;;  %v4919_v22 = vpop.f32.mrf.mxu0 }
  0xb6   :  { %9600 = vst [vmem:[#allocation19_spill] sm:$0xff] %v4917_v21  ;;  %v4921_v23 = vpop.f32.mrf.mxu1 }
  0xb7   :  { %9601 = vst [vmem:[#allocation20_spill] sm:$0xff] %v4919_v22 }
  0xbb   :  { %v4942_v31 = vpop.f32.mrf.mxu3 }
  0xbc   :  { %9604 = vst [vmem:[#allocation23_spill] sm:$0xff] %v4942_v31 }
  0xbd   :  { %v4931_v28 = vpop.f32.mrf.mxu2  ;;  %v4933_v29 = vpop.f32.mrf.mxu0 }
  0xbe   :  { %9603 = vst [vmem:[#allocation22_spill] sm:$0xff] %v4931_v28  ;;  %v4935_v30 = vpop.f32.mrf.mxu1 }
  0xc0   :  { %3979 = vmatmul.msk.bf16.gmra.mxu0 %vm175_vm0, %v149_v27  ;;  %4015 = vmatmul.msk.bf16.gmra.mxu3 %vm175_vm0, %v4805_v50 }
  0xc1   :  { %3995 = vmatmul.msk.bf16.gmra.mxu1 %vm175_vm0, %v149_v27 }
  0xc2   :  { %4011 = vmatmul.msk.bf16.gmra.mxu2 %vm175_vm0, %v149_v27 }
  0xc3   :  { %v4960_v40 = vpop.f32.mrf.mxu3 }
  0xc4   :  { %9608 = vst [vmem:[#allocation27_spill] sm:$0xff] %v4960_v40  ;;  %v530_v40 = vadd.f32 %v4894_v12, %v4883_v9 }
  0xc5   :  { %v4944_v32 = vpop.f32.mrf.mxu2  ;;  %v4946_v33 = vpop.f32.mrf.mxu0 }
  0xc6   :  { %9605 = vst [vmem:[#allocation24_spill] sm:$0xff] %v4944_v32  ;;  %v4948_v34 = vpop.f32.mrf.mxu1 }
  0xc7   :  { %9606 = vst [vmem:[#allocation25_spill] sm:$0xff] %v4948_v34 }
  0xcb   :  { %v4975_v45 = vpop.f32.mrf.mxu3 }
  0xcc   :  { %9612 = vst [vmem:[#allocation31_spill] sm:$0xff] %v4975_v45 }
  0xcd   :  { %v4956_v38 = vpop.f32.mrf.mxu2  ;;  %v4958_v39 = vpop.f32.mrf.mxu0 }
  0xce   :  { %9607 = vst [vmem:[#allocation26_spill] sm:$0xff] %v4956_v38  ;;  %v4962_v41 = vpop.f32.mrf.mxu1 }
  0xcf   :  { %9609 = vst [vmem:[#allocation28_spill] sm:$0xff] %v4962_v41 }
  0xd0   :  { %3980 = vmatmul.msk.bf16.gmra.mxu0 %vm175_vm0, %v150_v37  ;;  %4016 = vmatmul.msk.bf16.gmra.mxu3 %vm175_vm0, %v4824_v56 }
  0xd1   :  { %3996 = vmatmul.msk.bf16.gmra.mxu1 %vm175_vm0, %v150_v37 }
  0xd2   :  { %4012 = vmatmul.msk.bf16.gmra.mxu2 %vm175_vm0, %v150_v37 }
  0xd3   :  { %v4983_v49 = vpop.f32.mrf.mxu3 }
  0xd4   :  { %9615 = vst [vmem:[#allocation34_spill] sm:$0xff] %v4983_v49 }
  0xd5   :  { %v4969_v42 = vpop.f32.mrf.mxu2  ;;  %v4971_v43 = vpop.f32.mrf.mxu0 }
  0xd6   :  { %9610 = vst [vmem:[#allocation29_spill] sm:$0xff] %v4969_v42  ;;  %v4973_v44 = vpop.f32.mrf.mxu1 }
  0xd7   :  { %9611 = vst [vmem:[#allocation30_spill] sm:$0xff] %v4973_v44 }
  0xdb   :  { %v4991_v53 = vpop.f32.mrf.mxu3 }
  0xdc   :  { %9618 = vst [vmem:[#allocation37_spill] sm:$0xff] %v4991_v53 }
  0xdd   :  { %v4977_v46 = vpop.f32.mrf.mxu2  ;;  %v4979_v47 = vpop.f32.mrf.mxu0 }
  0xde   :  { %9613 = vst [vmem:[#allocation32_spill] sm:$0xff] %v4977_v46  ;;  %v4981_v48 = vpop.f32.mrf.mxu1 }
  0xdf   :  { %9614 = vst [vmem:[#allocation33_spill] sm:$0xff] %v4981_v48 }
  0xe3   :  { %v5003_v59 = vpop.f32.mrf.mxu3 }
  0xe4   :  { %9622 = vst [vmem:[#allocation41_spill] sm:$0xff] %v5003_v59 }
  0xe5   :  { %v4985_v50 = vpop.f32.mrf.mxu2  ;;  %v4987_v51 = vpop.f32.mrf.mxu0 }
  0xe6   :  { %9616 = vst [vmem:[#allocation35_spill] sm:$0xff] %v4985_v50  ;;  %v4989_v52 = vpop.f32.mrf.mxu1 }
  0xe7   :  { %9617 = vst [vmem:[#allocation36_spill] sm:$0xff] %v4989_v52 }
  0xeb   :  { %v5013_v0 = vpop.f32.mrf.mxu3 }
  0xec   :  { %9624 = vst [vmem:[#allocation43_spill] sm:$0xff] %v5013_v0 }
  0xed   :  { %v4993_v54 = vpop.f32.mrf.mxu2  ;;  %v4995_v55 = vpop.f32.mrf.mxu0 }
  0xee   :  { %9619 = vst [vmem:[#allocation38_spill] sm:$0xff] %v4993_v54  ;;  %v4997_v56 = vpop.f32.mrf.mxu1 }
  0xef   :  { %9620 = vst [vmem:[#allocation39_spill] sm:$0xff] %v4997_v56 }
  0xf3   :  { %v5021_v4 = vpop.f32.mrf.mxu3 }
  0xf4   :  { %9626 = vst [vmem:[#allocation45_spill] sm:$0xff] %v5021_v4 }
  0xf5   :  { %v4999_v57 = vpop.f32.mrf.mxu2  ;;  %v5001_v58 = vpop.f32.mrf.mxu0 }
  0xf6   :  { %9621 = vst [vmem:[#allocation40_spill] sm:$0xff] %v4999_v57  ;;  %v5005_v60 = vpop.f32.mrf.mxu1 }
  0xfb   :  { %v5029_v14 = vpop.f32.mrf.mxu3 }
  0xfc   :  { %9629 = vst [vmem:[#allocation48_spill] sm:$0xff] %v5029_v14  ;;  %v493_v14 = vadd.f32 %v4892_v11, %v4881_v8 }
  0xfd   :  { %v5007_v61 = vpop.f32.mrf.mxu2  ;;  %v5009_v62 = vpop.f32.mrf.mxu0 }
  0xfe   :  { %9623 = vst [vmem:[#allocation42_spill] sm:$0xff] %v5007_v61  ;;  %v5011_v63 = vpop.f32.mrf.mxu1  ;;  %v494_v31 = vadd.f32 %v493_v14, %v4906_v18 }
 0x103   :  { %v5041_v35 = vpop.f32.mrf.mxu3 }
 0x104   :  { %9632 = vst [vmem:[#allocation51_spill] sm:$0xff] %v5041_v35  ;;  %v531_v35 = vadd.f32 %v530_v40, %v4908_v19 }
 0x105   :  { %v5015_v1 = vpop.f32.mrf.mxu2  ;;  %v5017_v2 = vpop.f32.mrf.mxu0 }
 0x106   :  { %9625 = vst [vmem:[#allocation44_spill] sm:$0xff] %v5015_v1  ;;  %v5019_v3 = vpop.f32.mrf.mxu1 }
 0x10b   :  { %v5051_v45 = vpop.f32.mrf.mxu3 }
 0x10c   :  { %9634 = vst [vmem:[#allocation53_spill] sm:$0xff] %v5051_v45  ;;  %v532_v45 = vadd.f32 %v531_v35, %v4921_v23 }
 0x10d   :  { %v5023_v5 = vpop.f32.mrf.mxu2  ;;  %v5025_v6 = vpop.f32.mrf.mxu0 }
 0x10e   :  { %9627 = vst [vmem:[#allocation46_spill] sm:$0xff] %v5023_v5  ;;  %v5027_v7 = vpop.f32.mrf.mxu1  ;;  %v533_v11 = vadd.f32 %v532_v45, %v4935_v30 }
 0x10f   :  { %9628 = vst [vmem:[#allocation47_spill] sm:$0xff] %v5027_v7 }
 0x110   :  { %v534_v40 = vadd.f32 %v533_v11, %v4948_v34 }
 0x113   :  { %v5070_v9 = vpop.f32.mrf.mxu3 }
 0x115   :  { %v5031_v15 = vpop.f32.mrf.mxu2  ;;  %v5033_v16 = vpop.f32.mrf.mxu0 }
 0x116   :  { %9630 = vst [vmem:[#allocation49_spill] sm:$0xff] %v5031_v15  ;;  %v5035_v24 = vpop.f32.mrf.mxu1 }
 0x11d   :  { %v5037_v25 = vpop.f32.mrf.mxu2  ;;  %v5039_v27 = vpop.f32.mrf.mxu0 }
 0x11e   :  { %9631 = vst [vmem:[#allocation50_spill] sm:$0xff] %v5037_v25  ;;  %v5043_v36 = vpop.f32.mrf.mxu1 }
 0x125   :  { %v5045_v37 = vpop.f32.mrf.mxu2  ;;  %v5047_v53 = vpop.f32.mrf.mxu0 }
 0x126   :  { %9633 = vst [vmem:[#allocation52_spill] sm:$0xff] %v5045_v37  ;;  %v5049_v49 = vpop.f32.mrf.mxu1  ;;  %v495_v37 = vadd.f32 %v494_v31, %v4919_v22  ;;  %v535_v31 = vadd.f32 %v534_v40, %v4962_v41  ;;  %v5088_v41 = vpop.f32.mrf.mxu3 }
 0x128   :  { %v496_v0 = vadd.f32 %v495_v37, %v4933_v29  ;;  %v536_v35 = vadd.f32 %v535_v31, %v4973_v44 }
 0x12a   :  { %v497_v12 = vadd.f32 %v496_v0, %v4946_v33  ;;  %v537_v0 = vadd.f32 %v536_v35, %v4981_v48 }
 0x12c   :  { %v498_v14 = vadd.f32 %v497_v12, %v4958_v39  ;;  %v538_v12 = vadd.f32 %v537_v0, %v4989_v52 }
 0x12d   :  { %v5059_v4 = vpop.f32.mrf.mxu0  ;;  %v5062_v25 = vpop.f32.mrf.mxu2 }
 0x12e   :  { %9635 = vst [vmem:[#allocation54_spill] sm:$0xff] %v5062_v25  ;;  %v5064_v26 = vpop.f32.mrf.mxu1  ;;  %v499_v22 = vadd.f32 %v498_v14, %v4971_v43  ;;  %v539_v14 = vadd.f32 %v538_v12, %v4997_v56 }
 0x12f   :  { %9636 = vst [vmem:[#allocation55_spill] sm:$0xff] %v5064_v26 }
 0x130   :  { %v500_v45 = vadd.f32 %v499_v22, %v4979_v47  ;;  %v540_v22 = vadd.f32 %v539_v14, %v5005_v60 }
 0x132   :  { %v501_v11 = vadd.f32 %v500_v45, %v4987_v51  ;;  %v567_v45 = vadd.f32 %v4904_v17, %v4890_v10  ;;  %v541_v0 = vadd.f32 %v540_v22, %v5011_v63  ;;  %v5112_v10 = vpop.f32.mrf.mxu3 }
 0x134   :  { %v502_v40 = vadd.f32 %v501_v11, %v4995_v55  ;;  %v568_v12 = vadd.f32 %v567_v45, %v4917_v21  ;;  %v542_v56 = vadd.f32 %v541_v0, %v5019_v3 }
 0x135   :  { %v5075_v19 = vpop.f32.mrf.mxu0  ;;  %v5082_v37 = vpop.f32.mrf.mxu2 }
 0x136   :  { %v5078_v18 = vpop.f32.mrf.mxu1  ;;  %9638 = vst [vmem:[#allocation57_spill] sm:$0xff] %v5082_v37  ;;  %v503_v31 = vadd.f32 %v502_v40, %v5001_v58  ;;  %v569_v48 = vadd.f32 %v568_v12, %v4931_v28  ;;  %v543_v14 = vadd.f32 %v542_v56, %v5027_v7 }
 0x137   :  { %9637 = vst [vmem:[#allocation56_spill] sm:$0xff] %v5078_v18 }
 0x138   :  { %v504_v35 = vadd.f32 %v503_v31, %v5009_v62  ;;  %v544_v45 = vadd.f32 %v543_v14, %v5035_v24 }
 0x13a   :  { %v505_v11 = vadd.f32 %v504_v35, %v5017_v2  ;;  %v570_v35 = vadd.f32 %v569_v48, %v4944_v32  ;;  %v545_v12 = vadd.f32 %v544_v45, %v5043_v36 }
 0x13c   :  { %v506_v40 = vadd.f32 %v505_v11, %v5025_v6  ;;  %v571_v11 = vadd.f32 %v570_v35, %v4956_v38 }
 0x13d   :  { %v5091_v34 = vpop.f32.mrf.mxu0  ;;  %v5102_v52 = vpop.f32.mrf.mxu2 }
 0x13e   :  { %v5094_v44 = vpop.f32.mrf.mxu1  ;;  %9640 = vst [vmem:[#allocation59_spill] sm:$0xff] %v5102_v52  ;;  %v507_v17 = vadd.f32 %v506_v40, %v5033_v16  ;;  %v572_v28 = vadd.f32 %v571_v11, %v4969_v42  ;;  %v546_v40 = vadd.f32 %v545_v12, %v5049_v49  ;;  %v5136_v11 = vpop.f32.mrf.mxu3 }
 0x13f   :  { %9639 = vst [vmem:[#allocation58_spill] sm:$0xff] %v5094_v44 }
 0x140   :  { %v508_v0 = vadd.f32 %v507_v17, %v5039_v27  ;;  %v573_v48 = vadd.f32 %v572_v28, %v4977_v46  ;;  %v547_v14 = vadd.f32 %v546_v40, %v5064_v26 }
 0x142   :  { %v509_v56 = vadd.f32 %v508_v0, %v5047_v53  ;;  %v574_v45 = vadd.f32 %v573_v48, %v4985_v50  ;;  %v548_v0 = vadd.f32 %v547_v14, %v5078_v18  ;;  %v9653_v18 = vld [vmem:[#allocation48_spill] sm:$0xff] }
 0x144   :  { %v510_v21 = vadd.f32 %v509_v56, %v5059_v4  ;;  %v575_v56 = vadd.f32 %v574_v45, %v4993_v54  ;;  %v549_v28 = vadd.f32 %v548_v0, %v5094_v44  ;;  %v9646_v54 = vld [vmem:[#allocation21_spill] sm:$0xff]  ;;  %v9650_v44 = vld [vmem:[#allocation52_spill] sm:$0xff] }
 0x145   :  { %v5109_v31 = vpop.f32.mrf.mxu0  ;;  %v5125_v7 = vpop.f32.mrf.mxu2 }
 0x146   :  { %v5114_v22 = vpop.f32.mrf.mxu1  ;;  %9642 = vst [vmem:[#allocation61_spill] sm:$0xff] %v5125_v7  ;;  %v511_v17 = vadd.f32 %v510_v21, %v5075_v19  ;;  %v576_v46 = vadd.f32 %v575_v56, %v4999_v57  ;;  %v9645_v57 = vld [vmem:[#allocation43_spill] sm:$0xff] }
 0x147   :  { %9641 = vst [vmem:[#allocation60_spill] sm:$0xff] %v5114_v22  ;;  %v550_v21 = vadd.f32 %v549_v28, %v5114_v22  ;;  %v9647_v22 = vld [vmem:[#allocation50_spill] sm:$0xff] }
 0x148   :  { %v512_v12 = vadd.f32 %v511_v17, %v5091_v34  ;;  %v577_v48 = vadd.f32 %v576_v46, %v5007_v61 }
 0x14a   :  { %v513_v40 = vadd.f32 %v512_v12, %v5109_v31  ;;  %v578_v0 = vadd.f32 %v577_v48, %v5015_v1  ;;  %v9648_v1 = vld [vmem:[#allocation45_spill] sm:$0xff] }
 0x14c   :  { %v579_v28 = vadd.f32 %v578_v0, %v5023_v5 }
 0x14d   :  { %v5129_v32 = vpop.f32.mrf.mxu0  ;;  %v5149_v38 = vpop.f32.mrf.mxu2 }
 0x14e   :  { %v5132_v35 = vpop.f32.mrf.mxu1  ;;  %v514_v42 = vadd.f32 %v513_v40, %v5129_v32  ;;  %v5159_v40 = vpop.f32.mrf.mxu3  ;;  %v580_v61 = vadd.f32 %v579_v28, %v5031_v15  ;;  %v9654_v15 = vld [vmem:[#allocation31_spill] sm:$0xff] }
 0x14f   :  { %9643 = vst [vmem:[#allocation62_spill] sm:$0xff] %v5132_v35  ;;  %v551_v14 = vadd.f32 %v550_v21, %v5132_v35 }
 0x150   :  { %v581_v48 = vadd.f32 %v580_v61, %v9647_v22  ;;  %v9655_v61 = vld [vmem:[#allocation34_spill] sm:$0xff]  ;;  %v9656_v22 = vld [vmem:[#allocation51_spill] sm:$0xff] }
 0x152   :  { %v582_v0 = vadd.f32 %v581_v48, %v9650_v44  ;;  %v9657_v44 = vld [vmem:[#allocation37_spill] sm:$0xff] }
 0x154   :  { %v583_v28 = vadd.f32 %v582_v0, %v5062_v25 }
 0x155   :  { %v5147_v50 = vpop.f32.mrf.mxu0  ;;  %v5169_v5 = vpop.f32.mrf.mxu2 }
 0x156   :  { %v515_v17 = vadd.f32 %v514_v42, %v5147_v50  ;;  %v5152_v45 = vpop.f32.mrf.mxu1  ;;  %9651 = vst [vmem:[#allocation21_spill] sm:$0xff] %v5169_v5 }
 0x157   :  { %9644 = vst [vmem:[#allocation63_spill] sm:$0xff] %v5152_v45  ;;  %v552_v12 = vadd.f32 %v551_v14, %v5152_v45  ;;  %v9649_v45 = vld [vmem:[#allocation23_spill] sm:$0xff] }
 0x158   :  { %v516_v56 = vadd.f32 %v515_v17, %v4896_v13 }
 0x159   :  { %v553_v46 = vadd.f32 %v552_v12, %v5003_v59  ;;  %v9652_v12 = vld [vmem:[#allocation27_spill] sm:$0xff] }
 0x15a   :  { %v517_v21 = vadd.f32 %v516_v56, %v4911_v20 }
 0x15b   :  { %v554_v42 = vadd.f32 %v553_v46, %v9645_v57  ;;  %v5176_v57 = vpop.f32.mrf.mxu3 }
 0x15c   :  { %v518_v35 = vadd.f32 %v517_v21, %v9646_v54  ;;  %v584_v21 = vadd.f32 %v583_v28, %v5082_v37 }
 0x15d   :  { %v555_v14 = vadd.f32 %v554_v42, %v9648_v1  ;;  %v5185_v25 = vpop.f32.mrf.mxu2 }
 0x15e   :  { %v519_v17 = vadd.f32 %v518_v35, %v9649_v45  ;;  %v585_v48 = vadd.f32 %v584_v21, %v5102_v52  ;;  %9659 = vst [vmem:[#allocation23_spill] sm:$0xff] %v5185_v25 }
 0x15f   :  { %v556_v56 = vadd.f32 %v555_v14, %v9653_v18  ;;  %v9658_v14 = vld [vmem:[#allocation53_spill] sm:$0xff] }
 0x160   :  { %v520_v59 = vadd.f32 %v519_v17, %v9652_v12  ;;  %v586_v17 = vadd.f32 %v585_v48, %v5125_v7 }
 0x161   :  { %v557_v35 = vadd.f32 %v556_v56, %v9656_v22 }
 0x162   :  { %v521_v46 = vadd.f32 %v520_v59, %v9654_v15  ;;  %v587_v0 = vadd.f32 %v586_v17, %v5149_v38 }
 0x163   :  { %v558_v18 = vadd.f32 %v557_v35, %v9658_v14  ;;  %v5190_v21 = vpop.f32.mrf.mxu3 }
 0x164   :  { %v522_v42 = vadd.f32 %v521_v46, %v9655_v61  ;;  %v588_v28 = vadd.f32 %v587_v0, %v5169_v5  ;;  %9660 = vst [vmem:[#allocation27_spill] sm:$0xff] %v5190_v21 }
 0x165   :  { %v559_v46 = vadd.f32 %v558_v18, %v5070_v9 }
 0x166   :  { %v523_v1 = vadd.f32 %v522_v42, %v9657_v44  ;;  %v589_v56 = vadd.f32 %v588_v28, %v5185_v25 }
 0x167   :  { %v560_v48 = vadd.f32 %v559_v46, %v5088_v41 }
 0x168   :  { %v524_v26 = vrot.slane %v523_v1, 4  ;;  %v590_v7 = vadd.f32 %v589_v56, %v5112_v10 }
 0x169   :  { %v561_v52 = vrot.slane %v560_v48, 4 }
 0x16a   :  { %v525_v59 = vadd.f32 %v524_v26, %v523_v1  ;;  %v591_v26 = vadd.f32 %v590_v7, %v5136_v11 }
 0x16b   :  { %v5195_v17 = vpop.f32.mrf.mxu3  ;;  %v562_v0 = vadd.f32 %v561_v52, %v560_v48  ;;  %v9664_v52 = vld [vmem:[#allocation17_spill] sm:$0xff] }
 0x16c   :  { %v526_v37 = vrot.slane %v525_v59, 2  ;;  %v592_v5 = vadd.f32 %v591_v26, %v5159_v40 }
 0x16d   :  { %v563_v28 = vrot.slane %v562_v0, 2 }
 0x16e   :  { %v527_v42 = vadd.f32 %v526_v37, %v525_v59  ;;  %v593_v25 = vadd.f32 %v592_v5, %v5176_v57  ;;  %v9662_v59 = vld [vmem:[#allocation14_spill] sm:$0xff] }
 0x16f   :  { %v564_v7 = vadd.f32 %v563_v28, %v562_v0 }
 0x170   :  { %v528_v35 = vrot.slane %v527_v42, 1  ;;  %v594_v56 = vadd.f32 %v593_v25, %v5190_v21 }
 0x172   :  { %v529_v1 = vadd.f32 %v528_v35, %v527_v42  ;;  %v595_v0 = vadd.f32 %v594_v56, %v5195_v17 }
 0x173   :  { %v5218_v35 = vpop.f32.mrf.mxu3 }
 0x174   :  { %v5198_v18 = vmul.f32 0.00390625, %v529_v1  ;;  %v565_v1 = vrot.slane %v564_v7, 1  ;;  %v596_v21 = vadd.f32 %v595_v0, %v5218_v35 }
 0x176   :  { %v5203_v37 = vsub.f32 %v4881_v8, %v5198_v18  ;;  %v5207_v46 = vsub.f32 %v9662_v59, %v5198_v18  ;;  %v5212_v42 = vsub.f32 %v9664_v52, %v5198_v18  ;;  %v9666_v8 = vld [vmem:[#allocation20_spill] sm:$0xff]  ;;  %v5227_v25 = vsub.f32 %v4933_v29, %v5198_v18 }
 0x177   :  { %v5222_v26 = vsub.f32 %v9666_v8, %v5198_v18  ;;  %v5233_v52 = vsub.f32 %v4946_v33, %v5198_v18  ;;  %v5240_v56 = vsub.f32 %v4958_v39, %v5198_v18  ;;  %v5257_v39 = vsub.f32 %v4979_v47, %v5198_v18 }
 0x178   :  { %9661 = vst [vmem:[#allocation31_spill] sm:$0xff] %v5203_v37  ;;  %v703_v48 = vmul.f32 %v5203_v37, %v5203_v37  ;;  %v706_v5 = vmul.f32 %v5207_v46, %v5207_v46  ;;  %v709_v28 = vmul.f32 %v5212_v42, %v5212_v42  ;;  %v566_v37 = vadd.f32 %v565_v1, %v564_v7 }
 0x179   :  { %9663 = vst [vmem:[#allocation34_spill] sm:$0xff] %v5207_v46  ;;  %v712_v46 = vmul.f32 %v5222_v26, %v5222_v26  ;;  %v715_v29 = vmul.f32 %v5227_v25, %v5227_v25  ;;  %v718_v33 = vmul.f32 %v5233_v52, %v5233_v52 }
 0x17a   :  { %9665 = vst [vmem:[#allocation51_spill] sm:$0xff] %v5212_v42  ;;  %v799_v59 = vadd.f32 %v706_v5, %v703_v48  ;;  %v5246_v48 = vsub.f32 %v4971_v43, %v5198_v18  ;;  %v5263_v43 = vsub.f32 %v4987_v51, %v5198_v18  ;;  %v727_v51 = vmul.f32 %v5257_v39, %v5257_v39 }
 0x17b   :  { %9667 = vst [vmem:[#allocation37_spill] sm:$0xff] %v5240_v56  ;;  %v5252_v7 = vpop.f32.mrf.mxu3 }
 0x17c   :  { %v800_v8 = vadd.f32 %v799_v59, %v709_v28  ;;  %9668 = vst [vmem:[#allocation53_spill] sm:$0xff] %v5246_v48  ;;  %v5250_v28 = vmul.f32 0.00390625, %v566_v37  ;;  %v597_v1 = vadd.f32 %v596_v21, %v5252_v7  ;;  %v724_v37 = vmul.f32 %v5246_v48, %v5246_v48  ;;  %v9671_v59 = vld [vmem:[#allocation12_spill] sm:$0xff]  ;;  %v9672_v21 = vld [vmem:[#allocation15_spill] sm:$0xff] }
 0x17d   :  { %9669 = vst [vmem:[#allocation14_spill] sm:$0xff] %v5257_v39 }
 0x17e   :  { %v801_v42 = vadd.f32 %v800_v8, %v712_v46  ;;  %v721_v46 = vmul.f32 %v5240_v56, %v5240_v56  ;;  %9670 = vst [vmem:[#allocation17_spill] sm:$0xff] %v5263_v43  ;;  %v5269_v8 = vsub.f32 %v9671_v59, %v5250_v28  ;;  %v5273_v47 = vsub.f32 %v9672_v21, %v5250_v28  ;;  %v9675_v21 = vld [vmem:[#allocation18_spill] sm:$0xff] }
 0x17f   :  { %v5289_v48 = vsub.f32 %v9675_v21, %v5250_v28 }
 0x180   :  { %v802_v5 = vadd.f32 %v801_v42, %v715_v29  ;;  %v598_v29 = vrot.slane %v597_v1, 4  ;;  %v707_v56 = vmul.f32 %v5273_v47, %v5273_v47 }
 0x182   :  { %v803_v0 = vadd.f32 %v802_v5, %v718_v33  ;;  %v5277_v33 = vsub.f32 %v4995_v55, %v5198_v18  ;;  %v704_v55 = vmul.f32 %v5269_v8, %v5269_v8 }
 0x184   :  { %v804_v42 = vadd.f32 %v803_v0, %v721_v46  ;;  %9673 = vst [vmem:[#allocation20_spill] sm:$0xff] %v5277_v33  ;;  %v5283_v46 = vsub.f32 %v5001_v58, %v5198_v18  ;;  %v730_v0 = vmul.f32 %v5263_v43, %v5263_v43  ;;  %v599_v58 = vadd.f32 %v598_v29, %v597_v1 }
 0x185   :  { %v710_v1 = vmul.f32 %v5289_v48, %v5289_v48  ;;  %v836_v29 = vadd.f32 %v707_v56, %v704_v55  ;;  %v5331_v56 = vsub.f32 %v5033_v16, %v5198_v18 }
 0x186   :  { %v805_v5 = vadd.f32 %v804_v42, %v724_v37  ;;  %9674 = vst [vmem:[#allocation12_spill] sm:$0xff] %v5283_v46  ;;  %v5297_v37 = vsub.f32 %v5009_v62, %v5198_v18  ;;  %v733_v42 = vmul.f32 %v5277_v33, %v5277_v33  ;;  %v736_v21 = vmul.f32 %v5283_v46, %v5283_v46  ;;  %v9679_v46 = vld [vmem:[#allocation25_spill] sm:$0xff] }
 0x187   :  { %v5313_v62 = vsub.f32 %v4935_v30, %v5250_v28  ;;  %9680 = vst [vmem:[#allocation25_spill] sm:$0xff] %v5331_v56 }
 0x188   :  { %v806_v59 = vadd.f32 %v805_v5, %v727_v51  ;;  %9676 = vst [vmem:[#allocation15_spill] sm:$0xff] %v5297_v37  ;;  %v5303_v51 = vsub.f32 %v4921_v23, %v5250_v28  ;;  %v5307_v5 = vsub.f32 %v5017_v2, %v5198_v18  ;;  %v5319_v23 = vsub.f32 %v5025_v6, %v5198_v18 }
 0x189   :  { %v739_v2 = vmul.f32 %v5297_v37, %v5297_v37  ;;  %v9681_v37 = vld [vmem:[#allocation28_spill] sm:$0xff] }
 0x18a   :  { %v807_v43 = vadd.f32 %v806_v59, %v730_v0  ;;  %9677 = vst [vmem:[#allocation18_spill] sm:$0xff] %v5307_v5  ;;  %v600_v0 = vrot.slane %v599_v58, 2  ;;  %v713_v30 = vmul.f32 %v5303_v51, %v5303_v51  ;;  %v742_v6 = vmul.f32 %v5307_v5, %v5307_v5  ;;  %v9683_v5 = vld [vmem:[#allocation30_spill] sm:$0xff] }
 0x18b   :  { %9678 = vst [vmem:[#allocation64_spill] sm:$0xff] %v5319_v23  ;;  %v5337_v33 = vsub.f32 %v9681_v37, %v5250_v28  ;;  %v745_v16 = vmul.f32 %v5319_v23, %v5319_v23  ;;  %v9685_v23 = vld [vmem:[#allocation33_spill] sm:$0xff] }
 0x18c   :  { %v808_v39 = vadd.f32 %v807_v43, %v733_v42  ;;  %v5325_v43 = vsub.f32 %v9679_v46, %v5250_v28  ;;  %v837_v42 = vadd.f32 %v836_v29, %v710_v1  ;;  %v601_v1 = vadd.f32 %v600_v0, %v599_v58 }
 0x18d   :  { %v5361_v58 = vsub.f32 %v9685_v23, %v5250_v28 }
 0x18e   :  { %v809_v59 = vadd.f32 %v808_v39, %v736_v21  ;;  %v716_v39 = vmul.f32 %v5313_v62, %v5313_v62  ;;  %v838_v46 = vadd.f32 %v837_v42, %v713_v30  ;;  %v5343_v21 = vsub.f32 %v5039_v27, %v5198_v18 }
 0x18f   :  { %v719_v37 = vmul.f32 %v5325_v43, %v5325_v43  ;;  %v5355_v30 = vsub.f32 %v5047_v53, %v5198_v18  ;;  %v748_v27 = vmul.f32 %v5331_v56, %v5331_v56 }
 0x190   :  { %v810_v55 = vadd.f32 %v809_v59, %v739_v2  ;;  %9682 = vst [vmem:[#allocation28_spill] sm:$0xff] %v5343_v21  ;;  %v5349_v2 = vsub.f32 %v9683_v5, %v5250_v28  ;;  %v839_v59 = vadd.f32 %v838_v46, %v716_v39  ;;  %v722_v5 = vmul.f32 %v5337_v33, %v5337_v33  ;;  %v9687_v46 = vld [vmem:[#allocation36_spill] sm:$0xff] }
 0x191   :  { %9684 = vst [vmem:[#allocation30_spill] sm:$0xff] %v5355_v30  ;;  %v751_v53 = vmul.f32 %v5343_v21, %v5343_v21  ;;  %v9689_v21 = vld [vmem:[#allocation39_spill] sm:$0xff] }
 0x192   :  { %v811_v29 = vadd.f32 %v810_v55, %v742_v6  ;;  %v840_v0 = vadd.f32 %v839_v59, %v719_v37  ;;  %v5367_v6 = vsub.f32 %v5059_v4, %v5198_v18  ;;  %v602_v55 = vrot.slane %v601_v1, 1 }
 0x193   :  { %v725_v23 = vmul.f32 %v5349_v2, %v5349_v2  ;;  %v5379_v37 = vsub.f32 %v5075_v19, %v5198_v18  ;;  %v754_v4 = vmul.f32 %v5355_v30, %v5355_v30  ;;  %v5385_v56 = vsub.f32 %v9689_v21, %v5250_v28 }
 0x194   :  { %v812_v42 = vadd.f32 %v811_v29, %v745_v16  ;;  %9686 = vst [vmem:[#allocation33_spill] sm:$0xff] %v5367_v6  ;;  %v5373_v16 = vsub.f32 %v9687_v46, %v5250_v28  ;;  %v841_v29 = vadd.f32 %v840_v0, %v722_v5  ;;  %v5391_v46 = vsub.f32 %v5091_v34, %v5198_v18 }
 0x195   :  { %9688 = vst [vmem:[#allocation36_spill] sm:$0xff] %v5379_v37  ;;  %v757_v19 = vmul.f32 %v5367_v6, %v5367_v6  ;;  %v603_v5 = vadd.f32 %v602_v55, %v601_v1  ;;  %v760_v34 = vmul.f32 %v5379_v37, %v5379_v37  ;;  %v5409_v1 = vsub.f32 %v5011_v63, %v5250_v28 }
 0x196   :  { %v813_v39 = vadd.f32 %v812_v42, %v748_v27  ;;  %v728_v27 = vmul.f32 %v5361_v58, %v5361_v58  ;;  %v842_v42 = vadd.f32 %v841_v29, %v725_v23  ;;  %9690 = vst [vmem:[#allocation39_spill] sm:$0xff] %v5391_v46  ;;  %v731_v21 = vmul.f32 %v5373_v16, %v5373_v16 }
 0x197   :  { %v5403_v23 = vsub.f32 %v5109_v31, %v5198_v18  ;;  %v763_v31 = vmul.f32 %v5391_v46, %v5391_v46  ;;  %v9711_v46 = vld [vmem:[#allocation55_spill] sm:$0xff] }
 0x198   :  { %v814_v59 = vadd.f32 %v813_v39, %v751_v53  ;;  %v5397_v53 = vsub.f32 %v5005_v60, %v5250_v28  ;;  %v843_v39 = vadd.f32 %v842_v42, %v728_v27  ;;  %v734_v60 = vmul.f32 %v5385_v56, %v5385_v56 }
 0x199   :  { %9691 = vst [vmem:[#allocation65_spill] sm:$0xff] %v5403_v23  ;;  %v5423_v42 = vsub.f32 %v5019_v3, %v5250_v28  ;;  %v766_v3 = vmul.f32 %v5403_v23, %v5403_v23  ;;  %v5463_v23 = vsub.f32 %v5035_v24, %v5250_v28  ;;  %v5519_v37 = vsub.f32 %v9711_v46, %v5250_v28 }
 0x19a   :  { %v815_v0 = vadd.f32 %v814_v59, %v754_v4  ;;  %v844_v55 = vadd.f32 %v843_v39, %v731_v21  ;;  %v5415_v4 = vsub.f32 %v5129_v32, %v5198_v18  ;;  %v5419_v59 = vmul.f32 0.00390625, %v603_v5  ;;  %v9696_v39 = vld [vmem:[#allocation47_spill] sm:$0xff] }
 0x19b   :  { %v737_v63 = vmul.f32 %v5397_v53, %v5397_v53  ;;  %v5433_v32 = vsub.f32 %v4896_v13, %v5198_v18  ;;  %v5437_v5 = vsub.f32 %v4911_v20, %v5198_v18  ;;  %v5449_v13 = vsub.f32 %v9646_v54, %v5198_v18 }
 0x19c   :  { %v816_v29 = vadd.f32 %v815_v0, %v757_v19  ;;  %9692 = vst [vmem:[#allocation66_spill] sm:$0xff] %v5415_v4  ;;  %v845_v19 = vadd.f32 %v844_v55, %v734_v60  ;;  %v5429_v0 = vsub.f32 %v5147_v50, %v5198_v18  ;;  %v740_v50 = vmul.f32 %v5409_v1, %v5409_v1  ;;  %v9699_v60 = vld [vmem:[#allocation13_spill] sm:$0xff] }
 0x19d   :  { %9694 = vst [vmem:[#allocation68_spill] sm:$0xff] %v5433_v32  ;;  %v769_v20 = vmul.f32 %v5415_v4, %v5415_v4  ;;  %v5455_v55 = vsub.f32 %v9699_v60, %v5419_v59  ;;  %v743_v54 = vmul.f32 %v5423_v42, %v5423_v42  ;;  %v5473_v60 = vsub.f32 %v9652_v12, %v5198_v18 }
 0x19e   :  { %v817_v27 = vadd.f32 %v816_v29, %v760_v34  ;;  %9693 = vst [vmem:[#allocation67_spill] sm:$0xff] %v5429_v0  ;;  %v5443_v34 = vsub.f32 %v9696_v39, %v5250_v28  ;;  %v846_v29 = vadd.f32 %v845_v19, %v737_v63  ;;  %v5469_v19 = vsub.f32 %v9649_v45, %v5198_v18 }
 0x19f   :  { %9695 = vst [vmem:[#allocation69_spill] sm:$0xff] %v5437_v5  ;;  %v772_v24 = vmul.f32 %v5429_v0, %v5429_v0  ;;  %v775_v12 = vmul.f32 %v5433_v32, %v5433_v32  ;;  %v5505_v32 = vsub.f32 %v9655_v61, %v5198_v18  ;;  %v778_v0 = vmul.f32 %v5437_v5, %v5437_v5 }
 0x1a0   :  { %v818_v21 = vadd.f32 %v817_v27, %v763_v31  ;;  %9697 = vst [vmem:[#allocation47_spill] sm:$0xff] %v5443_v34  ;;  %v9700_v31 = vld [vmem:[#allocation16_spill] sm:$0xff]  ;;  %v847_v63 = vadd.f32 %v846_v29, %v740_v50  ;;  %v746_v45 = vmul.f32 %v5443_v34, %v5443_v34  ;;  %v9706_v29 = vld [vmem:[#allocation19_spill] sm:$0xff] }
 0x1a1   :  { %9698 = vst [vmem:[#allocation70_spill] sm:$0xff] %v5449_v13  ;;  %v5459_v27 = vsub.f32 %v9700_v31, %v5419_v59  ;;  %v5477_v31 = vsub.f32 %v9654_v15, %v5198_v18  ;;  %v5491_v4 = vsub.f32 %v9706_v29, %v5419_v59  ;;  %v705_v15 = vmul.f32 %v5455_v55, %v5455_v55 }
 0x1a2   :  { %v819_v39 = vadd.f32 %v818_v21, %v766_v3  ;;  %9701 = vst [vmem:[#allocation13_spill] sm:$0xff] %v5463_v23  ;;  %v5483_v21 = vsub.f32 %v5043_v36, %v5250_v28  ;;  %v848_v50 = vadd.f32 %v847_v63, %v743_v54  ;;  %v5499_v36 = vsub.f32 %v5049_v49, %v5250_v28 }
 0x1a3   :  { %9702 = vst [vmem:[#allocation16_spill] sm:$0xff] %v5469_v19  ;;  %v749_v54 = vmul.f32 %v5463_v23, %v5463_v23  ;;  %v5509_v29 = vsub.f32 %v9657_v44, %v5198_v18  ;;  %v781_v44 = vmul.f32 %v5449_v13, %v5449_v13  ;;  %v9713_v18 = vld [vmem:[#allocation24_spill] sm:$0xff]  ;;  %v9716_v13 = vld [vmem:[#allocation26_spill] sm:$0xff] }
 0x1a4   :  { %9703 = vst [vmem:[#allocation71_spill] sm:$0xff] %v5473_v60  ;;  %v820_v3 = vadd.f32 %v819_v39, %v769_v20  ;;  %v708_v20 = vmul.f32 %v5459_v27, %v5459_v27  ;;  %v849_v63 = vadd.f32 %v848_v50, %v746_v45  ;;  %v752_v61 = vmul.f32 %v5483_v21, %v5483_v21 }
 0x1a5   :  { %9704 = vst [vmem:[#allocation72_spill] sm:$0xff] %v5477_v31  ;;  %v5527_v50 = vsub.f32 %v9713_v18, %v5419_v59  ;;  %v755_v6 = vmul.f32 %v5499_v36, %v5499_v36  ;;  %v5541_v18 = vsub.f32 %v9716_v13, %v5419_v59 }
 0x1a6   :  { %9705 = vst [vmem:[#allocation73_spill] sm:$0xff] %v5483_v21  ;;  %v821_v39 = vadd.f32 %v820_v3, %v772_v24  ;;  %v9710_v24 = vld [vmem:[#allocation22_spill] sm:$0xff]  ;;  %v850_v45 = vadd.f32 %v849_v63, %v749_v54  ;;  %v873_v5 = vadd.f32 %v708_v20, %v705_v15  ;;  %v784_v63 = vmul.f32 %v5469_v19, %v5469_v19  ;;  %v9719_v19 = vld [vmem:[#allocation29_spill] sm:$0xff] }
 0x1a7   :  { %9707 = vst [vmem:[#allocation19_spill] sm:$0xff] %v5499_v36  ;;  %v5515_v3 = vsub.f32 %v9710_v24, %v5419_v59  ;;  %v711_v24 = vmul.f32 %v5491_v4, %v5491_v4  ;;  %v9717_v20 = vld [vmem:[#allocation58_spill] sm:$0xff]  ;;  %v5555_v13 = vsub.f32 %v9719_v19, %v5419_v59  ;;  %v717_v36 = vmul.f32 %v5527_v50, %v5527_v50 }
 0x1a8   :  { %9708 = vst [vmem:[#allocation74_spill] sm:$0xff] %v5505_v32  ;;  %v822_v49 = vadd.f32 %v821_v39, %v775_v12  ;;  %v9714_v39 = vld [vmem:[#allocation56_spill] sm:$0xff]  ;;  %v851_v54 = vadd.f32 %v850_v45, %v752_v61  ;;  %v787_v45 = vmul.f32 %v5473_v60, %v5473_v60 }
 0x1a9   :  { %9709 = vst [vmem:[#allocation75_spill] sm:$0xff] %v5509_v29  ;;  %v5533_v46 = vsub.f32 %v9714_v39, %v5250_v28  ;;  %v714_v30 = vmul.f32 %v5515_v3, %v5515_v3  ;;  %v874_v15 = vadd.f32 %v873_v5, %v711_v24  ;;  %v758_v39 = vmul.f32 %v5519_v37, %v5519_v37  ;;  %v9720_v24 = vld [vmem:[#allocation60_spill] sm:$0xff] }
 0x1aa   :  { %9712 = vst [vmem:[#allocation22_spill] sm:$0xff] %v5519_v37  ;;  %v823_v12 = vadd.f32 %v822_v49, %v778_v0  ;;  %v5547_v49 = vsub.f32 %v9717_v20, %v5250_v28  ;;  %v852_v61 = vadd.f32 %v851_v54, %v755_v6  ;;  %v790_v54 = vmul.f32 %v5477_v31, %v5477_v31  ;;  %v9722_v60 = vld [vmem:[#allocation32_spill] sm:$0xff]  ;;  %v9725_v31 = vld [vmem:[#allocation35_spill] sm:$0xff] }
 0x1ab   :  { %9715 = vst [vmem:[#allocation55_spill] sm:$0xff] %v5533_v46  ;;  %v875_v5 = vadd.f32 %v874_v15, %v714_v30  ;;  %v761_v20 = vmul.f32 %v5533_v46, %v5533_v46  ;;  %v5569_v19 = vsub.f32 %v9722_v60, %v5419_v59  ;;  %v720_v37 = vmul.f32 %v5541_v18, %v5541_v18  ;;  %v9723_v15 = vld [vmem:[#allocation62_spill] sm:$0xff] }
 0x1ac   :  { %v824_v0 = vadd.f32 %v823_v12, %v781_v44  ;;  %9718 = vst [vmem:[#allocation24_spill] sm:$0xff] %v5547_v49  ;;  %v5561_v12 = vsub.f32 %v9720_v24, %v5250_v28  ;;  %v853_v6 = vadd.f32 %v852_v61, %v758_v39  ;;  %v764_v24 = vmul.f32 %v5547_v49, %v5547_v49 }
 0x1ad   :  { %v876_v30 = vadd.f32 %v875_v5, %v717_v36  ;;  %v793_v61 = vmul.f32 %v5505_v32, %v5505_v32  ;;  %v5583_v60 = vsub.f32 %v9725_v31, %v5419_v59  ;;  %v723_v46 = vmul.f32 %v5555_v13, %v5555_v13  ;;  %v9726_v5 = vld [vmem:[#allocation63_spill] sm:$0xff]  ;;  %v9728_v32 = vld [vmem:[#allocation38_spill] sm:$0xff] }
 0x1ae   :  { %v825_v44 = vadd.f32 %v824_v0, %v784_v63  ;;  %9721 = vst [vmem:[#allocation56_spill] sm:$0xff] %v5561_v12  ;;  %v5575_v0 = vsub.f32 %v9723_v15, %v5250_v28  ;;  %v854_v39 = vadd.f32 %v853_v6, %v761_v20  ;;  %v767_v15 = vmul.f32 %v5561_v12, %v5561_v12 }
 0x1af   :  { %v877_v36 = vadd.f32 %v876_v30, %v720_v37  ;;  %v796_v6 = vmul.f32 %v5509_v29, %v5509_v29  ;;  %v5597_v31 = vsub.f32 %v9728_v32, %v5419_v59  ;;  %v726_v49 = vmul.f32 %v5569_v19, %v5569_v19  ;;  %v9729_v30 = vld [vmem:[#allocation41_spill] sm:$0xff] }
 0x1b0   :  { %v826_v63 = vadd.f32 %v825_v44, %v787_v45  ;;  %9724 = vst [vmem:[#allocation26_spill] sm:$0xff] %v5575_v0  ;;  %v5589_v44 = vsub.f32 %v9726_v5, %v5250_v28  ;;  %v855_v20 = vadd.f32 %v854_v39, %v764_v24  ;;  %v770_v5 = vmul.f32 %v5575_v0, %v5575_v0  ;;  %v9731_v39 = vld [vmem:[#allocation40_spill] sm:$0xff] }
 0x1b1   :  { %v878_v37 = vadd.f32 %v877_v36, %v723_v46  ;;  %v5609_v29 = vsub.f32 %v9731_v39, %v5419_v59  ;;  %v729_v32 = vmul.f32 %v5583_v60, %v5583_v60  ;;  %v9732_v46 = vld [vmem:[#allocation43_spill] sm:$0xff] }
 0x1b2   :  { %v827_v45 = vadd.f32 %v826_v63, %v790_v54  ;;  %9727 = vst [vmem:[#allocation58_spill] sm:$0xff] %v5589_v44  ;;  %v5603_v63 = vsub.f32 %v9729_v30, %v5250_v28  ;;  %v856_v24 = vadd.f32 %v855_v20, %v767_v15  ;;  %v773_v36 = vmul.f32 %v5589_v44, %v5589_v44  ;;  %v9734_v30 = vld [vmem:[#allocation42_spill] sm:$0xff] }
 0x1b3   :  { %v879_v12 = vadd.f32 %v878_v37, %v726_v49  ;;  %v5621_v15 = vsub.f32 %v9734_v30, %v5419_v59  ;;  %v732_v20 = vmul.f32 %v5597_v31, %v5597_v31  ;;  %v9735_v49 = vld [vmem:[#allocation45_spill] sm:$0xff] }
 0x1b4   :  { %v828_v54 = vadd.f32 %v827_v45, %v793_v61  ;;  %9730 = vst [vmem:[#allocation29_spill] sm:$0xff] %v5603_v63  ;;  %v5615_v61 = vsub.f32 %v9732_v46, %v5250_v28  ;;  %v857_v45 = vadd.f32 %v856_v24, %v770_v5  ;;  %v776_v37 = vmul.f32 %v5603_v63, %v5603_v63  ;;  %v9737_v46 = vld [vmem:[#allocation44_spill] sm:$0xff]  ;;  %v9740_v63 = vld [vmem:[#allocation46_spill] sm:$0xff] }
 0x1b5   :  { %v880_v39 = vadd.f32 %v879_v12, %v729_v32  ;;  %v5633_v5 = vsub.f32 %v9737_v46, %v5419_v59  ;;  %v735_v24 = vmul.f32 %v5609_v29, %v5609_v29  ;;  %v9738_v12 = vld [vmem:[#allocation48_spill] sm:$0xff] }
 0x1b6   :  { %v829_v21 = vadd.f32 %v828_v54, %v796_v6  ;;  %9733 = vst [vmem:[#allocation60_spill] sm:$0xff] %v5615_v61  ;;  %v5627_v6 = vsub.f32 %v9735_v49, %v5250_v28  ;;  %v858_v54 = vadd.f32 %v857_v45, %v773_v36  ;;  %v5639_v32 = vsub.f32 %v9738_v12, %v5250_v28 }
 0x1b7   :  { %v881_v30 = vadd.f32 %v880_v39, %v732_v20  ;;  %v779_v49 = vmul.f32 %v5615_v61, %v5615_v61  ;;  %v5645_v36 = vsub.f32 %v9740_v63, %v5419_v59  ;;  %v738_v45 = vmul.f32 %v5621_v15, %v5621_v15  ;;  %v9742_v39 = vld [vmem:[#allocation49_spill] sm:$0xff] }
 0x1b8   :  { %v830_v0 = vrot.slane %v829_v21, 4  ;;  %9736 = vst [vmem:[#allocation32_spill] sm:$0xff] %v5627_v6  ;;  %v859_v23 = vadd.f32 %v858_v54, %v776_v37  ;;  %v5657_v37 = vsub.f32 %v9742_v39, %v5419_v59  ;;  %v741_v63 = vmul.f32 %v5633_v5, %v5633_v5 }
 0x1b9   :  { %9739 = vst [vmem:[#allocation62_spill] sm:$0xff] %v5639_v32  ;;  %v882_v46 = vadd.f32 %v881_v30, %v735_v24  ;;  %v5663_v24 = vsub.f32 %v9658_v14, %v5250_v28 }
 0x1ba   :  { %v831_v44 = vadd.f32 %v830_v0, %v829_v21  ;;  %v5651_v21 = vsub.f32 %v9656_v22, %v5250_v28  ;;  %v782_v0 = vmul.f32 %v5627_v6, %v5627_v6  ;;  %v860_v20 = vadd.f32 %v859_v23, %v779_v49  ;;  %v9744_v6 = vld [vmem:[#allocation50_spill] sm:$0xff] }
 0x1bb   :  { %v883_v54 = vadd.f32 %v882_v46, %v738_v45  ;;  %9743 = vst [vmem:[#allocation63_spill] sm:$0xff] %v5663_v24  ;;  %v785_v22 = vmul.f32 %v5639_v32, %v5639_v32  ;;  %v5669_v23 = vsub.f32 %v9744_v6, %v5419_v59  ;;  %v744_v49 = vmul.f32 %v5645_v36, %v5645_v36  ;;  %v9746_v45 = vld [vmem:[#allocation52_spill] sm:$0xff]  ;;  %v9750_v32 = vld [vmem:[#allocation59_spill] sm:$0xff] }
 0x1bc   :  { %v832_v34 = vrot.slane %v831_v44, 2  ;;  %9741 = vst [vmem:[#allocation35_spill] sm:$0xff] %v5651_v21  ;;  %v861_v30 = vadd.f32 %v860_v20, %v782_v0  ;;  %v788_v14 = vmul.f32 %v5651_v21, %v5651_v21  ;;  %v5681_v46 = vsub.f32 %v9746_v45, %v5419_v59 }
 0x1bd   :  { %v884_v39 = vadd.f32 %v883_v54, %v741_v63  ;;  %v747_v6 = vmul.f32 %v5657_v37, %v5657_v37  ;;  %v5687_v20 = vsub.f32 %v5088_v41, %v5250_v28  ;;  %v9748_v54 = vld [vmem:[#allocation54_spill] sm:$0xff]  ;;  %v9749_v41 = vld [vmem:[#allocation57_spill] sm:$0xff] }
 0x1be   :  { %v833_v12 = vadd.f32 %v832_v34, %v831_v44  ;;  %v5675_v34 = vsub.f32 %v5070_v9, %v5250_v28  ;;  %v862_v44 = vadd.f32 %v861_v30, %v785_v22  ;;  %v791_v9 = vmul.f32 %v5663_v24, %v5663_v24 }
 0x1bf   :  { %v885_v0 = vadd.f32 %v884_v39, %v744_v49  ;;  %9747 = vst [vmem:[#allocation41_spill] sm:$0xff] %v5687_v20  ;;  %v5693_v21 = vsub.f32 %v9748_v54, %v5419_v59  ;;  %v750_v22 = vmul.f32 %v5669_v23, %v5669_v23  ;;  %v5701_v28 = vsub.f32 %v9749_v41, %v5419_v59 }
 0x1c0   :  { %v834_v61 = vrot.slane %v833_v12, 1  ;;  %9745 = vst [vmem:[#allocation38_spill] sm:$0xff] %v5675_v34  ;;  %v863_v63 = vadd.f32 %v862_v44, %v788_v14  ;;  %v794_v49 = vmul.f32 %v5675_v34, %v5675_v34  ;;  %v753_v14 = vmul.f32 %v5681_v46, %v5681_v46 }
 0x1c1   :  { %v886_v30 = vadd.f32 %v885_v0, %v747_v6  ;;  %v797_v54 = vmul.f32 %v5687_v20, %v5687_v20  ;;  %v5709_v6 = vsub.f32 %v9750_v32, %v5419_v59 }
 0x1c2   :  { %v835_v45 = vadd.f32 %v834_v61, %v833_v12  ;;  %v864_v39 = vadd.f32 %v863_v63, %v791_v9  ;;  %v756_v61 = vmul.f32 %v5693_v21, %v5693_v21  ;;  %v9751_v63 = vld [vmem:[#allocation61_spill] sm:$0xff] }
 0x1c3   :  { %v887_v44 = vadd.f32 %v886_v30, %v750_v22  ;;  %v5715_v41 = vsub.f32 %v9751_v63, %v5419_v59  ;;  %v759_v22 = vmul.f32 %v5701_v28, %v5701_v28  ;;  %v762_v32 = vmul.f32 %v5709_v6, %v5709_v6  ;;  %v9753_v63 = vld [vmem:[#allocation23_spill] sm:$0xff] }
 0x1c4   :  { %v865_v24 = vadd.f32 %v864_v39, %v794_v49  ;;  %v910_v0 = vmul.f32 0.00390625, %v835_v45  ;;  %v5721_v49 = vsub.f32 %v5149_v38, %v5419_v59  ;;  %v9752_v45 = vld [vmem:[#allocation21_spill] sm:$0xff]  ;;  %v5735_v38 = vsub.f32 %v9753_v63, %v5419_v59 }
 0x1c5   :  { %v888_v12 = vadd.f32 %v887_v44, %v753_v14  ;;  %v5729_v44 = vsub.f32 %v9752_v45, %v5419_v59 }
 0x1c6   :  { %v866_v9 = vadd.f32 %v865_v24, %v797_v54  ;;  %v5725_v14 = vadd.f32 1e-05, %v910_v0  ;;  %v765_v54 = vmul.f32 %v5715_v41, %v5715_v41  ;;  %9754 = vst [vmem:[#allocation40_spill] sm:$0xff] %v5735_v38  ;;  %v768_v34 = vmul.f32 %v5721_v49, %v5721_v49 }
 0x1c7   :  { %v889_v30 = vadd.f32 %v888_v12, %v756_v61  ;;  %v5742_v0 = vsub.f32 %v5112_v10, %v5419_v59  ;;  %v774_v45 = vmul.f32 %v5735_v38, %v5735_v38 }
 0x1c8   :  { %v867_v20 = vrot.slane %v866_v9, 4  ;;  %4506 = vrsqrt.f32 %v5725_v14  ;;  %vm922_vm5 = vweird.f32 %v5725_v14 }
 0x1c9   :  { %v890_v39 = vadd.f32 %v889_v30, %v759_v22  ;;  %9755 = vst [vmem:[#allocation43_spill] sm:$0xff] %v5742_v0  ;;  %v777_v10 = vmul.f32 %v5742_v0, %v5742_v0 }
 0x1ca   :  { %v868_v24 = vadd.f32 %v867_v20, %v866_v9  ;;  %v771_v9 = vmul.f32 %v5729_v44, %v5729_v44 }
 0x1cb   :  { %v891_v61 = vadd.f32 %v890_v39, %v762_v32  ;;  %v5748_v39 = vsub.f32 %v5136_v11, %v5419_v59 }
 0x1cc   :  { %v869_v12 = vrot.slane %v868_v24, 2 }
 0x1cd   :  { %v892_v22 = vadd.f32 %v891_v61, %v765_v54  ;;  %9756 = vst [vmem:[#allocation42_spill] sm:$0xff] %v5748_v39  ;;  %v780_v11 = vmul.f32 %v5748_v39, %v5748_v39 }
 0x1ce   :  { %v870_v20 = vadd.f32 %v869_v12, %v868_v24  ;;  %v5754_v24 = vsub.f32 %v5159_v40, %v5419_v59  ;;  %v4507_v63 = vpop.eup %4506  ;;  %v9759_v40 = vld [vmem:[#allocation27_spill] sm:$0xff] }
 0x1cf   :  { %v893_v30 = vadd.f32 %v892_v22, %v768_v34  ;;  %v5760_v22 = vsub.f32 %v5176_v57, %v5419_v59  ;;  %v5773_v57 = vsub.f32 %v5195_v17, %v5419_v59  ;;  %vm923_vm2 = vweird.f32 %v4507_v63 }
 0x1d0   :  { %v871_v32 = vrot.slane %v870_v20, 1  ;;  %9757 = vst [vmem:[#allocation45_spill] sm:$0xff] %v5754_v24  ;;  %vm924_vm7 = vmor %vm922_vm5, %vm923_vm2 }
 0x1d1   :  { %v894_v54 = vadd.f32 %v893_v30, %v771_v9  ;;  %9758 = vst [vmem:[#allocation44_spill] sm:$0xff] %v5760_v22  ;;  %v5767_v30 = vsub.f32 %v9759_v40, %v5419_v59  ;;  %v792_v17 = vmul.f32 %v5773_v57, %v5773_v57 }
 0x1d2   :  { %v872_v61 = vadd.f32 %v871_v32, %v870_v20  ;;  %v917_v20 = vmul.f32 %v4507_v63, %v5725_v14  ;;  %v783_v32 = vmul.f32 %v5754_v24, %v5754_v24  ;;  %9761 = vst [vmem:[#allocation46_spill] sm:$0xff] %v5773_v57 }
 0x1d3   :  { %v895_v12 = vadd.f32 %v894_v54, %v774_v45  ;;  %9760 = vst [vmem:[#allocation48_spill] sm:$0xff] %v5767_v30  ;;  %v786_v54 = vmul.f32 %v5760_v22, %v5760_v22 }
 0x1d4   :  { %v911_v34 = vmul.f32 0.00390625, %v872_v61 }
 0x1d5   :  { %v896_v38 = vadd.f32 %v895_v12, %v777_v10  ;;  %v918_v10 = vmul.f32 %v4507_v63, %v917_v20  ;;  %v5779_v12 = vsub.f32 %v5218_v35, %v5419_v59 }
 0x1d6   :  { %v914_v9 = vadd.f32 1e-05, %v911_v34  ;;  %v789_v34 = vmul.f32 %v5767_v30, %v5767_v30 }
 0x1d7   :  { %v897_v45 = vadd.f32 %v896_v38, %v780_v11  ;;  %v5785_v38 = vsub.f32 %v5252_v7, %v5419_v59  ;;  %v919_v22 = vmul.f32 0.5, %v918_v10  ;;  %v795_v20 = vmul.f32 %v5779_v12, %v5779_v12 }
 0x1d8   :  { %4508 = vrsqrt.f32 %v914_v9  ;;  %vm932_vm3 = vweird.f32 %v914_v9 }
 0x1d9   :  { %v898_v61 = vadd.f32 %v897_v45, %v783_v32  ;;  %v798_v30 = vmul.f32 %v5785_v38, %v5785_v38  ;;  %v920_v7 = vsub.f32 1.5, %v919_v22 }
 0x1db   :  { %v899_v40 = vadd.f32 %v898_v61, %v786_v54  ;;  %v921_v10 = vmul.f32 %v4507_v63, %v920_v7 }
 0x1dd   :  { %v900_v11 = vadd.f32 %v899_v40, %v789_v34 }
 0x1de   :  { %v4509_v24 = vpop.eup %4508 }
 0x1df   :  { %v927_v32 = vmul.f32 %v4509_v24, %v914_v9  ;;  %v901_v35 = vadd.f32 %v900_v11, %v792_v17  ;;  %vm933_vm1 = vweird.f32 %v4509_v24 }
 0x1e0   :  { %vm934_vm4 = vmor %vm932_vm3, %vm933_vm1 }
 0x1e1   :  { %v928_v45 = vmul.f32 %v4509_v24, %v927_v32  ;;  %v902_v54 = vadd.f32 %v901_v35, %v795_v20  ;;  %v925_v20 = vsel %vm924_vm7, %v4507_v63, %v921_v10  ;;  %v491_v63 = vld [vmem:[%s9218_s2] sm:$0x7] }
 0x1e3   :  { %v929_v61 = vmul.f32 0.5, %v928_v45  ;;  %v903_v39 = vadd.f32 %v902_v54, %v798_v30 }
 0x1e5   :  { %v930_v59 = vsub.f32 1.5, %v929_v61  ;;  %v904_v0 = vrot.slane %v903_v39, 4 }
 0x1e7   :  { %v905_v34 = vadd.f32 %v904_v0, %v903_v39  ;;  %v931_v40 = vmul.f32 %v4509_v24, %v930_v59 }
 0x1e9   :  { %v906_v57 = vrot.slane %v905_v34, 2  ;;  %v935_v17 = vsel %vm934_vm4, %v4509_v24, %v931_v40 }
 0x1ea   :  { %v949_v11 = vrot.slane %v935_v17, 7 }
 0x1eb   :  { %v907_v32 = vadd.f32 %v906_v57, %v905_v34  ;;  %v492_v34 = vld [vmem:[%s9219_s3] sm:$0x7] }
 0x1ec   :  { %v952_v22 = vsel %vm951_vm6, %v925_v20, %v949_v11  ;;  %v5810_v20 = vperm.slane %v492_v34, 1 }
 0x1ed   :  { %v908_v30 = vrot.slane %v907_v32, 1 }
 0x1ef   :  { %v909_v35 = vadd.f32 %v908_v30, %v907_v32  ;;  %v5808_v32 = vperm.slane %v492_v34, 0  ;;  %v5812_v30 = vperm.slane %v492_v34, 2  ;;  %v9767_v34 = vld [vmem:[#allocation14_spill] sm:$0xff] }
 0x1f1   :  { %v912_v45 = vmul.f32 0.00390625, %v909_v35  ;;  %v9762_v35 = vld [vmem:[#allocation31_spill] sm:$0xff] }
 0x1f3   :  { %v915_v54 = vadd.f32 1e-05, %v912_v45 }
 0x1f5   :  { %4510 = vrsqrt.f32 %v915_v54  ;;  %vm942_vm9 = vweird.f32 %v915_v54 }
 0x1fb   :  { %v4511_v0 = vpop.eup %4510 }
 0x1fc   :  { %v937_v39 = vmul.f32 %v4511_v0, %v915_v54  ;;  %vm943_vm8 = vweird.f32 %v4511_v0 }
 0x1fd   :  { %vm944_vm10 = vmor %vm942_vm9, %vm943_vm8 }
 0x1fe   :  { %v938_v9 = vmul.f32 %v4511_v0, %v937_v39 }
 0x200   :  { %v939_v61 = vmul.f32 0.5, %v938_v9 }
 0x202   :  { %v940_v7 = vsub.f32 1.5, %v939_v61 }
 0x204   :  { %v941_v14 = vmul.f32 %v4511_v0, %v940_v7  ;;  %v9764_v7 = vld [vmem:[#allocation51_spill] sm:$0xff] }
 0x206   :  { %v945_v24 = vsel %vm944_vm10, %v4511_v0, %v941_v14  ;;  %v9763_v0 = vld [vmem:[#allocation34_spill] sm:$0xff] }
 0x207   :  { %v950_v57 = vrot.slane %v945_v24, 6 }
 0x209   :  { %v954_v59 = vsel %vm953_vm11, %v952_v22, %v950_v57  ;;  %v9766_v57 = vld [vmem:[#allocation53_spill] sm:$0xff] }
 0x20a   :  { %v956_v10 = vmul.f32 %v954_v59, %v491_v63  ;;  %v9765_v63 = vld [vmem:[#allocation37_spill] sm:$0xff] }
 0x20c   :  { %v5802_v40 = vperm.slane %v956_v10, 0  ;;  %v5804_v17 = vperm.slane %v956_v10, 1  ;;  %v5806_v11 = vperm.slane %v956_v10, 2 }
 0x20e   :  { %v5816_v22 = vmul.f32 %v5802_v40, %v9762_v35  ;;  %v5820_v45 = vmul.f32 %v5804_v17, %v5269_v8  ;;  %v5824_v54 = vmul.f32 %v5806_v11, %v5455_v55  ;;  %v5828_v39 = vmul.f32 %v5802_v40, %v9763_v0  ;;  %v9768_v35 = vld [vmem:[#allocation17_spill] sm:$0xff] }
 0x20f   :  { %v5832_v9 = vmul.f32 %v5804_v17, %v5273_v47  ;;  %v5836_v61 = vmul.f32 %v5806_v11, %v5459_v27  ;;  %v5840_v8 = vmul.f32 %v5802_v40, %v9764_v7  ;;  %v5844_v55 = vmul.f32 %v5804_v17, %v5289_v48  ;;  %v9769_v7 = vld [vmem:[#allocation20_spill] sm:$0xff] }
 0x210   :  { %v5848_v14 = vmul.f32 %v5806_v11, %v5491_v4  ;;  %v5852_v47 = vmul.f32 %v5802_v40, %v5222_v26  ;;  %v5856_v27 = vmul.f32 %v5804_v17, %v5303_v51  ;;  %v5860_v24 = vmul.f32 %v5806_v11, %v5515_v3 }
 0x211   :  { %v5864_v48 = vmul.f32 %v5802_v40, %v5227_v25  ;;  %v5868_v4 = vmul.f32 %v5804_v17, %v5313_v62  ;;  %v5872_v26 = vmul.f32 %v5806_v11, %v5527_v50  ;;  %v5876_v51 = vmul.f32 %v5802_v40, %v5233_v52 }
 0x212   :  { %v5880_v3 = vmul.f32 %v5804_v17, %v5325_v43  ;;  %v5884_v25 = vmul.f32 %v5806_v11, %v5541_v18  ;;  %v5888_v62 = vmul.f32 %v5802_v40, %v9765_v63  ;;  %v5892_v50 = vmul.f32 %v5804_v17, %v5337_v33 }
 0x213   :  { %v5896_v52 = vmul.f32 %v5806_v11, %v5555_v13  ;;  %v5900_v43 = vmul.f32 %v5802_v40, %v9766_v57  ;;  %v5904_v18 = vmul.f32 %v5804_v17, %v5349_v2  ;;  %v5908_v59 = vmul.f32 %v5806_v11, %v5569_v19  ;;  %v9770_v57 = vld [vmem:[#allocation12_spill] sm:$0xff] }
 0x214   :  { %v5912_v33 = vmul.f32 %v5802_v40, %v9767_v34  ;;  %v5916_v13 = vmul.f32 %v5804_v17, %v5361_v58  ;;  %v5920_v10 = vmul.f32 %v5806_v11, %v5583_v60  ;;  %v5924_v2 = vmul.f32 %v5802_v40, %v9768_v35  ;;  %v9771_v35 = vld [vmem:[#allocation15_spill] sm:$0xff] }
 0x215   :  { %v5928_v19 = vmul.f32 %v5804_v17, %v5373_v16  ;;  %v5932_v0 = vmul.f32 %v5806_v11, %v5597_v31  ;;  %v5936_v58 = vmul.f32 %v5802_v40, %v9769_v7  ;;  %v5940_v60 = vmul.f32 %v5804_v17, %v5385_v56 }
 0x216   :  { %v5944_v63 = vmul.f32 %v5806_v11, %v5609_v29  ;;  %v5948_v16 = vmul.f32 %v5802_v40, %v9770_v57  ;;  %v5952_v31 = vmul.f32 %v5804_v17, %v5397_v53  ;;  %v5956_v34 = vmul.f32 %v5806_v11, %v5621_v15  ;;  %v9774_v57 = vld [vmem:[#allocation18_spill] sm:$0xff] }
 0x217   :  { %v5960_v56 = vmul.f32 %v5802_v40, %v9771_v35  ;;  %v5964_v29 = vmul.f32 %v5804_v17, %v5409_v1  ;;  %v5968_v7 = vmul.f32 %v5806_v11, %v5633_v5  ;;  %v5972_v53 = vmul.f32 %v5802_v40, %v9774_v57 }
 0x218   :  { %v5976_v15 = vmul.f32 %v5804_v17, %v5423_v42  ;;  %v5980_v35 = vmul.f32 %v5806_v11, %v5645_v36  ;;  %v5992_v57 = vmul.f32 %v5806_v11, %v5657_v37 }
 0x219   :  { %9772 = vst [vmem:[#allocation49_spill] sm:$0xff] %v5960_v56  ;;  %v9777_v56 = vld [vmem:[#allocation64_spill] sm:$0xff] }
 0x21a   :  { %9773 = vst [vmem:[#allocation50_spill] sm:$0xff] %v5964_v29  ;;  %v5984_v1 = vmul.f32 %v5802_v40, %v9777_v56  ;;  %v9779_v29 = vld [vmem:[#allocation47_spill] sm:$0xff]  ;;  %v6004_v56 = vmul.f32 %v5806_v11, %v5669_v23 }
 0x21b   :  { %9775 = vst [vmem:[#allocation52_spill] sm:$0xff] %v5972_v53  ;;  %v5988_v5 = vmul.f32 %v5804_v17, %v9779_v29  ;;  %v9781_v53 = vld [vmem:[#allocation25_spill] sm:$0xff] }
 0x21c   :  { %9776 = vst [vmem:[#allocation54_spill] sm:$0xff] %v5976_v15  ;;  %v5996_v42 = vmul.f32 %v5802_v40, %v9781_v53  ;;  %v9783_v15 = vld [vmem:[#allocation13_spill] sm:$0xff]  ;;  %v6016_v53 = vmul.f32 %v5806_v11, %v5681_v46 }
 0x21d   :  { %9778 = vst [vmem:[#allocation57_spill] sm:$0xff] %v5984_v1  ;;  %v6000_v36 = vmul.f32 %v5804_v17, %v9783_v15  ;;  %v9785_v1 = vld [vmem:[#allocation28_spill] sm:$0xff] }
 0x21e   :  { %9780 = vst [vmem:[#allocation59_spill] sm:$0xff] %v5988_v5  ;;  %v6008_v29 = vmul.f32 %v5802_v40, %v9785_v1  ;;  %v9787_v5 = vld [vmem:[#allocation73_spill] sm:$0xff]  ;;  %v6028_v1 = vmul.f32 %v5806_v11, %v5693_v21 }
 0x21f   :  { %9782 = vst [vmem:[#allocation61_spill] sm:$0xff] %v5996_v42  ;;  %v6012_v37 = vmul.f32 %v5804_v17, %v9787_v5  ;;  %v9789_v42 = vld [vmem:[#allocation30_spill] sm:$0xff] }
 0x220   :  { %9784 = vst [vmem:[#allocation21_spill] sm:$0xff] %v6000_v36  ;;  %v6020_v15 = vmul.f32 %v5802_v40, %v9789_v42  ;;  %v9791_v36 = vld [vmem:[#allocation19_spill] sm:$0xff]  ;;  %v6040_v42 = vmul.f32 %v5806_v11, %v5701_v28 }
 0x221   :  { %9786 = vst [vmem:[#allocation23_spill] sm:$0xff] %v6008_v29  ;;  %v6024_v23 = vmul.f32 %v5804_v17, %v9791_v36  ;;  %v9793_v29 = vld [vmem:[#allocation33_spill] sm:$0xff] }
 0x222   :  { %9788 = vst [vmem:[#allocation27_spill] sm:$0xff] %v6012_v37  ;;  %v6032_v5 = vmul.f32 %v5802_v40, %v9793_v29  ;;  %v9795_v37 = vld [vmem:[#allocation22_spill] sm:$0xff]  ;;  %v6052_v29 = vmul.f32 %v5806_v11, %v5709_v6 }
 0x223   :  { %9790 = vst [vmem:[#allocation31_spill] sm:$0xff] %v6020_v15  ;;  %v6036_v46 = vmul.f32 %v5804_v17, %v9795_v37  ;;  %v9797_v15 = vld [vmem:[#allocation36_spill] sm:$0xff] }
 0x224   :  { %9792 = vst [vmem:[#allocation34_spill] sm:$0xff] %v6024_v23  ;;  %v6044_v36 = vmul.f32 %v5802_v40, %v9797_v15  ;;  %v9799_v23 = vld [vmem:[#allocation55_spill] sm:$0xff]  ;;  %v6064_v15 = vmul.f32 %v5806_v11, %v5715_v41 }
 0x225   :  { %9794 = vst [vmem:[#allocation51_spill] sm:$0xff] %v6032_v5  ;;  %v6048_v21 = vmul.f32 %v5804_v17, %v9799_v23  ;;  %v9801_v5 = vld [vmem:[#allocation39_spill] sm:$0xff] }
 0x226   :  { %9796 = vst [vmem:[#allocation37_spill] sm:$0xff] %v6036_v46  ;;  %v6056_v37 = vmul.f32 %v5802_v40, %v9801_v5  ;;  %v9803_v46 = vld [vmem:[#allocation24_spill] sm:$0xff]  ;;  %v6076_v5 = vmul.f32 %v5806_v11, %v5721_v49 }
 0x227   :  { %9798 = vst [vmem:[#allocation53_spill] sm:$0xff] %v6044_v36  ;;  %v6060_v28 = vmul.f32 %v5804_v17, %v9803_v46  ;;  %v9805_v36 = vld [vmem:[#allocation65_spill] sm:$0xff] }
 0x228   :  { %9800 = vst [vmem:[#allocation14_spill] sm:$0xff] %v6048_v21  ;;  %v6068_v23 = vmul.f32 %v5802_v40, %v9805_v36  ;;  %v9807_v21 = vld [vmem:[#allocation56_spill] sm:$0xff]  ;;  %v6088_v36 = vmul.f32 %v5806_v11, %v5729_v44 }
 0x229   :  { %9802 = vst [vmem:[#allocation17_spill] sm:$0xff] %v6056_v37  ;;  %v6072_v6 = vmul.f32 %v5804_v17, %v9807_v21  ;;  %v9810_v37 = vld [vmem:[#allocation66_spill] sm:$0xff] }
 0x22a   :  { %9804 = vst [vmem:[#allocation20_spill] sm:$0xff] %v6060_v28  ;;  %v6080_v46 = vmul.f32 %v5802_v40, %v9810_v37  ;;  %v9812_v28 = vld [vmem:[#allocation26_spill] sm:$0xff] }
 0x22b   :  { %9806 = vst [vmem:[#allocation12_spill] sm:$0xff] %v6068_v23  ;;  %v6084_v41 = vmul.f32 %v5804_v17, %v9812_v28  ;;  %v9815_v23 = vld [vmem:[#allocation67_spill] sm:$0xff] }
 0x22c   :  { %9808 = vst [vmem:[#allocation15_spill] sm:$0xff] %v6072_v6  ;;  %v6092_v21 = vmul.f32 %v5802_v40, %v9815_v23  ;;  %v9817_v6 = vld [vmem:[#allocation58_spill] sm:$0xff] }
 0x22d   :  { %9809 = vst [vmem:[#allocation18_spill] sm:$0xff] %v6076_v5  ;;  %v6096_v49 = vmul.f32 %v5804_v17, %v9817_v6  ;;  %v9819_v5 = vld [vmem:[#allocation40_spill] sm:$0xff] }
 0x22e   :  { %9811 = vst [vmem:[#allocation64_spill] sm:$0xff] %v6080_v46  ;;  %v6100_v37 = vmul.f32 %v5806_v11, %v9819_v5  ;;  %v9821_v46 = vld [vmem:[#allocation68_spill] sm:$0xff] }
 0x22f   :  { %9813 = vst [vmem:[#allocation47_spill] sm:$0xff] %v6084_v41  ;;  %v6104_v28 = vmul.f32 %v5802_v40, %v9821_v46  ;;  %v9823_v41 = vld [vmem:[#allocation29_spill] sm:$0xff] }
 0x230   :  { %9814 = vst [vmem:[#allocation25_spill] sm:$0xff] %v6088_v36  ;;  %v6108_v44 = vmul.f32 %v5804_v17, %v9823_v41  ;;  %v9825_v36 = vld [vmem:[#allocation43_spill] sm:$0xff] }
 0x231   :  { %9816 = vst [vmem:[#allocation13_spill] sm:$0xff] %v6092_v21  ;;  %v6112_v23 = vmul.f32 %v5806_v11, %v9825_v36  ;;  %v9827_v21 = vld [vmem:[#allocation69_spill] sm:$0xff] }
 0x232   :  { %9818 = vst [vmem:[#allocation28_spill] sm:$0xff] %v6096_v49  ;;  %v6116_v6 = vmul.f32 %v5802_v40, %v9827_v21  ;;  %v9829_v49 = vld [vmem:[#allocation60_spill] sm:$0xff] }
 0x233   :  { %9820 = vst [vmem:[#allocation73_spill] sm:$0xff] %v6100_v37  ;;  %v6120_v5 = vmul.f32 %v5804_v17, %v9829_v49  ;;  %v9831_v37 = vld [vmem:[#allocation42_spill] sm:$0xff] }
 0x234   :  { %9822 = vst [vmem:[#allocation30_spill] sm:$0xff] %v6104_v28  ;;  %v6124_v46 = vmul.f32 %v5806_v11, %v9831_v37  ;;  %v9833_v28 = vld [vmem:[#allocation70_spill] sm:$0xff] }
 0x235   :  { %9824 = vst [vmem:[#allocation19_spill] sm:$0xff] %v6108_v44  ;;  %v6128_v41 = vmul.f32 %v5802_v40, %v9833_v28  ;;  %v9835_v44 = vld [vmem:[#allocation32_spill] sm:$0xff] }
 0x236   :  { %9826 = vst [vmem:[#allocation33_spill] sm:$0xff] %v6112_v23  ;;  %v6132_v36 = vmul.f32 %v5804_v17, %v9835_v44  ;;  %v9837_v23 = vld [vmem:[#allocation45_spill] sm:$0xff] }
 0x237   :  { %9828 = vst [vmem:[#allocation22_spill] sm:$0xff] %v6116_v6  ;;  %v6136_v21 = vmul.f32 %v5806_v11, %v9837_v23  ;;  %v9839_v6 = vld [vmem:[#allocation16_spill] sm:$0xff] }
 0x238   :  { %9830 = vst [vmem:[#allocation36_spill] sm:$0xff] %v6120_v5  ;;  %v6140_v49 = vmul.f32 %v5802_v40, %v9839_v6  ;;  %v9841_v5 = vld [vmem:[#allocation62_spill] sm:$0xff] }
 0x239   :  { %9832 = vst [vmem:[#allocation55_spill] sm:$0xff] %v6124_v46  ;;  %v6144_v37 = vmul.f32 %v5804_v17, %v9841_v5  ;;  %v9843_v46 = vld [vmem:[#allocation44_spill] sm:$0xff] }
 0x23a   :  { %9834 = vst [vmem:[#allocation39_spill] sm:$0xff] %v6128_v41  ;;  %v6148_v28 = vmul.f32 %v5806_v11, %v9843_v46  ;;  %v9845_v41 = vld [vmem:[#allocation71_spill] sm:$0xff] }
 0x23b   :  { %9836 = vst [vmem:[#allocation24_spill] sm:$0xff] %v6132_v36  ;;  %v6152_v44 = vmul.f32 %v5802_v40, %v9845_v41  ;;  %v9847_v36 = vld [vmem:[#allocation35_spill] sm:$0xff] }
 0x23c   :  { %9838 = vst [vmem:[#allocation65_spill] sm:$0xff] %v6136_v21  ;;  %v6156_v23 = vmul.f32 %v5804_v17, %v9847_v36  ;;  %v9849_v21 = vld [vmem:[#allocation48_spill] sm:$0xff] }
 0x23d   :  { %9840 = vst [vmem:[#allocation56_spill] sm:$0xff] %v6140_v49  ;;  %v6160_v6 = vmul.f32 %v5806_v11, %v9849_v21  ;;  %v9850_v49 = vld [vmem:[#allocation72_spill] sm:$0xff] }
 0x23e   :  { %9842 = vst [vmem:[#allocation66_spill] sm:$0xff] %v6144_v37  ;;  %v6164_v5 = vmul.f32 %v5802_v40, %v9850_v49  ;;  %v9852_v37 = vld [vmem:[#allocation63_spill] sm:$0xff]  ;;  %v6184_v49 = vmul.f32 %v5806_v11, %v5779_v12  ;;  %v6204_v12 = vadd.f32 %v5810_v20, %v5820_v45  ;;  %v6228_v45 = vadd.f32 %v5810_v20, %v5844_v55 }
 0x23f   :  { %9844 = vst [vmem:[#allocation26_spill] sm:$0xff] %v6148_v28  ;;  %v6168_v46 = vmul.f32 %v5804_v17, %v9852_v37  ;;  %v9854_v28 = vld [vmem:[#allocation46_spill] sm:$0xff]  ;;  %v6252_v55 = vadd.f32 %v5810_v20, %v5868_v4  ;;  %v6276_v4 = vadd.f32 %v5810_v20, %v5892_v50  ;;  %v6300_v50 = vadd.f32 %v5810_v20, %v5916_v13 }
 0x240   :  { %9846 = vst [vmem:[#allocation67_spill] sm:$0xff] %v6152_v44  ;;  %v6172_v41 = vmul.f32 %v5806_v11, %v9854_v28  ;;  %v9855_v44 = vld [vmem:[#allocation74_spill] sm:$0xff]  ;;  %v6324_v13 = vadd.f32 %v5810_v20, %v5940_v60 }
 0x241   :  { %9848 = vst [vmem:[#allocation58_spill] sm:$0xff] %v6156_v23  ;;  %v6176_v36 = vmul.f32 %v5802_v40, %v9855_v44  ;;  %v9856_v23 = vld [vmem:[#allocation38_spill] sm:$0xff]  ;;  %v6196_v44 = vmul.f32 %v5806_v11, %v5785_v38  ;;  %v6216_v38 = vadd.f32 %v5810_v20, %v5832_v9  ;;  %v6220_v11 = vadd.f32 %v5812_v30, %v5836_v61 }
 0x242   :  { %9851 = vst [vmem:[#allocation40_spill] sm:$0xff] %v6164_v5  ;;  %v6180_v21 = vmul.f32 %v5804_v17, %v9856_v23  ;;  %v9857_v5 = vld [vmem:[#allocation75_spill] sm:$0xff]  ;;  %v6200_v23 = vadd.f32 %v5808_v32, %v5816_v22  ;;  %v6224_v22 = vadd.f32 %v5808_v32, %v5840_v8  ;;  %v6240_v9 = vadd.f32 %v5810_v20, %v5856_v27 }
 0x243   :  { %9853 = vst [vmem:[#allocation68_spill] sm:$0xff] %v6168_v46  ;;  %v6188_v37 = vmul.f32 %v5802_v40, %v9857_v5  ;;  %v9858_v46 = vld [vmem:[#allocation41_spill] sm:$0xff]  ;;  %v6208_v40 = vadd.f32 %v5812_v30, %v5824_v54  ;;  %v6232_v54 = vadd.f32 %v5812_v30, %v5848_v14  ;;  %v6244_v61 = vadd.f32 %v5812_v30, %v5860_v24  ;;  %v9869_v5 = vld [vmem:[#allocation50_spill] sm:$0xff] }
 0x244   :  { %v6192_v28 = vmul.f32 %v5804_v17, %v9858_v46  ;;  %v6212_v17 = vadd.f32 %v5808_v32, %v5828_v39  ;;  %v6236_v39 = vadd.f32 %v5808_v32, %v5852_v47  ;;  %v6248_v8 = vadd.f32 %v5808_v32, %v5864_v48  ;;  %9859 = vst [vmem:[#allocation29_spill] sm:$0xff] %v6300_v50  ;;  %v9872_v46 = vld [vmem:[#allocation52_spill] sm:$0xff] }
 0x245   :  { %v6256_v14 = vadd.f32 %v5812_v30, %v5872_v26  ;;  %v6260_v47 = vadd.f32 %v5808_v32, %v5876_v51  ;;  %v6264_v27 = vadd.f32 %v5810_v20, %v5880_v3  ;;  %v6268_v24 = vadd.f32 %v5812_v30, %v5884_v25  ;;  %9863 = vst [vmem:[#allocation42_spill] sm:$0xff] %v6324_v13 }
 0x246   :  { %v6272_v48 = vadd.f32 %v5808_v32, %v5888_v62  ;;  %v6280_v26 = vadd.f32 %v5812_v30, %v5896_v52  ;;  %v6284_v51 = vadd.f32 %v5808_v32, %v5900_v43  ;;  %v6288_v3 = vadd.f32 %v5810_v20, %v5904_v18 }
 0x247   :  { %v6292_v25 = vadd.f32 %v5812_v30, %v5908_v59  ;;  %v6296_v62 = vadd.f32 %v5808_v32, %v5912_v33  ;;  %v6304_v52 = vadd.f32 %v5812_v30, %v5920_v10  ;;  %v6308_v43 = vadd.f32 %v5808_v32, %v5924_v2 }
 0x248   :  { %v6312_v18 = vadd.f32 %v5810_v20, %v5928_v19  ;;  %v6316_v59 = vadd.f32 %v5812_v30, %v5932_v0  ;;  %v6320_v33 = vadd.f32 %v5808_v32, %v5936_v58  ;;  %v6328_v10 = vadd.f32 %v5812_v30, %v5944_v63  ;;  %v9867_v58 = vld [vmem:[#allocation49_spill] sm:$0xff] }
 0x249   :  { %9860 = vst [vmem:[#allocation43_spill] sm:$0xff] %v6304_v52  ;;  %v6332_v2 = vadd.f32 %v5808_v32, %v5948_v16  ;;  %v6336_v19 = vadd.f32 %v5810_v20, %v5952_v31  ;;  %v6340_v0 = vadd.f32 %v5812_v30, %v5956_v34  ;;  %v6344_v60 = vadd.f32 %v5808_v32, %v9867_v58 }
 0x24a   :  { %9861 = vst [vmem:[#allocation69_spill] sm:$0xff] %v6312_v18  ;;  %v6348_v63 = vadd.f32 %v5810_v20, %v9869_v5  ;;  %v6352_v16 = vadd.f32 %v5812_v30, %v5968_v7  ;;  %v6356_v31 = vadd.f32 %v5808_v32, %v9872_v46  ;;  %v6364_v58 = vadd.f32 %v5812_v30, %v5980_v35 }
 0x24b   :  { %9862 = vst [vmem:[#allocation60_spill] sm:$0xff] %v6316_v59  ;;  %v6376_v46 = vadd.f32 %v5812_v30, %v5992_v57 }
 0x24c   :  { %9864 = vst [vmem:[#allocation70_spill] sm:$0xff] %v6328_v10 }
 0x24d   :  { %9865 = vst [vmem:[#allocation32_spill] sm:$0xff] %v6336_v19  ;;  %v9874_v19 = vld [vmem:[#allocation54_spill] sm:$0xff] }
 0x24e   :  { %9866 = vst [vmem:[#allocation45_spill] sm:$0xff] %v6340_v0  ;;  %v6360_v34 = vadd.f32 %v5810_v20, %v9874_v19 }
 0x24f   :  { %9868 = vst [vmem:[#allocation16_spill] sm:$0xff] %v6344_v60  ;;  %v9877_v60 = vld [vmem:[#allocation57_spill] sm:$0xff] }
 0x250   :  { %9870 = vst [vmem:[#allocation62_spill] sm:$0xff] %v6348_v63  ;;  %v6368_v5 = vadd.f32 %v5808_v32, %v9877_v60  ;;  %v9879_v63 = vld [vmem:[#allocation59_spill] sm:$0xff]  ;;  %v6388_v60 = vadd.f32 %v5812_v30, %v6004_v56 }
 0x251   :  { %9871 = vst [vmem:[#allocation44_spill] sm:$0xff] %v6352_v16  ;;  %v6372_v7 = vadd.f32 %v5810_v20, %v9879_v63 }
 0x252   :  { %9873 = vst [vmem:[#allocation71_spill] sm:$0xff] %v6356_v31  ;;  %v9882_v31 = vld [vmem:[#allocation61_spill] sm:$0xff] }
 0x253   :  { %9875 = vst [vmem:[#allocation35_spill] sm:$0xff] %v6360_v34  ;;  %v6380_v19 = vadd.f32 %v5808_v32, %v9882_v31  ;;  %v9884_v34 = vld [vmem:[#allocation21_spill] sm:$0xff]  ;;  %v6400_v31 = vadd.f32 %v5812_v30, %v6016_v53 }
 0x254   :  { %9876 = vst [vmem:[#allocation48_spill] sm:$0xff] %v6364_v58  ;;  %v6384_v35 = vadd.f32 %v5810_v20, %v9884_v34 }
 0x255   :  { %9878 = vst [vmem:[#allocation72_spill] sm:$0xff] %v6368_v5  ;;  %v9887_v5 = vld [vmem:[#allocation23_spill] sm:$0xff] }
 0x256   :  { %9880 = vst [vmem:[#allocation63_spill] sm:$0xff] %v6372_v7  ;;  %v6392_v63 = vadd.f32 %v5808_v32, %v9887_v5  ;;  %v9889_v7 = vld [vmem:[#allocation27_spill] sm:$0xff]  ;;  %v6412_v5 = vadd.f32 %v5812_v30, %v6028_v1  ;;  %v9971_v50 = vld [vmem:[#allocation16_spill] sm:$0xff] }
 0x257   :  { %9881 = vst [vmem:[#allocation46_spill] sm:$0xff] %v6376_v46  ;;  %v6396_v57 = vadd.f32 %v5810_v20, %v9889_v7 }
 0x258   :  { %9883 = vst [vmem:[#allocation74_spill] sm:$0xff] %v6380_v19  ;;  %v9892_v19 = vld [vmem:[#allocation31_spill] sm:$0xff] }
 0x259   :  { %9885 = vst [vmem:[#allocation38_spill] sm:$0xff] %v6384_v35  ;;  %v6404_v34 = vadd.f32 %v5808_v32, %v9892_v19  ;;  %v9894_v35 = vld [vmem:[#allocation34_spill] sm:$0xff]  ;;  %v6424_v19 = vadd.f32 %v5812_v30, %v6040_v42  ;;  %v9973_v18 = vld [vmem:[#allocation71_spill] sm:$0xff] }
 0x25a   :  { %9886 = vst [vmem:[#allocation75_spill] sm:$0xff] %v6388_v60  ;;  %v6408_v56 = vadd.f32 %v5810_v20, %v9894_v35 }
 0x25b   :  { %9888 = vst [vmem:[#allocation41_spill] sm:$0xff] %v6392_v63  ;;  %v9897_v63 = vld [vmem:[#allocation51_spill] sm:$0xff] }
 0x25c   :  { %9890 = vst [vmem:[#allocation49_spill] sm:$0xff] %v6396_v57  ;;  %v6416_v7 = vadd.f32 %v5808_v32, %v9897_v63  ;;  %v9899_v57 = vld [vmem:[#allocation37_spill] sm:$0xff]  ;;  %v6436_v63 = vadd.f32 %v5812_v30, %v6052_v29  ;;  %v9975_v13 = vld [vmem:[#allocation72_spill] sm:$0xff] }
 0x25d   :  { %9891 = vst [vmem:[#allocation50_spill] sm:$0xff] %v6400_v31  ;;  %v6420_v53 = vadd.f32 %v5810_v20, %v9899_v57 }
 0x25e   :  { %9893 = vst [vmem:[#allocation52_spill] sm:$0xff] %v6404_v34  ;;  %v9902_v34 = vld [vmem:[#allocation53_spill] sm:$0xff] }
 0x25f   :  { %9895 = vst [vmem:[#allocation54_spill] sm:$0xff] %v6408_v56  ;;  %v6428_v35 = vadd.f32 %v5808_v32, %v9902_v34  ;;  %v9904_v56 = vld [vmem:[#allocation14_spill] sm:$0xff]  ;;  %v6448_v34 = vadd.f32 %v5812_v30, %v6064_v15 }
 0x260   :  { %9896 = vst [vmem:[#allocation57_spill] sm:$0xff] %v6412_v5  ;;  %v6432_v1 = vadd.f32 %v5810_v20, %v9904_v56 }
 0x261   :  { %9898 = vst [vmem:[#allocation59_spill] sm:$0xff] %v6416_v7  ;;  %v9907_v7 = vld [vmem:[#allocation17_spill] sm:$0xff] }
 0x262   :  { %9900 = vst [vmem:[#allocation61_spill] sm:$0xff] %v6420_v53  ;;  %v6440_v57 = vadd.f32 %v5808_v32, %v9907_v7  ;;  %v9909_v53 = vld [vmem:[#allocation20_spill] sm:$0xff] }
 0x263   :  { %9901 = vst [vmem:[#allocation21_spill] sm:$0xff] %v6424_v19  ;;  %v6444_v42 = vadd.f32 %v5810_v20, %v9909_v53 }
 0x264   :  { %9903 = vst [vmem:[#allocation23_spill] sm:$0xff] %v6428_v35  ;;  %v9912_v35 = vld [vmem:[#allocation12_spill] sm:$0xff] }
 0x265   :  { %9905 = vst [vmem:[#allocation27_spill] sm:$0xff] %v6432_v1  ;;  %v6452_v56 = vadd.f32 %v5808_v32, %v9912_v35  ;;  %v9914_v1 = vld [vmem:[#allocation15_spill] sm:$0xff] }
 0x266   :  { %9906 = vst [vmem:[#allocation31_spill] sm:$0xff] %v6436_v63  ;;  %v6456_v29 = vadd.f32 %v5810_v20, %v9914_v1  ;;  %v9916_v63 = vld [vmem:[#allocation18_spill] sm:$0xff] }
 0x267   :  { %9908 = vst [vmem:[#allocation34_spill] sm:$0xff] %v6440_v57  ;;  %v6460_v7 = vadd.f32 %v5812_v30, %v9916_v63  ;;  %v9918_v57 = vld [vmem:[#allocation64_spill] sm:$0xff] }
 0x268   :  { %9910 = vst [vmem:[#allocation51_spill] sm:$0xff] %v6444_v42  ;;  %v6464_v53 = vadd.f32 %v5808_v32, %v9918_v57  ;;  %v9920_v42 = vld [vmem:[#allocation47_spill] sm:$0xff] }
 0x269   :  { %9911 = vst [vmem:[#allocation37_spill] sm:$0xff] %v6448_v34  ;;  %v6468_v15 = vadd.f32 %v5810_v20, %v9920_v42  ;;  %v9922_v34 = vld [vmem:[#allocation25_spill] sm:$0xff] }
 0x26a   :  { %9913 = vst [vmem:[#allocation53_spill] sm:$0xff] %v6452_v56  ;;  %v6472_v35 = vadd.f32 %v5812_v30, %v9922_v34  ;;  %v9924_v56 = vld [vmem:[#allocation13_spill] sm:$0xff] }
 0x26b   :  { %9915 = vst [vmem:[#allocation14_spill] sm:$0xff] %v6456_v29  ;;  %v6476_v1 = vadd.f32 %v5808_v32, %v9924_v56  ;;  %v9926_v29 = vld [vmem:[#allocation28_spill] sm:$0xff] }
 0x26c   :  { %9917 = vst [vmem:[#allocation17_spill] sm:$0xff] %v6460_v7  ;;  %v6480_v63 = vadd.f32 %v5810_v20, %v9926_v29  ;;  %v9928_v7 = vld [vmem:[#allocation73_spill] sm:$0xff] }
 0x26d   :  { %9919 = vst [vmem:[#allocation20_spill] sm:$0xff] %v6464_v53  ;;  %v6484_v57 = vadd.f32 %v5812_v30, %v9928_v7  ;;  %v9930_v53 = vld [vmem:[#allocation30_spill] sm:$0xff] }
 0x26e   :  { %9921 = vst [vmem:[#allocation12_spill] sm:$0xff] %v6468_v15  ;;  %v6488_v42 = vadd.f32 %v5808_v32, %v9930_v53  ;;  %v9932_v15 = vld [vmem:[#allocation19_spill] sm:$0xff] }
 0x26f   :  { %9923 = vst [vmem:[#allocation15_spill] sm:$0xff] %v6472_v35  ;;  %v6492_v34 = vadd.f32 %v5810_v20, %v9932_v15  ;;  %v9934_v35 = vld [vmem:[#allocation33_spill] sm:$0xff] }
 0x270   :  { %9925 = vst [vmem:[#allocation18_spill] sm:$0xff] %v6476_v1  ;;  %v6496_v56 = vadd.f32 %v5812_v30, %v9934_v35  ;;  %v9936_v1 = vld [vmem:[#allocation22_spill] sm:$0xff] }
 0x271   :  { %9927 = vst [vmem:[#allocation64_spill] sm:$0xff] %v6480_v63  ;;  %v6500_v29 = vadd.f32 %v5808_v32, %v9936_v1  ;;  %v9938_v63 = vld [vmem:[#allocation36_spill] sm:$0xff] }
 0x272   :  { %9929 = vst [vmem:[#allocation47_spill] sm:$0xff] %v6484_v57  ;;  %v6504_v7 = vadd.f32 %v5810_v20, %v9938_v63  ;;  %v9940_v57 = vld [vmem:[#allocation55_spill] sm:$0xff] }
 0x273   :  { %9931 = vst [vmem:[#allocation25_spill] sm:$0xff] %v6488_v42  ;;  %v6508_v53 = vadd.f32 %v5812_v30, %v9940_v57  ;;  %v9942_v42 = vld [vmem:[#allocation39_spill] sm:$0xff] }
 0x274   :  { %9933 = vst [vmem:[#allocation13_spill] sm:$0xff] %v6492_v34  ;;  %v6512_v15 = vadd.f32 %v5808_v32, %v9942_v42  ;;  %v9944_v34 = vld [vmem:[#allocation24_spill] sm:$0xff] }
 0x275   :  { %9935 = vst [vmem:[#allocation28_spill] sm:$0xff] %v6496_v56  ;;  %v6516_v35 = vadd.f32 %v5810_v20, %v9944_v34  ;;  %v9946_v56 = vld [vmem:[#allocation65_spill] sm:$0xff] }
 0x276   :  { %9937 = vst [vmem:[#allocation73_spill] sm:$0xff] %v6500_v29  ;;  %v6520_v1 = vadd.f32 %v5812_v30, %v9946_v56  ;;  %v9948_v29 = vld [vmem:[#allocation56_spill] sm:$0xff] }
 0x277   :  { %9939 = vst [vmem:[#allocation30_spill] sm:$0xff] %v6504_v7  ;;  %v6524_v63 = vadd.f32 %v5808_v32, %v9948_v29  ;;  %v9950_v7 = vld [vmem:[#allocation66_spill] sm:$0xff]  ;;  %v6544_v29 = vadd.f32 %v5812_v30, %v6160_v6  ;;  %v6564_v6 = vadd.f32 %v5810_v20, %v6180_v21 }
 0x278   :  { %9941 = vst [vmem:[#allocation19_spill] sm:$0xff] %v6508_v53  ;;  %v6528_v57 = vadd.f32 %v5810_v20, %v9950_v7  ;;  %v9952_v53 = vld [vmem:[#allocation26_spill] sm:$0xff] }
 0x279   :  { %9943 = vst [vmem:[#allocation33_spill] sm:$0xff] %v6512_v15  ;;  %v6532_v42 = vadd.f32 %v5812_v30, %v9952_v53  ;;  %v9954_v15 = vld [vmem:[#allocation67_spill] sm:$0xff]  ;;  %v9997_v60 = vld [vmem:[#allocation18_spill] sm:$0xff] }
 0x27a   :  { %9945 = vst [vmem:[#allocation22_spill] sm:$0xff] %v6516_v35  ;;  %v6536_v34 = vadd.f32 %v5808_v32, %v9954_v15  ;;  %v9956_v35 = vld [vmem:[#allocation58_spill] sm:$0xff]  ;;  %v6556_v15 = vadd.f32 %v5812_v30, %v6172_v41  ;;  %v6576_v41 = vadd.f32 %v5810_v20, %v6192_v28  ;;  %v10000_v31 = vld [vmem:[#allocation25_spill] sm:$0xff] }
 0x27b   :  { %9947 = vst [vmem:[#allocation36_spill] sm:$0xff] %v6520_v1  ;;  %v6540_v56 = vadd.f32 %v5810_v20, %v9956_v35  ;;  %v6560_v35 = vadd.f32 %v5808_v32, %v6176_v36  ;;  %v6580_v36 = vadd.f32 %v5812_v30, %v6196_v44  ;;  %v10001_v59 = vld [vmem:[#allocation13_spill] sm:$0xff] }
 0x27c   :  { %9949 = vst [vmem:[#allocation55_spill] sm:$0xff] %v6524_v63  ;;  %v9959_v63 = vld [vmem:[#allocation40_spill] sm:$0xff] }
 0x27d   :  { %9951 = vst [vmem:[#allocation39_spill] sm:$0xff] %v6528_v57  ;;  %v6548_v7 = vadd.f32 %v5808_v32, %v9959_v63  ;;  %v9961_v57 = vld [vmem:[#allocation68_spill] sm:$0xff]  ;;  %v6568_v63 = vadd.f32 %v5812_v30, %v6184_v49  ;;  %v10003_v5 = vld [vmem:[#allocation73_spill] sm:$0xff] }
 0x27e   :  { %9953 = vst [vmem:[#allocation24_spill] sm:$0xff] %v6532_v42  ;;  %v6552_v53 = vadd.f32 %v5810_v20, %v9961_v57  ;;  %v6572_v57 = vadd.f32 %v5808_v32, %v6188_v37  ;;  %v10002_v58 = vld [vmem:[#allocation28_spill] sm:$0xff]  ;;  %v10004_v10 = vld [vmem:[#allocation30_spill] sm:$0xff] }
 0x27f   :  { %9955 = vst [vmem:[#allocation65_spill] sm:$0xff] %v6536_v34  ;;  %v10005_v46 = vld [vmem:[#allocation19_spill] sm:$0xff] }
 0x280   :  { %9957 = vst [vmem:[#allocation56_spill] sm:$0xff] %v6540_v56  ;;  %v10006_v19 = vld [vmem:[#allocation33_spill] sm:$0xff] }
 0x281   :  { %9958 = vst [vmem:[#allocation66_spill] sm:$0xff] %v6544_v29 }
 0x282   :  { %9960 = vst [vmem:[#allocation26_spill] sm:$0xff] %v6548_v7 }
 0x283   :  { %9962 = vst [vmem:[#allocation67_spill] sm:$0xff] %v6552_v53 }
 0x284   :  { %9963 = vst [vmem:[#allocation58_spill] sm:$0xff] %v6556_v15 }
 0x285   :  { %9964 = vst [vmem:[#allocation40_spill] sm:$0xff] %v6560_v35  ;;  %v9977_v35 = vld [vmem:[#allocation74_spill] sm:$0xff] }
 0x286   :  { %9965 = vst [vmem:[#allocation68_spill] sm:$0xff] %v6564_v6 }
 0x287   :  { %9966 = vst [vmem:[#allocation76_spill] sm:$0xff] %v6568_v63 }
 0x288   :  { %9967 = vst [vmem:[#allocation77_spill] sm:$0xff] %v6572_v57 }
 0x289   :  { %9968 = vst [vmem:[#allocation78_spill] sm:$0xff] %v6576_v41 }
 0x28a   :  { %9969 = vst [vmem:[#allocation79_spill] sm:$0xff] %v6580_v36 }
 0x28b   :  { %4607 = dma.done.wait [#allocation4], 9216 }
 0x28c   :  { %4608 = vsyncadd [#allocation4], 4294958080  ;;  %v4103_v37 = vld [vmem:[#allocation2 + $0xa8] sm:$0xf]  ;;  %v4428_v20 = vld [vmem:[#allocation2 + $0xb0] sm:$0xf0] }
 0x28d   :  { %v4091_v29 = vld [vmem:[#allocation2 + $0x90] sm:$0xf]  ;;  %v4104_v28 = vor.u32 %v4428_v20, %v4103_v37  ;;  %v4425_v53 = vld [vmem:[#allocation2 + $0x98] sm:$0xf0]  ;;  %v4199_v30 = vld [vmem:[#allocation2 + $0x168] sm:$0xf] }
 0x28e   :  { %v4452_v15 = vld [vmem:[#allocation2 + $0x170] sm:$0xf0]  ;;  %v4295_v0 = vld [vmem:[#allocation2 + $0x228] sm:$0xf]  ;;  %v4092_v21 = vor.u32 %v4425_v53, %v4091_v29  ;;  %v4187_v52 = vld [vmem:[#allocation2 + $0x150] sm:$0xf] }
 0x28f   :  { %v4200_v44 = vor.u32 %v4452_v15, %v4199_v30  ;;  %1791 = vmatpush.bf16.msrb.mxu3 %v4104_v28  ;;  %v4476_v6 = vld [vmem:[#allocation2 + $0x230] sm:$0xf0]  ;;  %v4449_v49 = vld [vmem:[#allocation2 + $0x158] sm:$0xf0]  ;;  %v4079_v63 = vld [vmem:[#allocation2 + $0x78] sm:$0xf] }
 0x290   :  { %v4422_v41 = vld [vmem:[#allocation2 + $0x80] sm:$0xf0]  ;;  %v4296_v32 = vor.u32 %v4476_v6, %v4295_v0  ;;  %v4188_v36 = vor.u32 %v4449_v49, %v4187_v52  ;;  %v4283_v1 = vld [vmem:[#allocation2 + $0x210] sm:$0xf]  ;;  %v4473_v57 = vld [vmem:[#allocation2 + $0x218] sm:$0xf0] }
 0x291   :  { %1880 = vmatpush.bf16.msrb.mxu0 %v4200_v44  ;;  %v4175_v56 = vld [vmem:[#allocation2 + $0x138] sm:$0xf]  ;;  %v4446_v7 = vld [vmem:[#allocation2 + $0x140] sm:$0xf0]  ;;  %v4284_v37 = vor.u32 %v4473_v57, %v4283_v1  ;;  %v4080_v20 = vor.u32 %v4422_v41, %v4079_v63  ;;  %v4067_v29 = vld [vmem:[#allocation2 + $0x60] sm:$0xf] }
 0x292   :  { %1969 = vmatpush.bf16.msrb.mxu1 %v4296_v32  ;;  %v4271_v15 = vld [vmem:[#allocation2 + $0x1f8] sm:$0xf]  ;;  %v4470_v30 = vld [vmem:[#allocation2 + $0x200] sm:$0xf0]  ;;  %v4419_v53 = vld [vmem:[#allocation2 + $0x68] sm:$0xf0]  ;;  %v4176_v28 = vor.u32 %v4446_v7, %v4175_v56 }
 0x293   :  { %1792 = vmatpush.bf16.msrb.mxu3 %v4092_v21  ;;  %v4163_v34 = vld [vmem:[#allocation2 + $0x120] sm:$0xf]  ;;  %v4443_v44 = vld [vmem:[#allocation2 + $0x128] sm:$0xf0]  ;;  %v4272_v42 = vor.u32 %v4470_v30, %v4271_v15  ;;  %v4068_v52 = vor.u32 %v4419_v53, %v4067_v29  ;;  %v4055_v49 = vld [vmem:[#allocation2 + $0x48] sm:$0xf] }
 0x294   :  { %v4259_v0 = vld [vmem:[#allocation2 + $0x1e0] sm:$0xf]  ;;  %v4467_v6 = vld [vmem:[#allocation2 + $0x1e8] sm:$0xf0]  ;;  %v4416_v32 = vld [vmem:[#allocation2 + $0x50] sm:$0xf0]  ;;  %v4164_v1 = vor.u32 %v4443_v44, %v4163_v34 }
 0x295   :  { %1881 = vmatpush.bf16.msrb.mxu0 %v4188_v36  ;;  %v4151_v57 = vld [vmem:[#allocation2 + $0x108] sm:$0xf]  ;;  %v4440_v63 = vld [vmem:[#allocation2 + $0x110] sm:$0xf0]  ;;  %v4260_v41 = vor.u32 %v4467_v6, %v4259_v0  ;;  %v4056_v36 = vor.u32 %v4416_v32, %v4055_v49  ;;  %v4043_v7 = vld [vmem:[#allocation2 + $0x30] sm:$0xf] }
 0x296   :  { %1970 = vmatpush.bf16.msrb.mxu1 %v4284_v37  ;;  %v4247_v21 = vld [vmem:[#allocation2 + $0x1c8] sm:$0xf]  ;;  %v4464_v56 = vld [vmem:[#allocation2 + $0x1d0] sm:$0xf0]  ;;  %v4413_v37 = vld [vmem:[#allocation2 + $0x38] sm:$0xf0]  ;;  %v4152_v15 = vor.u32 %v4440_v63, %v4151_v57 }
 0x297   :  { %1793 = vmatpush.bf16.msrb.mxu3 %v4080_v20  ;;  %v4139_v20 = vld [vmem:[#allocation2 + $0xf0] sm:$0xf]  ;;  %v4437_v30 = vld [vmem:[#allocation2 + $0xf8] sm:$0xf0]  ;;  %v4248_v29 = vor.u32 %v4464_v56, %v4247_v21  ;;  %v4044_v53 = vor.u32 %v4413_v37, %v4043_v7  ;;  %v4031_v44 = vld [vmem:[#allocation2 + $0x18] sm:$0xf] }
 0x298   :  { %v4461_v34 = vld [vmem:[#allocation2 + $0x1b8] sm:$0xf0]  ;;  %v4140_v0 = vor.u32 %v4437_v30, %v4139_v20  ;;  %v4434_v6 = vld [vmem:[#allocation2 + $0xe0] sm:$0xf0]  ;;  %v4019_v63 = vld [vmem:[#allocation2] sm:$0xf] }
 0x299   :  { %1882 = vmatpush.bf16.msrb.mxu0 %v4176_v28  ;;  %v4235_v28 = vld [vmem:[#allocation2 + $0x1b0] sm:$0xf]  ;;  %v4458_v57 = vld [vmem:[#allocation2 + $0x1a0] sm:$0xf0]  ;;  %v4201_v56 = vld [vmem:[#allocation2 + $0x174] sm:$0xf0] }
 0x29a   :  { %1971 = vmatpush.bf16.msrb.mxu1 %v4272_v42  ;;  %v4410_v42 = vld [vmem:[#allocation2 + $0x20] sm:$0xf0]  ;;  %v4236_v49 = vor.u32 %v4461_v34, %v4235_v28  ;;  %v4115_v7 = vld [vmem:[#allocation2 + $0xc0] sm:$0xf]  ;;  %v4431_v37 = vld [vmem:[#allocation2 + $0xc8] sm:$0xf0] }
 0x29b   :  { %1794 = vmatpush.bf16.msrb.mxu3 %v4068_v52  ;;  %v4127_v52 = vld [vmem:[#allocation2 + $0xd8] sm:$0xf]  ;;  %v4032_v32 = vor.u32 %v4410_v42, %v4031_v44  ;;  %v4211_v30 = vld [vmem:[#allocation2 + $0x180] sm:$0xf]  ;;  %v4455_v16 = vld [vmem:[#allocation2 + $0x188] sm:$0xf0] }
 0x29c   :  { %v4128_v21 = vor.u32 %v4434_v6, %v4127_v52  ;;  %v10013_v28 = vmax.f32 %v6200_v23, 0.0  ;;  %v10014_v34 = vmax.f32 %v6212_v17, 0.0  ;;  %v4212_v42 = vor.u32 %v4455_v16, %v4211_v30  ;;  %v4448_v17 = vld [vmem:[#allocation2 + $0x154] sm:$0xf]  ;;  %v4189_v16 = vld [vmem:[#allocation2 + $0x15c] sm:$0xf0] }
 0x29d   :  { %1883 = vmatpush.bf16.msrb.mxu0 %v4164_v1  ;;  %v4223_v1 = vld [vmem:[#allocation2 + $0x198] sm:$0xf]  ;;  %v10017_v52 = vmax.f32 %v6216_v38, 0.0  ;;  %v10022_v38 = vmax.f32 %v6224_v22, 0.0  ;;  %v10031_v22 = vmax.f32 %v6248_v8, 0.0 }
 0x29e   :  { %1972 = vmatpush.bf16.msrb.mxu1 %v4260_v41  ;;  %v4407_v41 = vld [vmem:[#allocation2 + $0x8] sm:$0xf0]  ;;  %v6682_v44 = vpack.c.bf16 %v10014_v34, %v10013_v28  ;;  %v4177_v8 = vld [vmem:[#allocation2 + $0x144] sm:$0xf0] }
 0x29f   :  { %1795 = vmatpush.bf16.msrb.mxu3 %v4056_v36  ;;  %v4451_v36 = vld [vmem:[#allocation2 + $0x16c] sm:$0xf]  ;;  %v4020_v20 = vor.u32 %v4407_v41, %v4019_v63  ;;  %v10028_v41 = vmax.f32 %v6232_v54, 0.0  ;;  %v10035_v54 = vmax.f32 %v6264_v27, 0.0  ;;  %v10040_v27 = vmax.f32 %v6284_v51, 0.0 }
 0x2a0   :  { %10015 = vst [vmem:[#allocation16_spill] sm:$0xff] %v6682_v44 }
 0x2a1   :  { %1884 = vmatpush.bf16.msrb.mxu0 %v4152_v15  ;;  %v4224_v15 = vor.u32 %v4458_v57, %v4223_v1  ;;  %v10023_v1 = vmax.f32 %v6236_v39, 0.0  ;;  %v10026_v57 = vmax.f32 %v6240_v9, 0.0  ;;  %v10034_v9 = vmax.f32 %v6252_v55, 0.0 }
 0x2a2   :  { %1973 = vmatpush.bf16.msrb.mxu1 %v4248_v29  ;;  %v4204_v29 = vor.u32 %v4451_v36, %v4201_v56  ;;  %v10039_v55 = vmax.f32 %v6272_v48, 0.0  ;;  %v10047_v48 = vmax.f32 %v6296_v62, 0.0  ;;  %v4165_v62 = vld [vmem:[#allocation2 + $0x12c] sm:$0xf0] }
 0x2a3   :  { %1796 = vmatpush.bf16.msrb.mxu3 %v4044_v53  ;;  %v4116_v53 = vor.u32 %v4431_v37, %v4115_v7  ;;  %v6730_v56 = vpack.c.bf16 %v10035_v54, %v10034_v9  ;;  %v10038_v7 = vmax.f32 %v6268_v24, 0.0  ;;  %v10043_v24 = vmax.f32 %v6288_v3, 0.0  ;;  %v10050_v3 = vld [vmem:[#allocation29_spill] sm:$0xff] }
 0x2a4   :  { %v10051_v34 = vmax.f32 %v10050_v3, 0.0  ;;  %v10068_v54 = vld [vmem:[#allocation45_spill] sm:$0xff] }
 0x2a5   :  { %1885 = vmatpush.bf16.msrb.mxu0 %v4140_v0  ;;  %v10016_v0 = vmax.f32 %v6204_v12, 0.0  ;;  %v4192_v12 = vor.u32 %v4448_v17, %v4189_v16  ;;  %10036 = vst [vmem:[#allocation28_spill] sm:$0xff] %v6730_v56  ;;  %v4442_v16 = vld [vmem:[#allocation2 + $0x124] sm:$0xf]  ;;  %v4439_v3 = vld [vmem:[#allocation2 + $0x10c] sm:$0xf] }
 0x2a6   :  { %1974 = vmatpush.bf16.msrb.mxu1 %v4236_v49  ;;  %v10019_v49 = vmax.f32 %v6208_v40, 0.0  ;;  %v6703_v40 = vpack.c.bf16 %v10023_v1, %v10022_v38  ;;  %v10060_v38 = vmax.f32 %v6332_v2, 0.0  ;;  %v10071_v2 = vmax.f32 %v9973_v18, 0.0 }
 0x2a7   :  { %1797 = vmatpush.bf16.msrb.mxu3 %v4032_v32  ;;  %v6688_v6 = vpack.c.bf16 %v10017_v52, %v10016_v0  ;;  %v10020_v32 = vmax.f32 %v6220_v11, 0.0  ;;  %v10025_v11 = vmax.f32 %v6228_v45, 0.0  ;;  %v10032_v45 = vmax.f32 %v6260_v47, 0.0 }
 0x2a8   :  { %10024 = vst [vmem:[#allocation74_spill] sm:$0xff] %v6703_v40 }
 0x2a9   :  { %1886 = vmatpush.bf16.msrb.mxu0 %v4128_v21  ;;  %10018 = vst [vmem:[#allocation71_spill] sm:$0xff] %v6688_v6  ;;  %v6694_v23 = vpack.c.bf16 %v10020_v32, %v10019_v49  ;;  %v6709_v63 = vpack.c.bf16 %v10026_v57, %v10025_v11  ;;  %v10029_v21 = vmax.f32 %v6244_v61, 0.0  ;;  %v6724_v39 = vpack.c.bf16 %v10032_v45, %v10031_v22  ;;  %v10056_v49 = vld [vmem:[#allocation60_spill] sm:$0xff]  ;;  %v10062_v11 = vld [vmem:[#allocation42_spill] sm:$0xff] }
 0x2aa   :  { %1975 = vmatpush.bf16.msrb.mxu1 %v4224_v15  ;;  %v10037_v61 = vmax.f32 %v6256_v14, 0.0  ;;  %v4445_v15 = vld [vmem:[#allocation2 + $0x13c] sm:$0xf]  ;;  %v10042_v14 = vmax.f32 %v6276_v4, 0.0  ;;  %v10048_v4 = vmax.f32 %v6308_v43, 0.0  ;;  %v10057_v32 = vmax.f32 %v10056_v49, 0.0 }
 0x2ab   :  { %1798 = vmatpush.bf16.msrb.mxu3 %v4020_v20  ;;  %10021 = vst [vmem:[#allocation72_spill] sm:$0xff] %v6694_v23  ;;  %v6715_v36 = vpack.c.bf16 %v10029_v21, %v10028_v41  ;;  %v4180_v47 = vor.u32 %v4445_v15, %v4177_v8  ;;  %v6745_v20 = vpack.c.bf16 %v10040_v27, %v10039_v55  ;;  %v10063_v57 = vmax.f32 %v10062_v11, 0.0  ;;  %v10064_v41 = vld [vmem:[#allocation32_spill] sm:$0xff]  ;;  %v10066_v45 = vld [vmem:[#allocation70_spill] sm:$0xff]  ;;  %v10075_v55 = vld [vmem:[#allocation35_spill] sm:$0xff] }
 0x2ac   :  { %10027 = vst [vmem:[#allocation18_spill] sm:$0xff] %v6709_v63  ;;  %v6736_v37 = vpack.c.bf16 %v10038_v7, %v10037_v61  ;;  %v6751_v30 = vpack.c.bf16 %v10043_v24, %v10042_v14  ;;  %v6766_v51 = vpack.c.bf16 %v10048_v4, %v10047_v48  ;;  %v4168_v43 = vor.u32 %v4442_v16, %v4165_v62  ;;  %v10073_v8 = vld [vmem:[#allocation62_spill] sm:$0xff]  ;;  %v10077_v24 = vld [vmem:[#allocation44_spill] sm:$0xff] }
 0x2ad   :  { %1887 = vmatpush.bf16.msrb.mxu0 %v4116_v53  ;;  %10030 = vst [vmem:[#allocation25_spill] sm:$0xff] %v6715_v36  ;;  %v10045_v53 = vmax.f32 %v6292_v25, 0.0  ;;  %v10054_v25 = vld [vmem:[#allocation43_spill] sm:$0xff]  ;;  %v10065_v21 = vmax.f32 %v10064_v41, 0.0  ;;  %v10067_v9 = vmax.f32 %v10066_v45, 0.0  ;;  %v10069_v61 = vmax.f32 %v10068_v54, 0.0 }
 0x2ae   :  { %1799 = vmatmul.bf16.vlgmr.msrb.gmra.mxu3 %v6682_v44  ;;  %1976 = vmatpush.bf16.msrb.mxu1 %v4212_v42  ;;  %10033 = vst [vmem:[#allocation13_spill] sm:$0xff] %v6724_v39  ;;  %v10052_v42 = vld [vmem:[#allocation69_spill] sm:$0xff]  ;;  %v10055_v52 = vmax.f32 %v10054_v25, 0.0  ;;  %v10076_v27 = vmax.f32 %v10075_v55, 0.0  ;;  %v10085_v25 = vld [vmem:[#allocation63_spill] sm:$0xff]  ;;  %v10087_v49 = vld [vmem:[#allocation38_spill] sm:$0xff] }
 0x2af   :  { %2147 = vmatpush.bf16.msra.mxu3 %v4204_v29  ;;  %10041 = vst [vmem:[#allocation73_spill] sm:$0xff] %v6745_v20  ;;  %v10044_v29 = vmax.f32 %v6280_v26, 0.0  ;;  %v10053_v26 = vmax.f32 %v10052_v42, 0.0  ;;  %v6793_v22 = vpack.c.bf16 %v10065_v21, %v10063_v57  ;;  %v6799_v7 = vpack.c.bf16 %v10069_v61, %v10067_v9  ;;  %v10089_v62 = vld [vmem:[#allocation46_spill] sm:$0xff]  ;;  %v10096_v57 = vld [vmem:[#allocation52_spill] sm:$0xff]  ;;  %v10099_v45 = vld [vmem:[#allocation49_spill] sm:$0xff] }
 0x2b0   :  { %1888 = vmatmul.bf16.vlgmr.msrb.gmra.mxu0 %v6688_v6  ;;  %10049 = vst [vmem:[#allocation19_spill] sm:$0xff] %v6766_v51  ;;  %v6778_v17 = vpack.c.bf16 %v10057_v32, %v10055_v52  ;;  %v10083_v42 = vmax.f32 %v9977_v35, 0.0  ;;  %v10086_v52 = vmax.f32 %v10085_v25, 0.0  ;;  %v10088_v32 = vmax.f32 %v10087_v49, 0.0  ;;  %v10101_v54 = vld [vmem:[#allocation54_spill] sm:$0xff]  ;;  %v10106_v55 = vld [vmem:[#allocation57_spill] sm:$0xff] }
 0x2b1   :  { %1977 = vmatmul.bf16.vlgmr.msrb.gmra.mxu1 %v6694_v23  ;;  %v6757_v28 = vpack.c.bf16 %v10045_v53, %v10044_v29  ;;  %v6772_v0 = vpack.c.bf16 %v10053_v26, %v10051_v34  ;;  %v10078_v29 = vmax.f32 %v10077_v24, 0.0  ;;  %v10079_v53 = vld [vmem:[#allocation48_spill] sm:$0xff]  ;;  %v10082_v34 = vmax.f32 %v9975_v13, 0.0  ;;  %v10094_v13 = vld [vmem:[#allocation41_spill] sm:$0xff] }
 0x2b2   :  { %10058 = vst [vmem:[#allocation33_spill] sm:$0xff] %v6778_v17  ;;  %v10080_v48 = vmax.f32 %v10079_v53, 0.0  ;;  %v6835_v16 = vpack.c.bf16 %v10088_v32, %v10086_v52  ;;  %v10095_v35 = vmax.f32 %v10094_v13, 0.0  ;;  %v10097_v41 = vmax.f32 %v10096_v57, 0.0  ;;  %v4436_v53 = vld [vmem:[#allocation2 + $0xf4] sm:$0xf] }
 0x2b3   :  { %2148 = vmatpush.bf16.msra.mxu3 %v4192_v12  ;;  %10046 = vst [vmem:[#allocation30_spill] sm:$0xff] %v6757_v28  ;;  %v10059_v12 = vmax.f32 %v6320_v33, 0.0  ;;  %v10070_v33 = vmax.f32 %v9971_v50, 0.0  ;;  %v4153_v50 = vld [vmem:[#allocation2 + $0x114] sm:$0xf0]  ;;  %v6829_v26 = vpack.c.bf16 %v10083_v42, %v10082_v34  ;;  %v10100_v9 = vmax.f32 %v10099_v45, 0.0 }
 0x2b4   :  { %v6820_v4 = vpack.c.bf16 %v10080_v48, %v10078_v29  ;;  %v4156_v18 = vor.u32 %v4439_v3, %v4153_v50  ;;  %v6850_v21 = vpack.c.bf16 %v10097_v41, %v10095_v35  ;;  %v10102_v61 = vmax.f32 %v10101_v54, 0.0  ;;  %v4141_v48 = vld [vmem:[#allocation2 + $0xfc] sm:$0xf0]  ;;  %v10109_v32 = vld [vmem:[#allocation59_spill] sm:$0xff]  ;;  %v10114_v13 = vld [vmem:[#allocation61_spill] sm:$0xff] }
 0x2b5   :  { %v6787_v1 = vpack.c.bf16 %v10060_v38, %v10059_v12  ;;  %v6808_v15 = vpack.c.bf16 %v10071_v2, %v10070_v33  ;;  %10084 = vst [vmem:[#allocation60_spill] sm:$0xff] %v6829_v26  ;;  %v10091_v12 = vld [vmem:[#allocation75_spill] sm:$0xff]  ;;  %v4144_v3 = vor.u32 %v4436_v53, %v4141_v48  ;;  %v10115_v35 = vmax.f32 %v10114_v13, 0.0  ;;  %v10131_v13 = vld [vmem:[#allocation14_spill] sm:$0xff] }
 0x2b6   :  { %10081 = vst [vmem:[#allocation43_spill] sm:$0xff] %v6820_v4  ;;  %v10092_v38 = vmax.f32 %v10091_v12, 0.0  ;;  %v6856_v33 = vpack.c.bf16 %v10102_v61, %v10100_v9  ;;  %v10116_v57 = vld [vmem:[#allocation27_spill] sm:$0xff]  ;;  %v10119_v61 = vld [vmem:[#allocation21_spill] sm:$0xff] }
 0x2b7   :  { %2149 = vmatpush.bf16.msra.mxu3 %v4180_v47  ;;  %10061 = vst [vmem:[#allocation29_spill] sm:$0xff] %v6787_v1  ;;  %v10074_v47 = vmax.f32 %v10073_v8, 0.0  ;;  %v10104_v8 = vld [vmem:[#allocation50_spill] sm:$0xff]  ;;  %v10117_v41 = vmax.f32 %v10116_v57, 0.0 }
 0x2b8   :  { %10072 = vst [vmem:[#allocation69_spill] sm:$0xff] %v6808_v15 }
 0x2b9   :  { %v6814_v14 = vpack.c.bf16 %v10076_v27, %v10074_v47  ;;  %10098 = vst [vmem:[#allocation32_spill] sm:$0xff] %v6850_v21  ;;  %v10105_v47 = vmax.f32 %v10104_v8, 0.0  ;;  %v10107_v27 = vmax.f32 %v10106_v55, 0.0  ;;  %v6879_v45 = vpack.c.bf16 %v10117_v41, %v10115_v35  ;;  %v10121_v8 = vld [vmem:[#allocation31_spill] sm:$0xff] }
 0x2ba   :  { %10103 = vst [vmem:[#allocation70_spill] sm:$0xff] %v6856_v33  ;;  %v10132_v35 = vmax.f32 %v10131_v13, 0.0 }
 0x2bb   :  { %2150 = vmatpush.bf16.msra.mxu3 %v4168_v43  ;;  %v10090_v43 = vmax.f32 %v10089_v62, 0.0  ;;  %v6862_v24 = vpack.c.bf16 %v10107_v27, %v10105_v47  ;;  %v10110_v62 = vmax.f32 %v10109_v32, 0.0  ;;  %10118 = vst [vmem:[#allocation35_spill] sm:$0xff] %v6879_v45  ;;  %v10122_v47 = vmax.f32 %v10121_v8, 0.0  ;;  %v10136_v8 = vld [vmem:[#allocation17_spill] sm:$0xff] }
 0x2bd   :  { %v6841_v11 = vpack.c.bf16 %v10092_v38, %v10090_v43  ;;  %10108 = vst [vmem:[#allocation45_spill] sm:$0xff] %v6862_v24  ;;  %v10111_v43 = vld [vmem:[#allocation23_spill] sm:$0xff] }
 0x2be   :  { %1804 = vmatmul.bf16.gmra.mxu3 %v6703_v40  ;;  %v10112_v12 = vmax.f32 %v10111_v43, 0.0  ;;  %v10129_v43 = vld [vmem:[#allocation51_spill] sm:$0xff] }
 0x2bf   :  { %2151 = vmatpush.bf16.msra.mxu3 %v4156_v18  ;;  %10093 = vst [vmem:[#allocation42_spill] sm:$0xff] %v6841_v11 }
 0x2c0   :  { %1893 = vmatmul.bf16.gmra.mxu0 %v6709_v63  ;;  %v6873_v38 = vpack.c.bf16 %v10112_v12, %v10110_v62  ;;  %v10130_v12 = vmax.f32 %v10129_v43, 0.0 }
 0x2c1   :  { %1982 = vmatmul.bf16.gmra.mxu1 %v6715_v36 }
 0x2c2   :  { %10113 = vst [vmem:[#allocation62_spill] sm:$0xff] %v6873_v38  ;;  %v6904_v57 = vpack.c.bf16 %v10132_v35, %v10130_v12  ;;  %v10139_v12 = vld [vmem:[#allocation20_spill] sm:$0xff]  ;;  %v10141_v35 = vmax.f32 %v9997_v60, 0.0 }
 0x2c3   :  { %2152 = vmatpush.bf16.msra.mxu3 %v4144_v3  ;;  %v10140_v13 = vmax.f32 %v10139_v12, 0.0 }
 0x2c4   :  { %10133 = vst [vmem:[#allocation63_spill] sm:$0xff] %v6904_v57 }
 0x2ce   :  { %1809 = vmatmul.bf16.gmra.mxu3 %v6724_v39 }
 0x2d0   :  { %1898 = vmatmul.bf16.gmra.mxu0 %v6730_v56 }
 0x2d1   :  { %1987 = vmatmul.bf16.gmra.mxu1 %v6736_v37 }
 0x2de   :  { %1814 = vmatmul.bf16.gmra.mxu3 %v6745_v20 }
 0x2e0   :  { %1903 = vmatmul.bf16.gmra.mxu0 %v6751_v30 }
 0x2e1   :  { %1992 = vmatmul.bf16.gmra.mxu1 %v6757_v28 }
 0x2ee   :  { %1819 = vmatmul.bf16.gmra.mxu3 %v6766_v51 }
 0x2f0   :  { %1908 = vmatmul.bf16.gmra.mxu0 %v6772_v0 }
 0x2f1   :  { %1997 = vmatmul.bf16.gmra.mxu1 %v6778_v17 }
 0x2fe   :  { %1824 = vmatmul.bf16.gmra.mxu3 %v6787_v1 }
 0x300   :  { %1913 = vmatmul.bf16.gmra.mxu0 %v6793_v22 }
 0x301   :  { %2002 = vmatmul.bf16.gmra.mxu1 %v6799_v7 }
 0x30e   :  { %1829 = vmatmul.bf16.gmra.mxu3 %v6808_v15 }
 0x310   :  { %1918 = vmatmul.bf16.gmra.mxu0 %v6814_v14 }
 0x311   :  { %2007 = vmatmul.bf16.gmra.mxu1 %v6820_v4 }
 0x31e   :  { %1834 = vmatmul.bf16.gmra.mxu3 %v6829_v26 }
 0x320   :  { %1923 = vmatmul.bf16.gmra.mxu0 %v6835_v16 }
 0x321   :  { %2012 = vmatmul.bf16.gmra.mxu1 %v6841_v11 }
 0x32d   :  { %v1889_v2 = vpop.f32.mrf.mxu0 }
 0x32e   :  { %1839 = vmatmul.bf16.gmra.mxu3 %v6850_v21  ;;  %v1978_v29 = vpop.f32.mrf.mxu1 }
 0x330   :  { %1928 = vmatmul.bf16.gmra.mxu0 %v6856_v33 }
 0x331   :  { %v1800_v50 = vpop.f32.mrf.mxu3  ;;  %2017 = vmatmul.bf16.gmra.mxu1 %v6862_v24 }
 0x332   :  { %v1890_v18 = vadd.f32 %v1889_v2, %v1800_v50  ;;  %v10120_v2 = vmax.f32 %v10119_v61, 0.0  ;;  %v10134_v61 = vld [vmem:[#allocation37_spill] sm:$0xff] }
 0x334   :  { %v6867_v34 = vadd.f32 %v1978_v29, %v1890_v18  ;;  %v6887_v55 = vpack.c.bf16 %v10122_v47, %v10120_v2  ;;  %v10135_v2 = vmax.f32 %v10134_v61, 0.0  ;;  %v10137_v47 = vmax.f32 %v10136_v8, 0.0 }
 0x335   :  { %v1891_v42 = vpop.f32.mrf.mxu0  ;;  %v6923_v61 = vpack.c.bf16 %v10141_v35, %v10140_v13  ;;  %v4427_v13 = vld [vmem:[#allocation2 + $0xac] sm:$0xf]  ;;  %v4105_v35 = vld [vmem:[#allocation2 + $0xb4] sm:$0xf0] }
 0x336   :  { %v1980_v25 = vpop.f32.mrf.mxu1  ;;  %10123 = vst [vmem:[#allocation44_spill] sm:$0xff] %v6887_v55 }
 0x337   :  { %10142 = vst [vmem:[#allocation46_spill] sm:$0xff] %v6923_v61 }
 0x339   :  { %v1802_v52 = vpop.f32.mrf.mxu3 }
 0x33a   :  { %v1892_v49 = vadd.f32 %v1891_v42, %v1802_v52 }
 0x33c   :  { %v6881_v9 = vadd.f32 %v1980_v25, %v1892_v49  ;;  %v10124_v25 = vld [vmem:[#allocation34_spill] sm:$0xff]  ;;  %v10126_v49 = vld [vmem:[#allocation53_spill] sm:$0xff] }
 0x33d   :  { %v1894_v54 = vpop.f32.mrf.mxu0  ;;  %v10125_v52 = vmax.f32 %v10124_v25, 0.0  ;;  %v10127_v32 = vmax.f32 %v10126_v49, 0.0 }
 0x33e   :  { %1844 = vmatmul.bf16.gmra.mxu3 %v6873_v38  ;;  %v1983_v27 = vpop.f32.mrf.mxu1 }
 0x33f   :  { %v6898_v62 = vpack.c.bf16 %v10127_v32, %v10125_v52 }
 0x340   :  { %1933 = vmatmul.bf16.gmra.mxu0 %v6879_v45 }
 0x341   :  { %v1805_v29 = vpop.f32.mrf.mxu3  ;;  %2022 = vmatmul.bf16.gmra.mxu1 %v6887_v55  ;;  %10128 = vst [vmem:[#allocation48_spill] sm:$0xff] %v6898_v62  ;;  %v4213_v55 = vld [vmem:[#allocation2 + $0x18c] sm:$0xf0] }
 0x342   :  { %v1895_v53 = vadd.f32 %v1894_v54, %v1805_v29 }
 0x344   :  { %v6892_v48 = vadd.f32 %v1983_v27, %v1895_v53  ;;  %v6912_v27 = vpack.c.bf16 %v10137_v47, %v10135_v2  ;;  %v4433_v53 = vld [vmem:[#allocation2 + $0xdc] sm:$0xf]  ;;  %v10143_v2 = vld [vmem:[#allocation12_spill] sm:$0xff] }
 0x345   :  { %v1896_v3 = vpop.f32.mrf.mxu0  ;;  %v10144_v8 = vmax.f32 %v10143_v2, 0.0  ;;  %v10145_v47 = vld [vmem:[#allocation64_spill] sm:$0xff] }
 0x346   :  { %v1985_v50 = vpop.f32.mrf.mxu1  ;;  %10138 = vst [vmem:[#allocation38_spill] sm:$0xff] %v6912_v27 }
 0x349   :  { %v1807_v18 = vpop.f32.mrf.mxu3 }
 0x34a   :  { %v1897_v42 = vadd.f32 %v1896_v3, %v1807_v18  ;;  %v4129_v3 = vld [vmem:[#allocation2 + $0xe4] sm:$0xf0] }
 0x34b   :  { %v4132_v18 = vor.u32 %v4433_v53, %v4129_v3  ;;  %v10146_v53 = vmax.f32 %v10145_v47, 0.0  ;;  %v4424_v47 = vld [vmem:[#allocation2 + $0x94] sm:$0xf] }
 0x34c   :  { %v6906_v41 = vadd.f32 %v1985_v50, %v1897_v42 }
 0x34d   :  { %v1899_v54 = vpop.f32.mrf.mxu0  ;;  %2153 = vmatpush.bf16.msra.mxu3 %v4132_v18  ;;  %v6929_v3 = vpack.c.bf16 %v10146_v53, %v10144_v8 }
 0x34e   :  { %1849 = vmatmul.bf16.gmra.mxu3 %v6898_v62  ;;  %v1988_v29 = vpop.f32.mrf.mxu1 }
 0x34f   :  { %10147 = vst [vmem:[#allocation75_spill] sm:$0xff] %v6929_v3 }
 0x350   :  { %1938 = vmatmul.bf16.gmra.mxu0 %v6904_v57  ;;  %v10173_v57 = vld [vmem:[#allocation24_spill] sm:$0xff] }
 0x351   :  { %v1810_v25 = vpop.f32.mrf.mxu3  ;;  %2027 = vmatmul.bf16.gmra.mxu1 %v6912_v27 }
 0x352   :  { %v1900_v50 = vadd.f32 %v1899_v54, %v1810_v25 }
 0x354   :  { %v6917_v42 = vadd.f32 %v1988_v29, %v1900_v50  ;;  %v10148_v29 = vld [vmem:[#allocation15_spill] sm:$0xff] }
 0x355   :  { %v1901_v52 = vpop.f32.mrf.mxu0  ;;  %v10149_v25 = vmax.f32 %v10148_v29, 0.0  ;;  %v10150_v50 = vld [vmem:[#allocation47_spill] sm:$0xff] }
 0x356   :  { %v1990_v49 = vpop.f32.mrf.mxu1  ;;  %v10151_v27 = vmax.f32 %v10150_v50, 0.0  ;;  %v10153_v50 = vmax.f32 %v10000_v31, 0.0  ;;  %v10160_v31 = vmax.f32 %v10005_v46, 0.0  ;;  %v4415_v46 = vld [vmem:[#allocation2 + $0x4c] sm:$0xf] }
 0x359   :  { %v1812_v32 = vpop.f32.mrf.mxu3 }
 0x35a   :  { %v1902_v43 = vadd.f32 %v1901_v52, %v1812_v32  ;;  %v6937_v52 = vpack.c.bf16 %v10151_v27, %v10149_v25  ;;  %v4093_v27 = vld [vmem:[#allocation2 + $0x9c] sm:$0xf0] }
 0x35b   :  { %v4096_v53 = vor.u32 %v4424_v47, %v4093_v27 }
 0x35c   :  { %v6931_v18 = vadd.f32 %v1990_v49, %v1902_v43  ;;  %10152 = vst [vmem:[#allocation41_spill] sm:$0xff] %v6937_v52  ;;  %v4108_v49 = vor.u32 %v4427_v13, %v4105_v35 }
 0x35d   :  { %v1904_v54 = vpop.f32.mrf.mxu0 }
 0x35e   :  { %1854 = vmatmul.bf16.gmra.mxu3 %v6923_v61  ;;  %v1993_v60 = vpop.f32.mrf.mxu1  ;;  %2058 = vmatpush.bf16.msrb.mxu2 %v4108_v49 }
 0x360   :  { %1943 = vmatmul.bf16.gmra.mxu0 %v6929_v3  ;;  %v10154_v3 = vmax.f32 %v10003_v5, 0.0 }
 0x361   :  { %v1815_v32 = vpop.f32.mrf.mxu3  ;;  %2032 = vmatmul.bf16.gmra.mxu1 %v6937_v52 }
 0x362   :  { %v1905_v12 = vadd.f32 %v1904_v54, %v1815_v32  ;;  %2059 = vmatpush.bf16.msrb.mxu2 %v4096_v53  ;;  %v6948_v52 = vpack.c.bf16 %v10154_v3, %v10153_v50  ;;  %v4421_v54 = vld [vmem:[#allocation2 + $0x7c] sm:$0xf]  ;;  %v4081_v32 = vld [vmem:[#allocation2 + $0x84] sm:$0xf0]  ;;  %v4430_v3 = vld [vmem:[#allocation2 + $0xc4] sm:$0xf] }
 0x363   :  { %v4084_v35 = vor.u32 %v4421_v54, %v4081_v32  ;;  %v4418_v53 = vld [vmem:[#allocation2 + $0x64] sm:$0xf]  ;;  %v4057_v50 = vld [vmem:[#allocation2 + $0x54] sm:$0xf0] }
 0x364   :  { %v6942_v43 = vadd.f32 %v1993_v60, %v1905_v12  ;;  %10155 = vst [vmem:[#allocation52_spill] sm:$0xff] %v6948_v52  ;;  %v10156_v60 = vmax.f32 %v10001_v59, 0.0  ;;  %v10157_v12 = vmax.f32 %v10004_v10, 0.0  ;;  %v4117_v59 = vld [vmem:[#allocation2 + $0xcc] sm:$0xf0]  ;;  %v4060_v54 = vor.u32 %v4415_v46, %v4057_v50 }
 0x365   :  { %v1906_v2 = vpop.f32.mrf.mxu0  ;;  %v4120_v10 = vor.u32 %v4430_v3, %v4117_v59  ;;  %v4412_v3 = vld [vmem:[#allocation2 + $0x34] sm:$0xf]  ;;  %v4045_v59 = vld [vmem:[#allocation2 + $0x3c] sm:$0xf0] }
 0x366   :  { %v1995_v8 = vpop.f32.mrf.mxu1  ;;  %v6954_v13 = vpack.c.bf16 %v10157_v12, %v10156_v60  ;;  %2060 = vmatpush.bf16.msrb.mxu2 %v4084_v35  ;;  %v4475_v12 = vld [vmem:[#allocation2 + $0x22c] sm:$0xf]  ;;  %v4297_v35 = vld [vmem:[#allocation2 + $0x234] sm:$0xf0] }
 0x367   :  { %2154 = vmatpush.bf16.msra.mxu3 %v4120_v10  ;;  %v4285_v10 = vld [vmem:[#allocation2 + $0x21c] sm:$0xf0] }
 0x368   :  { %10158 = vst [vmem:[#allocation49_spill] sm:$0xff] %v6954_v13 }
 0x369   :  { %v1817_v29 = vpop.f32.mrf.mxu3 }
 0x36a   :  { %v1907_v25 = vadd.f32 %v1906_v2, %v1817_v29  ;;  %v10159_v2 = vmax.f32 %v10002_v58, 0.0  ;;  %v4069_v29 = vld [vmem:[#allocation2 + $0x6c] sm:$0xf0] }
 0x36c   :  { %v6956_v49 = vadd.f32 %v1995_v8, %v1907_v25  ;;  %v6962_v27 = vpack.c.bf16 %v10160_v31, %v10159_v2  ;;  %v4072_v8 = vor.u32 %v4418_v53, %v4069_v29  ;;  %v4300_v2 = vor.u32 %v4475_v12, %v4297_v35  ;;  %v4472_v29 = vld [vmem:[#allocation2 + $0x214] sm:$0xf]  ;;  %v4409_v12 = vld [vmem:[#allocation2 + $0x1c] sm:$0xf]  ;;  %v4033_v35 = vld [vmem:[#allocation2 + $0x24] sm:$0xf0] }
 0x36d   :  { %v1909_v47 = vpop.f32.mrf.mxu0  ;;  %v4048_v53 = vor.u32 %v4412_v3, %v4045_v59  ;;  %v4036_v59 = vor.u32 %v4409_v12, %v4033_v35  ;;  %v4261_v12 = vld [vmem:[#allocation2 + $0x1ec] sm:$0xf0] }
 0x36e   :  { %10161 = vst [vmem:[#allocation54_spill] sm:$0xff] %v6962_v27  ;;  %1859 = vmatmul.bf16.gmra.mxu3 %v6948_v52  ;;  %v1998_v5 = vpop.f32.mrf.mxu1  ;;  %2061 = vmatpush.bf16.msrb.mxu2 %v4072_v8  ;;  %v4288_v8 = vor.u32 %v4472_v29, %v4285_v10  ;;  %v4273_v10 = vld [vmem:[#allocation2 + $0x204] sm:$0xf0]  ;;  %v10186_v52 = vld [vmem:[#allocation66_spill] sm:$0xff] }
 0x36f   :  { %2236 = vmatpush.bf16.msra.mxu0 %v4300_v2 }
 0x370   :  { %1948 = vmatmul.bf16.gmra.mxu0 %v6954_v13  ;;  %v10168_v13 = vld [vmem:[#allocation39_spill] sm:$0xff] }
 0x371   :  { %v1820_v25 = vpop.f32.mrf.mxu3  ;;  %2037 = vmatmul.bf16.gmra.mxu1 %v6962_v27  ;;  %v10169_v2 = vmax.f32 %v10168_v13, 0.0  ;;  %v4021_v13 = vld [vmem:[#allocation2 + $0xc] sm:$0xf0] }
 0x372   :  { %v1910_v58 = vadd.f32 %v1909_v47, %v1820_v25  ;;  %2062 = vmatpush.bf16.msrb.mxu2 %v4060_v54  ;;  %v10166_v54 = vld [vmem:[#allocation22_spill] sm:$0xff] }
 0x373   :  { %v10167_v27 = vmax.f32 %v10166_v54, 0.0  ;;  %2237 = vmatpush.bf16.msra.mxu0 %v4288_v8  ;;  %v4406_v54 = vld [vmem:[#allocation2 + $0x4] sm:$0xf] }
 0x374   :  { %v6967_v32 = vadd.f32 %v1998_v5, %v1910_v58  ;;  %v10162_v5 = vmax.f32 %v10006_v19, 0.0  ;;  %v10163_v58 = vld [vmem:[#allocation55_spill] sm:$0xff]  ;;  %v4466_v8 = vld [vmem:[#allocation2 + $0x1e4] sm:$0xf] }
 0x375   :  { %v1911_v60 = vpop.f32.mrf.mxu0  ;;  %v10164_v46 = vmax.f32 %v10163_v58, 0.0  ;;  %v6983_v3 = vpack.c.bf16 %v10169_v2, %v10167_v27  ;;  %v10174_v58 = vmax.f32 %v10173_v57, 0.0  ;;  %v4024_v27 = vor.u32 %v4406_v54, %v4021_v13  ;;  %v4237_v54 = vld [vmem:[#allocation2 + $0x1bc] sm:$0xf0] }
 0x376   :  { %v6969_v31 = vpop.f32.mrf.mxu1  ;;  %2063 = vmatpush.bf16.msrb.mxu2 %v4048_v53  ;;  %v4264_v2 = vor.u32 %v4466_v8, %v4261_v12 }
 0x377   :  { %v6977_v50 = vpack.c.bf16 %v10164_v46, %v10162_v5  ;;  %10170 = vst [vmem:[#allocation57_spill] sm:$0xff] %v6983_v3 }
 0x379   :  { %v1822_v47 = vpop.f32.mrf.mxu3  ;;  %10165 = vst [vmem:[#allocation50_spill] sm:$0xff] %v6977_v50 }
 0x37a   :  { %v6971_v25 = vadd.f32 %v1911_v60, %v1822_v47  ;;  %v4469_v60 = vld [vmem:[#allocation2 + $0x1fc] sm:$0xf]  ;;  %v10171_v47 = vld [vmem:[#allocation36_spill] sm:$0xff]  ;;  %2064 = vmatpush.bf16.msrb.mxu2 %v4036_v59  ;;  %v4249_v59 = vld [vmem:[#allocation2 + $0x1d4] sm:$0xf0] }
 0x37b   :  { %v10172_v19 = vmax.f32 %v10171_v47, 0.0  ;;  %v4276_v53 = vor.u32 %v4469_v60, %v4273_v10  ;;  %v4463_v10 = vld [vmem:[#allocation2 + $0x1cc] sm:$0xf] }
 0x37d   :  { %v1914_v29 = vpop.f32.mrf.mxu0  ;;  %v6989_v5 = vpack.c.bf16 %v10174_v58, %v10172_v19  ;;  %2238 = vmatpush.bf16.msra.mxu0 %v4276_v53  ;;  %v4252_v19 = vor.u32 %v4463_v10, %v4249_v59  ;;  %v4460_v53 = vld [vmem:[#allocation2 + $0x1b4] sm:$0xf] }
 0x37e   :  { %1864 = vmatmul.bf16.gmra.mxu3 %v6977_v50  ;;  %v2003_v46 = vpop.f32.mrf.mxu1  ;;  %2065 = vmatpush.bf16.msrb.mxu2 %v4024_v27  ;;  %v4225_v50 = vld [vmem:[#allocation2 + $0x1a4] sm:$0xf0] }
 0x37f   :  { %10175 = vst [vmem:[#allocation59_spill] sm:$0xff] %v6989_v5 }
 0x380   :  { %1953 = vmatmul.bf16.gmra.mxu0 %v6983_v3  ;;  %v4240_v3 = vor.u32 %v4460_v53, %v4237_v54  ;;  %v10187_v53 = vmax.f32 %v10186_v52, 0.0 }
 0x381   :  { %v1825_v35 = vpop.f32.mrf.mxu3  ;;  %2042 = vmatmul.bf16.gmra.mxu1 %v6989_v5  ;;  %2239 = vmatpush.bf16.msra.mxu0 %v4264_v2 }
 0x382   :  { %v1915_v57 = vadd.f32 %v1914_v29, %v1825_v35  ;;  %2066 = vmatmul.bf16.vlgmr.msrb.gmra.mxu2 %v6682_v44  ;;  %v10176_v29 = vld [vmem:[#allocation65_spill] sm:$0xff]  ;;  %v10181_v35 = vld [vmem:[#allocation56_spill] sm:$0xff] }
 0x383   :  { %v10177_v27 = vmax.f32 %v10176_v29, 0.0  ;;  %v10182_v2 = vmax.f32 %v10181_v35, 0.0  ;;  %v4303_v35 = vld [vmem:[#allocation2 + $0x230] sm:$0xf] }
 0x384   :  { %v6994_v47 = vadd.f32 %v2003_v46, %v1915_v57  ;;  %v10178_v46 = vld [vmem:[#allocation26_spill] sm:$0xff]  ;;  %v10183_v57 = vld [vmem:[#allocation67_spill] sm:$0xff] }
 0x385   :  { %v1916_v60 = vpop.f32.mrf.mxu0  ;;  %2240 = vmatpush.bf16.msra.mxu0 %v4252_v19  ;;  %v10179_v8 = vmax.f32 %v10178_v46, 0.0  ;;  %v10184_v44 = vmax.f32 %v10183_v57, 0.0  ;;  %v4457_v19 = vld [vmem:[#allocation2 + $0x19c] sm:$0xf]  ;;  %v4207_v46 = vld [vmem:[#allocation2 + $0x170] sm:$0xf] }
 0x386   :  { %v6997_v58 = vpop.f32.mrf.mxu1  ;;  %v4228_v29 = vor.u32 %v4457_v19, %v4225_v50  ;;  %v4454_v57 = vld [vmem:[#allocation2 + $0x184] sm:$0xf]  ;;  %v4111_v19 = vld [vmem:[#allocation2 + $0xb0] sm:$0xf] }
 0x387   :  { %v7005_v12 = vpack.c.bf16 %v10179_v8, %v10177_v27  ;;  %v7011_v10 = vpack.c.bf16 %v10184_v44, %v10182_v2  ;;  %v4453_v8 = vld [vmem:[#allocation2 + $0x178] sm:$0xf0] }
 0x388   :  { %v4208_v44 = vor.u32 %v4453_v8, %v4207_v46  ;;  %v4477_v2 = vld [vmem:[#allocation2 + $0x238] sm:$0xf0] }
 0x389   :  { %v1827_v13 = vpop.f32.mrf.mxu3  ;;  %10180 = vst [vmem:[#allocation23_spill] sm:$0xff] %v7005_v12  ;;  %2241 = vmatpush.bf16.msra.mxu0 %v4240_v3  ;;  %v4304_v3 = vor.u32 %v4477_v2, %v4303_v35  ;;  %v10191_v35 = vld [vmem:[#allocation40_spill] sm:$0xff] }
 0x38a   :  { %v6999_v5 = vadd.f32 %v1916_v60, %v1827_v13  ;;  %10185 = vst [vmem:[#allocation61_spill] sm:$0xff] %v7011_v10  ;;  %v10188_v60 = vld [vmem:[#allocation58_spill] sm:$0xff]  ;;  %2414 = vmatpush.bf16.msra.mxu2 %v4208_v44  ;;  %v10192_v44 = vmax.f32 %v10191_v35, 0.0 }
 0x38b   :  { %v10189_v54 = vmax.f32 %v10188_v60, 0.0  ;;  %2503 = vmatpush.bf16.msrb.mxu3 %v4304_v3  ;;  %v4429_v60 = vld [vmem:[#allocation2 + $0xb8] sm:$0xf0]  ;;  %v10196_v3 = vld [vmem:[#allocation68_spill] sm:$0xff] }
 0x38d   :  { %v1919_v59 = vpop.f32.mrf.mxu0  ;;  %v7017_v13 = vpack.c.bf16 %v10189_v54, %v10187_v53  ;;  %2242 = vmatpush.bf16.msra.mxu0 %v4228_v29  ;;  %v4216_v53 = vor.u32 %v4454_v57, %v4213_v55  ;;  %v4112_v54 = vor.u32 %v4429_v60, %v4111_v19  ;;  %v10193_v55 = vld [vmem:[#allocation77_spill] sm:$0xff]  ;;  %v10197_v57 = vmax.f32 %v10196_v3, 0.0  ;;  %v10201_v19 = vld [vmem:[#allocation76_spill] sm:$0xff] }
 0x38e   :  { %1869 = vmatmul.bf16.gmra.mxu3 %v7005_v12  ;;  %v2008_v27 = vpop.f32.mrf.mxu1  ;;  %v10202_v60 = vmax.f32 %v10201_v19, 0.0  ;;  %v4450_v19 = vld [vmem:[#allocation2 + $0x160] sm:$0xf0] }
 0x38f   :  { %10190 = vst [vmem:[#allocation27_spill] sm:$0xff] %v7017_v13  ;;  %2325 = vmatpush.bf16.msra.mxu1 %v4112_v54  ;;  %v10203_v54 = vld [vmem:[#allocation79_spill] sm:$0xff] }
 0x390   :  { %1958 = vmatmul.bf16.gmra.mxu0 %v7011_v10 }
 0x391   :  { %v1830_v52 = vpop.f32.mrf.mxu3  ;;  %2047 = vmatmul.bf16.gmra.mxu1 %v7017_v13  ;;  %2243 = vmatpush.bf16.msra.mxu0 %v4216_v53 }
 0x392   :  { %v1920_v50 = vadd.f32 %v1919_v59, %v1830_v52  ;;  %2071 = vmatmul.bf16.gmra.mxu2 %v6703_v40  ;;  %v10194_v59 = vmax.f32 %v10193_v55, 0.0  ;;  %v10204_v40 = vmax.f32 %v10203_v54, 0.0  ;;  %v4474_v54 = vld [vmem:[#allocation2 + $0x220] sm:$0xf0] }
 0x394   :  { %v7022_v12 = vadd.f32 %v2008_v27, %v1920_v50  ;;  %v7033_v2 = vpack.c.bf16 %v10194_v59, %v10192_v44  ;;  %v10198_v27 = vld [vmem:[#allocation78_spill] sm:$0xff]  ;;  %v7045_v13 = vpack.c.bf16 %v10204_v40, %v10202_v60  ;;  %v4291_v60 = vld [vmem:[#allocation2 + $0x218] sm:$0xf] }
 0x395   :  { %v1921_v45 = vpop.f32.mrf.mxu0  ;;  %v10199_v52 = vmax.f32 %v10198_v27, 0.0 }
 0x396   :  { %v7025_v29 = vpop.f32.mrf.mxu1  ;;  %10195 = vst [vmem:[#allocation21_spill] sm:$0xff] %v7033_v2 }
 0x397   :  { %v7039_v50 = vpack.c.bf16 %v10199_v52, %v10197_v57  ;;  %10205 = vst [vmem:[#allocation34_spill] sm:$0xff] %v7045_v13  ;;  %v4195_v52 = vld [vmem:[#allocation2 + $0x158] sm:$0xf] }
 0x399   :  { %v1832_v46 = vpop.f32.mrf.mxu3  ;;  %10200 = vst [vmem:[#allocation31_spill] sm:$0xff] %v7039_v50 }
 0x39a   :  { %v7027_v8 = vadd.f32 %v1921_v45, %v1832_v46 }
 0x39d   :  { %v1924_v53 = vpop.f32.mrf.mxu0 }
 0x39e   :  { %1874 = vmatmul.bf16.gmra.mxu3 %v7033_v2  ;;  %v2013_v45 = vpop.f32.mrf.mxu1 }
 0x3a0   :  { %1963 = vmatmul.bf16.gmra.mxu0 %v7039_v50 }
 0x3a1   :  { %v1835_v46 = vpop.f32.mrf.mxu3  ;;  %2052 = vmatmul.bf16.gmra.mxu1 %v7045_v13  ;;  %v4426_v13 = vld [vmem:[#allocation2 + $0xa0] sm:$0xf0] }
 0x3a2   :  { %v1925_v35 = vadd.f32 %v1924_v53, %v1835_v46  ;;  %2076 = vmatmul.bf16.gmra.mxu2 %v6724_v39  ;;  %v4196_v53 = vor.u32 %v4450_v19, %v4195_v52  ;;  %v4099_v39 = vld [vmem:[#allocation2 + $0x98] sm:$0xf] }
 0x3a4   :  { %v7050_v44 = vadd.f32 %v2013_v45, %v1925_v35  ;;  %v4292_v45 = vor.u32 %v4474_v54, %v4291_v60  ;;  %2415 = vmatpush.bf16.msra.mxu2 %v4196_v53 }
 0x3a5   :  { %v1926_v55 = vpop.f32.mrf.mxu0 }
 0x3a6   :  { %v7053_v59 = vpop.f32.mrf.mxu1  ;;  %2504 = vmatpush.bf16.msrb.mxu3 %v4292_v45  ;;  %v4183_v45 = vld [vmem:[#allocation2 + $0x140] sm:$0xf] }
 0x3a9   :  { %v1837_v3 = vpop.f32.mrf.mxu3 }
 0x3aa   :  { %v7055_v57 = vadd.f32 %v1926_v55, %v1837_v3  ;;  %v4100_v55 = vor.u32 %v4426_v13, %v4099_v39 }
 0x3ac   :  { %2326 = vmatpush.bf16.msra.mxu1 %v4100_v55 }
 0x3ad   :  { %v1929_v40 = vpop.f32.mrf.mxu0 }
 0x3ae   :  { %2155 = vmatmul.bf16.vlgmr.msra.gmra.mxu3 %v6688_v6  ;;  %v2018_v27 = vpop.f32.mrf.mxu1 }
 0x3b0   :  { %2244 = vmatmul.bf16.vlgmr.msra.gmra.mxu0 %v6694_v23 }
 0x3b1   :  { %v1840_v46 = vpop.f32.mrf.mxu3 }
 0x3b2   :  { %v1930_v35 = vadd.f32 %v1929_v40, %v1840_v46  ;;  %2081 = vmatmul.bf16.gmra.mxu2 %v6745_v20  ;;  %v4447_v46 = vld [vmem:[#allocation2 + $0x148] sm:$0xf0] }
 0x3b3   :  { %v4184_v55 = vor.u32 %v4447_v46, %v4183_v45  ;;  %v4423_v20 = vld [vmem:[#allocation2 + $0x88] sm:$0xf0]  ;;  %v2594_v45 = vadd.f32 %v6881_v9, %v6867_v34 }
 0x3b4   :  { %v7059_v3 = vadd.f32 %v2018_v27, %v1930_v35  ;;  %v4279_v35 = vld [vmem:[#allocation2 + $0x200] sm:$0xf] }
 0x3b5   :  { %v1931_v50 = vpop.f32.mrf.mxu0  ;;  %2416 = vmatpush.bf16.msra.mxu2 %v4184_v55 }
 0x3b6   :  { %v7062_v6 = vpop.f32.mrf.mxu1 }
 0x3b9   :  { %v1842_v10 = vpop.f32.mrf.mxu3 }
 0x3ba   :  { %v7064_v23 = vadd.f32 %v1931_v50, %v1842_v10 }
 0x3bd   :  { %v1934_v52 = vpop.f32.mrf.mxu0 }
 0x3be   :  { %2160 = vmatmul.bf16.gmra.mxu3 %v6709_v63  ;;  %v2023_v19 = vpop.f32.mrf.mxu1 }
 0x3c0   :  { %2249 = vmatmul.bf16.gmra.mxu0 %v6715_v36 }
 0x3c1   :  { %v1845_v40 = vpop.f32.mrf.mxu3 }
 0x3c2   :  { %v1935_v60 = vadd.f32 %v1934_v52, %v1845_v40  ;;  %2086 = vmatmul.bf16.gmra.mxu2 %v6766_v51  ;;  %v4471_v52 = vld [vmem:[#allocation2 + $0x208] sm:$0xf0]  ;;  %v4087_v51 = vld [vmem:[#allocation2 + $0x80] sm:$0xf] }
 0x3c4   :  { %v7068_v39 = vadd.f32 %v2023_v19, %v1935_v60  ;;  %v4280_v19 = vor.u32 %v4471_v52, %v4279_v35  ;;  %v2595_v35 = vadd.f32 %v2594_v45, %v6892_v48 }
 0x3c5   :  { %v1936_v13 = vpop.f32.mrf.mxu0 }
 0x3c6   :  { %v7071_v27 = vpop.f32.mrf.mxu1  ;;  %2505 = vmatpush.bf16.msrb.mxu3 %v4280_v19  ;;  %v2596_v55 = vadd.f32 %v2595_v35, %v6906_v41 }
 0x3c9   :  { %v1847_v53 = vpop.f32.mrf.mxu3 }
 0x3ca   :  { %v7073_v54 = vadd.f32 %v1936_v13, %v1847_v53  ;;  %v4088_v13 = vor.u32 %v4423_v20, %v4087_v51  ;;  %v2597_v51 = vadd.f32 %v2596_v55, %v6917_v42 }
 0x3cc   :  { %2327 = vmatpush.bf16.msra.mxu1 %v4088_v13  ;;  %v2598_v52 = vadd.f32 %v2597_v51, %v6931_v18  ;;  %v7097_v13 = vadd.f32 %v6969_v31, %v6971_v25  ;;  %v7109_v31 = vadd.f32 %v7025_v29, %v7027_v8  ;;  %v7117_v29 = vadd.f32 %v7053_v59, %v7055_v57 }
 0x3cd   :  { %v1939_v10 = vpop.f32.mrf.mxu0 }
 0x3ce   :  { %2165 = vmatmul.bf16.gmra.mxu3 %v6730_v56  ;;  %v2028_v50 = vpop.f32.mrf.mxu1 }
 0x3d0   :  { %2254 = vmatmul.bf16.gmra.mxu0 %v6736_v37 }
 0x3d1   :  { %v1850_v40 = vpop.f32.mrf.mxu3 }
 0x3d2   :  { %v1940_v60 = vadd.f32 %v1939_v10, %v1850_v40  ;;  %2091 = vmatmul.bf16.gmra.mxu2 %v6787_v1  ;;  %v2599_v40 = vadd.f32 %v2598_v52, %v6942_v43  ;;  %v4420_v1 = vld [vmem:[#allocation2 + $0x70] sm:$0xf0] }
 0x3d4   :  { %v7077_v53 = vadd.f32 %v2028_v50, %v1940_v60 }
 0x3d5   :  { %v1941_v36 = vpop.f32.mrf.mxu0 }
 0x3d6   :  { %v7080_v56 = vpop.f32.mrf.mxu1 }
 0x3d9   :  { %v1852_v63 = vpop.f32.mrf.mxu3 }
 0x3da   :  { %v1942_v46 = vadd.f32 %v1941_v36, %v1852_v63  ;;  %v2600_v36 = vadd.f32 %v2599_v40, %v6956_v49  ;;  %v4171_v40 = vld [vmem:[#allocation2 + $0x128] sm:$0xf] }
 0x3dc   :  { %v2601_v35 = vadd.f32 %v2600_v36, %v6967_v32  ;;  %v4444_v36 = vld [vmem:[#allocation2 + $0x130] sm:$0xf0] }
 0x3dd   :  { %v1944_v10 = vpop.f32.mrf.mxu0 }
 0x3de   :  { %2170 = vmatmul.bf16.gmra.mxu3 %v6751_v30  ;;  %v2033_v20 = vpop.f32.mrf.mxu1  ;;  %v2602_v51 = vadd.f32 %v2601_v35, %v7097_v13  ;;  %v4267_v35 = vld [vmem:[#allocation2 + $0x1e8] sm:$0xf] }
 0x3e0   :  { %2259 = vmatmul.bf16.gmra.mxu0 %v6757_v28 }
 0x3e1   :  { %v1855_v50 = vpop.f32.mrf.mxu3 }
 0x3e2   :  { %v1945_v19 = vadd.f32 %v1944_v10, %v1855_v50  ;;  %2096 = vmatmul.bf16.gmra.mxu2 %v6808_v15  ;;  %v7103_v10 = vadd.f32 %v6997_v58, %v6999_v5  ;;  %v2603_v50 = vadd.f32 %v2602_v51, %v6994_v47  ;;  %v4172_v5 = vor.u32 %v4444_v36, %v4171_v40  ;;  %v4468_v58 = vld [vmem:[#allocation2 + $0x1f0] sm:$0xf0]  ;;  %v4075_v15 = vld [vmem:[#allocation2 + $0x68] sm:$0xf] }
 0x3e3   :  { %v4076_v28 = vor.u32 %v4420_v1, %v4075_v15  ;;  %v7132_v15 = vadd.f32 %v7071_v27, %v7073_v54 }
 0x3e4   :  { %v7091_v60 = vadd.f32 %v2033_v20, %v1945_v19  ;;  %v2604_v19 = vadd.f32 %v2603_v50, %v7103_v10  ;;  %2417 = vmatpush.bf16.msra.mxu2 %v4172_v5 }
 0x3e5   :  { %v1946_v63 = vpop.f32.mrf.mxu0  ;;  %2328 = vmatpush.bf16.msra.mxu1 %v4076_v28 }
 0x3e6   :  { %v2035_v45 = vpop.f32.mrf.mxu1 }
 0x3e9   :  { %v1857_v55 = vpop.f32.mrf.mxu3 }
 0x3ea   :  { %v1947_v20 = vadd.f32 %v1946_v63, %v1857_v55  ;;  %v2605_v63 = vadd.f32 %v2604_v19, %v7022_v12  ;;  %v4268_v55 = vor.u32 %v4468_v58, %v4267_v35  ;;  %v7126_v35 = vadd.f32 %v7062_v6, %v7064_v23 }
 0x3eb   :  { %v7137_v58 = vadd.f32 %v7080_v56, %v1942_v46 }
 0x3ec   :  { %v2606_v50 = vadd.f32 %v2605_v63, %v7109_v31  ;;  %2506 = vmatpush.bf16.msrb.mxu3 %v4268_v55  ;;  %v7143_v54 = vadd.f32 %v2035_v45, %v1947_v20 }
 0x3ed   :  { %v1949_v52 = vpop.f32.mrf.mxu0 }
 0x3ee   :  { %2175 = vmatmul.bf16.gmra.mxu3 %v6772_v0  ;;  %v2038_v25 = vpop.f32.mrf.mxu1 }
 0x3f0   :  { %2264 = vmatmul.bf16.gmra.mxu0 %v6778_v17  ;;  %v2607_v17 = vadd.f32 %v2606_v50, %v7050_v44 }
 0x3f1   :  { %v1860_v51 = vpop.f32.mrf.mxu3 }
 0x3f2   :  { %v1950_v8 = vadd.f32 %v1949_v52, %v1860_v51  ;;  %2101 = vmatmul.bf16.gmra.mxu2 %v6829_v26  ;;  %v2608_v19 = vadd.f32 %v2607_v17, %v7117_v29  ;;  %v10207_v26 = vld [vmem:[#allocation44_spill] sm:$0xff] }
 0x3f4   :  { %v7120_v40 = vadd.f32 %v2038_v25, %v1950_v8  ;;  %v2609_v57 = vadd.f32 %v2608_v19, %v7059_v3 }
 0x3f5   :  { %v1951_v36 = vpop.f32.mrf.mxu0 }
 0x3f6   :  { %v2040_v59 = vpop.f32.mrf.mxu1  ;;  %v2610_v1 = vadd.f32 %v2609_v57, %v7126_v35 }
 0x3f8   :  { %v2611_v28 = vadd.f32 %v2610_v1, %v7068_v39 }
 0x3f9   :  { %v1862_v52 = vpop.f32.mrf.mxu3 }
 0x3fa   :  { %v1952_v25 = vadd.f32 %v1951_v36, %v1862_v52  ;;  %v2612_v17 = vadd.f32 %v2611_v28, %v7132_v15 }
 0x3fc   :  { %v2613_v23 = vadd.f32 %v2612_v17, %v7077_v53  ;;  %v7150_v46 = vadd.f32 %v2040_v59, %v1952_v25 }
 0x3fd   :  { %v1954_v5 = vpop.f32.mrf.mxu0 }
 0x3fe   :  { %2180 = vmatmul.bf16.gmra.mxu3 %v6793_v22  ;;  %v2043_v6 = vpop.f32.mrf.mxu1  ;;  %v2614_v27 = vadd.f32 %v2613_v23, %v7137_v58 }
 0x400   :  { %2269 = vmatmul.bf16.gmra.mxu0 %v6799_v7  ;;  %v2615_v51 = vadd.f32 %v2614_v27, %v7091_v60 }
 0x401   :  { %v1865_v63 = vpop.f32.mrf.mxu3 }
 0x402   :  { %v1955_v55 = vadd.f32 %v1954_v5, %v1865_v63  ;;  %2106 = vmatmul.bf16.gmra.mxu2 %v6850_v21  ;;  %v2616_v56 = vadd.f32 %v2615_v51, %v7143_v54 }
 0x404   :  { %v7146_v50 = vadd.f32 %v2043_v6, %v1955_v55  ;;  %v2617_v19 = vadd.f32 %v2616_v56, %v7120_v40 }
 0x405   :  { %v1956_v8 = vpop.f32.mrf.mxu0  ;;  %v2067_v25 = vpop.f32.mrf.mxu2 }
 0x406   :  { %v2045_v36 = vpop.f32.mrf.mxu1  ;;  %v2618_v52 = vadd.f32 %v2617_v19, %v7150_v46 }
 0x408   :  { %v2619_v20 = vadd.f32 %v2618_v52, %v7146_v50 }
 0x409   :  { %v1867_v57 = vpop.f32.mrf.mxu3 }
 0x40a   :  { %v1957_v45 = vadd.f32 %v1956_v8, %v1867_v57 }
 0x40c   :  { %v2046_v1 = vadd.f32 %v2045_v36, %v1957_v45 }
 0x40d   :  { %v1959_v28 = vpop.f32.mrf.mxu0  ;;  %v2069_v19 = vpop.f32.mrf.mxu2 }
 0x40e   :  { %v2620_v5 = vadd.f32 %v2619_v20, %v2046_v1  ;;  %2185 = vmatmul.bf16.gmra.mxu3 %v6814_v14  ;;  %v2048_v17 = vpop.f32.mrf.mxu1 }
 0x410   :  { %2274 = vmatmul.bf16.gmra.mxu0 %v6820_v4  ;;  %v10206_v4 = vld [vmem:[#allocation35_spill] sm:$0xff] }
 0x411   :  { %v1870_v6 = vpop.f32.mrf.mxu3 }
 0x412   :  { %v1960_v59 = vadd.f32 %v1959_v28, %v1870_v6  ;;  %2111 = vmatmul.bf16.gmra.mxu2 %v6873_v38 }
 0x414   :  { %v2049_v23 = vadd.f32 %v2048_v17, %v1960_v59 }
 0x415   :  { %v1961_v63 = vpop.f32.mrf.mxu0  ;;  %v2072_v6 = vpop.f32.mrf.mxu2 }
 0x416   :  { %v2621_v27 = vadd.f32 %v2620_v5, %v2049_v23  ;;  %v2050_v55 = vpop.f32.mrf.mxu1 }
 0x419   :  { %v1872_v51 = vpop.f32.mrf.mxu3 }
 0x41a   :  { %v1962_v8 = vadd.f32 %v1961_v63, %v1872_v51 }
 0x41c   :  { %v2051_v56 = vadd.f32 %v2050_v55, %v1962_v8 }
 0x41d   :  { %v1964_v36 = vpop.f32.mrf.mxu0 }
 0x41e   :  { %v2622_v57 = vadd.f32 %v2621_v27, %v2051_v56  ;;  %2190 = vmatmul.bf16.gmra.mxu3 %v6835_v16  ;;  %v2053_v52 = vpop.f32.mrf.mxu1  ;;  %v2074_v27 = vpop.f32.mrf.mxu2 }
 0x420   :  { %2279 = vmatmul.bf16.gmra.mxu0 %v6841_v11 }
 0x421   :  { %v1875_v45 = vpop.f32.mrf.mxu3 }
 0x422   :  { %v1965_v20 = vadd.f32 %v1964_v36, %v1875_v45  ;;  %2116 = vmatmul.bf16.gmra.mxu2 %v6898_v62 }
 0x424   :  { %v2054_v28 = vadd.f32 %v2053_v52, %v1965_v20 }
 0x425   :  { %v1966_v17 = vpop.f32.mrf.mxu0 }
 0x426   :  { %v2623_v5 = vadd.f32 %v2622_v57, %v2054_v28  ;;  %v2055_v38 = vpop.f32.mrf.mxu1 }
 0x429   :  { %v1877_v59 = vpop.f32.mrf.mxu3 }
 0x42a   :  { %v1967_v63 = vadd.f32 %v1966_v17, %v1877_v59  ;;  %v2077_v17 = vpop.f32.mrf.mxu2 }
 0x42c   :  { %v2056_v55 = vadd.f32 %v2055_v38, %v1967_v63 }
 0x42d   :  { %v2245_v51 = vpop.f32.mrf.mxu0 }
 0x42e   :  { %v2624_v8 = vadd.f32 %v2623_v5, %v2056_v55  ;;  %2195 = vmatmul.bf16.gmra.mxu3 %v6856_v33 }
 0x430   :  { %2284 = vmatmul.bf16.gmra.mxu0 %v6862_v24  ;;  %v2625_v11 = vrot.slane %v2624_v8, 4 }
 0x431   :  { %v2156_v21 = vpop.f32.mrf.mxu3 }
 0x432   :  { %v2626_v36 = vadd.f32 %v2625_v11, %v2624_v8  ;;  %v2157_v52 = vadd.f32 %v2156_v21, %v2067_v25  ;;  %2121 = vmatmul.bf16.gmra.mxu2 %v6923_v61  ;;  %v2079_v11 = vpop.f32.mrf.mxu2  ;;  %v10220_v61 = vld [vmem:[#allocation63_spill] sm:$0xff] }
 0x434   :  { %v2627_v45 = vrot.slane %v2626_v36, 2  ;;  %v7163_v20 = vadd.f32 %v2245_v51, %v2157_v52 }
 0x435   :  { %v2247_v62 = vpop.f32.mrf.mxu0 }
 0x436   :  { %v2628_v57 = vadd.f32 %v2627_v45, %v2626_v36 }
 0x438   :  { %v2629_v38 = vrot.slane %v2628_v57, 1 }
 0x439   :  { %v2158_v59 = vpop.f32.mrf.mxu3 }
 0x43a   :  { %v2159_v5 = vadd.f32 %v2158_v59, %v2069_v19  ;;  %v2630_v63 = vadd.f32 %v2629_v38, %v2628_v57  ;;  %v10214_v57 = vld [vmem:[#allocation52_spill] sm:$0xff] }
 0x43c   :  { %v7166_v33 = vadd.f32 %v2247_v62, %v2159_v5  ;;  %v7170_v21 = vmul.f32 0.00390625, %v2630_v63 }
 0x43d   :  { %v2250_v24 = vpop.f32.mrf.mxu0 }
 0x43e   :  { %2200 = vmatmul.bf16.gmra.mxu3 %v10206_v4  ;;  %v7174_v51 = vsub.f32 %v7146_v50, %v7170_v21  ;;  %v7177_v8 = vsub.f32 %v2046_v1, %v7170_v21  ;;  %v7180_v62 = vsub.f32 %v2049_v23, %v7170_v21  ;;  %v7183_v36 = vsub.f32 %v2051_v56, %v7170_v21  ;;  %v2082_v23 = vpop.f32.mrf.mxu2 }
 0x43f   :  { %v7186_v52 = vsub.f32 %v2054_v28, %v7170_v21  ;;  %v7189_v45 = vsub.f32 %v2056_v55, %v7170_v21  ;;  %v7194_v50 = vsub.f32 %v6867_v34, %v7170_v21  ;;  %v7198_v1 = vsub.f32 %v6881_v9, %v7170_v21 }
 0x440   :  { %2289 = vmatmul.bf16.gmra.mxu0 %v10207_v26  ;;  %10208 = vst [vmem:[#allocation53_spill] sm:$0xff] %v7174_v51  ;;  %v7202_v56 = vsub.f32 %v6892_v48, %v7170_v21  ;;  %v7210_v34 = vsub.f32 %v6906_v41, %v7170_v21  ;;  %v7214_v9 = vsub.f32 %v6917_v42, %v7170_v21 }
 0x441   :  { %v2161_v25 = vpop.f32.mrf.mxu3  ;;  %10209 = vst [vmem:[#allocation51_spill] sm:$0xff] %v7177_v8  ;;  %v2804_v28 = vmul.f32 %v7194_v50, %v7194_v50  ;;  %v2807_v55 = vmul.f32 %v7198_v1, %v7198_v1 }
 0x442   :  { %10210 = vst [vmem:[#allocation14_spill] sm:$0xff] %v7180_v62  ;;  %2126 = vmatmul.bf16.gmra.mxu2 %v10214_v57  ;;  %v2810_v5 = vmul.f32 %v7202_v56, %v7202_v56  ;;  %v2162_v63 = vadd.f32 %v2161_v25, %v2072_v6  ;;  %v2813_v42 = vmul.f32 %v7210_v34, %v7210_v34 }
 0x443   :  { %10211 = vst [vmem:[#allocation37_spill] sm:$0xff] %v7183_v36  ;;  %v2900_v48 = vadd.f32 %v2807_v55, %v2804_v28  ;;  %v7240_v28 = vsub.f32 %v6956_v49, %v7170_v21  ;;  %v7257_v49 = vsub.f32 %v7097_v13, %v7170_v21 }
 0x444   :  { %10212 = vst [vmem:[#allocation17_spill] sm:$0xff] %v7186_v52  ;;  %v7228_v4 = vadd.f32 %v2250_v24, %v2162_v63 }
 0x445   :  { %v2252_v19 = vpop.f32.mrf.mxu0  ;;  %10213 = vst [vmem:[#allocation20_spill] sm:$0xff] %v7189_v45  ;;  %v2901_v26 = vadd.f32 %v2900_v48, %v2810_v5  ;;  %v10225_v5 = vld [vmem:[#allocation50_spill] sm:$0xff]  ;;  %v2831_v13 = vmul.f32 %v7257_v49, %v7257_v49 }
 0x446   :  { %10215 = vst [vmem:[#allocation12_spill] sm:$0xff] %v7194_v50  ;;  %v10222_v50 = vld [vmem:[#allocation38_spill] sm:$0xff]  ;;  %v7224_v41 = vpop.f32.mrf.mxu2 }
 0x447   :  { %10216 = vst [vmem:[#allocation64_spill] sm:$0xff] %v7198_v1  ;;  %v7221_v1 = vsub.f32 %v6931_v18, %v7170_v21  ;;  %v2816_v18 = vmul.f32 %v7214_v9, %v7214_v9  ;;  %v2902_v25 = vadd.f32 %v2901_v26, %v2813_v42 }
 0x448   :  { %10217 = vst [vmem:[#allocation15_spill] sm:$0xff] %v7202_v56 }
 0x449   :  { %v2163_v38 = vpop.f32.mrf.mxu3  ;;  %10218 = vst [vmem:[#allocation47_spill] sm:$0xff] %v7210_v34  ;;  %v2819_v24 = vmul.f32 %v7221_v1, %v7221_v1  ;;  %v2903_v55 = vadd.f32 %v2902_v25, %v2816_v18 }
 0x44a   :  { %10219 = vst [vmem:[#allocation55_spill] sm:$0xff] %v7214_v9  ;;  %v2164_v57 = vadd.f32 %v2163_v38, %v2074_v27  ;;  %v7234_v27 = vsub.f32 %v6942_v43, %v7170_v21  ;;  %v7249_v43 = vsub.f32 %v6967_v32, %v7170_v21 }
 0x44b   :  { %10221 = vst [vmem:[#allocation22_spill] sm:$0xff] %v7221_v1  ;;  %v10266_v1 = vld [vmem:[#allocation29_spill] sm:$0xff] }
 0x44c   :  { %v7230_v56 = vadd.f32 %v2252_v19, %v2164_v57  ;;  %10223 = vst [vmem:[#allocation39_spill] sm:$0xff] %v7234_v27  ;;  %v2822_v26 = vmul.f32 %v7234_v27, %v7234_v27  ;;  %v2828_v32 = vmul.f32 %v7249_v43, %v7249_v43 }
 0x44d   :  { %v2255_v59 = vpop.f32.mrf.mxu0  ;;  %10224 = vst [vmem:[#allocation36_spill] sm:$0xff] %v7240_v28 }
 0x44e   :  { %2205 = vmatmul.bf16.gmra.mxu3 %v10220_v61  ;;  %10226 = vst [vmem:[#allocation24_spill] sm:$0xff] %v7249_v43  ;;  %v7253_v48 = vpop.f32.mrf.mxu2  ;;  %v10261_v43 = vld [vmem:[#allocation13_spill] sm:$0xff] }
 0x44f   :  { %10227 = vst [vmem:[#allocation65_spill] sm:$0xff] %v7257_v49 }
 0x450   :  { %2294 = vmatmul.bf16.gmra.mxu0 %v10222_v50 }
 0x451   :  { %v2166_v6 = vpop.f32.mrf.mxu3 }
 0x452   :  { %v2167_v38 = vadd.f32 %v2166_v6, %v2077_v17  ;;  %2131 = vmatmul.bf16.gmra.mxu2 %v10225_v5  ;;  %v2904_v17 = vadd.f32 %v2903_v55, %v2819_v24  ;;  %v7263_v6 = vsub.f32 %v6994_v47, %v7170_v21  ;;  %v7277_v47 = vsub.f32 %v7022_v12, %v7170_v21 }
 0x453   :  { %v7291_v12 = vsub.f32 %v7050_v44, %v7170_v21  ;;  %v7306_v44 = vsub.f32 %v7059_v3, %v7170_v21 }
 0x454   :  { %v7244_v19 = vadd.f32 %v2255_v59, %v2167_v38  ;;  %v2825_v59 = vmul.f32 %v7240_v28, %v7240_v28  ;;  %v2905_v63 = vadd.f32 %v2904_v17, %v2822_v26  ;;  %10228 = vst [vmem:[#allocation26_spill] sm:$0xff] %v7263_v6  ;;  %v7269_v38 = vsub.f32 %v7103_v10, %v7170_v21 }
 0x455   :  { %v2257_v57 = vpop.f32.mrf.mxu0  ;;  %10230 = vst [vmem:[#allocation67_spill] sm:$0xff] %v7277_v47  ;;  %v2834_v17 = vmul.f32 %v7263_v6, %v7263_v6  ;;  %v7297_v6 = vsub.f32 %v7117_v29, %v7170_v21  ;;  %v7314_v29 = vsub.f32 %v7126_v35, %v7170_v21  ;;  %v2852_v3 = vmul.f32 %v7306_v44, %v7306_v44 }
 0x456   :  { %v2906_v18 = vadd.f32 %v2905_v63, %v2825_v59  ;;  %10229 = vst [vmem:[#allocation56_spill] sm:$0xff] %v7269_v38  ;;  %v10232_v63 = vld [vmem:[#allocation41_spill] sm:$0xff]  ;;  %v2089_v10 = vpop.f32.mrf.mxu2 }
 0x457   :  { %10234 = vst [vmem:[#allocation58_spill] sm:$0xff] %v7291_v12  ;;  %v2855_v35 = vmul.f32 %v7314_v29, %v7314_v29 }
 0x458   :  { %v2907_v24 = vadd.f32 %v2906_v18, %v2828_v32  ;;  %10235 = vst [vmem:[#allocation40_spill] sm:$0xff] %v7297_v6 }
 0x459   :  { %v2168_v42 = vpop.f32.mrf.mxu3  ;;  %10237 = vst [vmem:[#allocation77_spill] sm:$0xff] %v7306_v44  ;;  %v4417_v44 = vld [vmem:[#allocation2 + $0x58] sm:$0xf0] }
 0x45a   :  { %v2169_v25 = vadd.f32 %v2168_v42, %v2079_v11  ;;  %v2908_v59 = vadd.f32 %v2907_v24, %v2831_v13  ;;  %v10231_v11 = vld [vmem:[#allocation75_spill] sm:$0xff]  ;;  %v7285_v42 = vsub.f32 %v7109_v31, %v7170_v21  ;;  %10238 = vst [vmem:[#allocation68_spill] sm:$0xff] %v7314_v29  ;;  %v7358_v29 = vsub.f32 %v7143_v54, %v7170_v21 }
 0x45b   :  { %v7375_v54 = vsub.f32 %v7150_v46, %v7170_v21  ;;  %v2882_v46 = vmul.f32 %v7174_v51, %v7174_v51 }
 0x45c   :  { %v7273_v55 = vadd.f32 %v2257_v57, %v2169_v25  ;;  %10233 = vst [vmem:[#allocation66_spill] sm:$0xff] %v7285_v42  ;;  %v2837_v57 = vmul.f32 %v7269_v38, %v7269_v38  ;;  %v2909_v32 = vadd.f32 %v2908_v59, %v2834_v17  ;;  %v2840_v25 = vmul.f32 %v7277_v47, %v7277_v47  ;;  %v10236_v59 = vld [vmem:[#allocation23_spill] sm:$0xff] }
 0x45d   :  { %v2260_v26 = vpop.f32.mrf.mxu0  ;;  %v2843_v31 = vmul.f32 %v7285_v42, %v7285_v42  ;;  %10246 = vst [vmem:[#allocation50_spill] sm:$0xff] %v7358_v29  ;;  %v10253_v42 = vld [vmem:[#allocation71_spill] sm:$0xff] }
 0x45e   :  { %2210 = vmatmul.bf16.gmra.mxu3 %v10231_v11  ;;  %v2910_v13 = vadd.f32 %v2909_v32, %v2837_v57  ;;  %v7310_v32 = vpop.f32.mrf.mxu2  ;;  %10248 = vst [vmem:[#allocation41_spill] sm:$0xff] %v7375_v54 }
 0x460   :  { %2299 = vmatmul.bf16.gmra.mxu0 %v10232_v63  ;;  %v2911_v49 = vadd.f32 %v2910_v13, %v2840_v25  ;;  %v7320_v13 = vsub.f32 %v7068_v39, %v7170_v21  ;;  %v7335_v39 = vsub.f32 %v7077_v53, %v7170_v21 }
 0x461   :  { %v2171_v18 = vpop.f32.mrf.mxu3 }
 0x462   :  { %v2172_v24 = vadd.f32 %v2171_v18, %v2082_v23  ;;  %2136 = vmatmul.bf16.gmra.mxu2 %v10236_v59  ;;  %v2846_v23 = vmul.f32 %v7291_v12, %v7291_v12  ;;  %v2912_v57 = vadd.f32 %v2911_v49, %v2843_v31  ;;  %10239 = vst [vmem:[#allocation78_spill] sm:$0xff] %v7320_v13 }
 0x463   :  { %v7327_v31 = vsub.f32 %v7132_v15, %v7170_v21  ;;  %10241 = vst [vmem:[#allocation79_spill] sm:$0xff] %v7335_v39 }
 0x464   :  { %v7301_v38 = vadd.f32 %v2260_v26, %v2172_v24  ;;  %v2849_v26 = vmul.f32 %v7297_v6, %v7297_v6  ;;  %v2913_v18 = vadd.f32 %v2912_v57, %v2846_v23 }
 0x465   :  { %v2262_v17 = vpop.f32.mrf.mxu0  ;;  %10240 = vst [vmem:[#allocation76_spill] sm:$0xff] %v7327_v31 }
 0x466   :  { %v2914_v24 = vadd.f32 %v2913_v18, %v2849_v26  ;;  %v2858_v26 = vmul.f32 %v7320_v13, %v7320_v13  ;;  %v7341_v15 = vpop.f32.mrf.mxu2 }
 0x468   :  { %v2915_v6 = vadd.f32 %v2914_v24, %v2852_v3  ;;  %v7345_v3 = vsub.f32 %v7137_v58, %v7170_v21 }
 0x469   :  { %v2173_v25 = vpop.f32.mrf.mxu3 }
 0x46a   :  { %v2174_v49 = vadd.f32 %v2173_v25, %v7224_v41  ;;  %v2916_v18 = vadd.f32 %v2915_v6, %v2855_v35  ;;  %v10242_v41 = vld [vmem:[#allocation49_spill] sm:$0xff]  ;;  %v10243_v25 = vld [vmem:[#allocation54_spill] sm:$0xff]  ;;  %10244 = vst [vmem:[#allocation63_spill] sm:$0xff] %v7345_v3  ;;  %v2864_v6 = vmul.f32 %v7335_v39, %v7335_v39  ;;  %v2867_v58 = vmul.f32 %v7345_v3, %v7345_v3 }
 0x46b   :  { %v10249_v39 = vld [vmem:[#allocation57_spill] sm:$0xff] }
 0x46c   :  { %v7331_v23 = vadd.f32 %v2262_v17, %v2174_v49  ;;  %v2861_v17 = vmul.f32 %v7327_v31, %v7327_v31  ;;  %v2917_v24 = vadd.f32 %v2916_v18, %v2858_v26  ;;  %v7351_v49 = vsub.f32 %v7091_v60, %v7170_v21 }
 0x46d   :  { %v2265_v57 = vpop.f32.mrf.mxu0  ;;  %v7367_v60 = vsub.f32 %v7120_v40, %v7170_v21 }
 0x46e   :  { %2215 = vmatmul.bf16.gmra.mxu3 %v10242_v41  ;;  %10245 = vst [vmem:[#allocation38_spill] sm:$0xff] %v7351_v49  ;;  %v2918_v35 = vadd.f32 %v2917_v24, %v2861_v17  ;;  %v7371_v24 = vpop.f32.mrf.mxu2 }
 0x46f   :  { %10247 = vst [vmem:[#allocation75_spill] sm:$0xff] %v7367_v60 }
 0x470   :  { %2304 = vmatmul.bf16.gmra.mxu0 %v10243_v25  ;;  %v2919_v31 = vadd.f32 %v2918_v35, %v2864_v6  ;;  %v2876_v6 = vmul.f32 %v7367_v60, %v7367_v60 }
 0x471   :  { %v2176_v53 = vpop.f32.mrf.mxu3 }
 0x472   :  { %v2177_v13 = vadd.f32 %v2176_v53, %v7253_v48  ;;  %2141 = vmatmul.bf16.gmra.mxu2 %v7033_v2  ;;  %v2870_v48 = vmul.f32 %v7351_v49, %v7351_v49  ;;  %v2920_v17 = vadd.f32 %v2919_v31, %v2867_v58  ;;  %v2879_v49 = vmul.f32 %v7375_v54, %v7375_v54  ;;  %v4063_v54 = vld [vmem:[#allocation2 + $0x50] sm:$0xf]  ;;  %v10273_v2 = vld [vmem:[#allocation32_spill] sm:$0xff] }
 0x474   :  { %v7362_v26 = vadd.f32 %v2265_v57, %v2177_v13  ;;  %v2873_v13 = vmul.f32 %v7358_v29, %v7358_v29  ;;  %v2921_v57 = vadd.f32 %v2920_v17, %v2870_v48  ;;  %v4159_v48 = vld [vmem:[#allocation2 + $0x110] sm:$0xf]  ;;  %v4441_v17 = vld [vmem:[#allocation2 + $0x118] sm:$0xf0] }
 0x475   :  { %v2267_v18 = vpop.f32.mrf.mxu0  ;;  %v10250_v29 = vld [vmem:[#allocation59_spill] sm:$0xff] }
 0x476   :  { %v2922_v40 = vadd.f32 %v2921_v57, %v2873_v13  ;;  %v7389_v60 = vpop.f32.mrf.mxu2  ;;  %v4160_v57 = vor.u32 %v4441_v17, %v4159_v48  ;;  %v4064_v48 = vor.u32 %v4417_v44, %v4063_v54  ;;  %v4147_v17 = vld [vmem:[#allocation2 + $0xf8] sm:$0xf] }
 0x478   :  { %v2923_v31 = vadd.f32 %v2922_v40, %v2876_v6  ;;  %2418 = vmatpush.bf16.msra.mxu2 %v4160_v57  ;;  %v2891_v40 = vmul.f32 %v7183_v36, %v7183_v36  ;;  %2329 = vmatpush.bf16.msra.mxu1 %v4064_v48 }
 0x479   :  { %v2178_v53 = vpop.f32.mrf.mxu3 }
 0x47a   :  { %v2179_v35 = vadd.f32 %v2178_v53, %v2089_v10  ;;  %v2924_v21 = vadd.f32 %v2923_v31, %v2879_v49  ;;  %v2885_v10 = vmul.f32 %v7177_v8, %v7177_v8  ;;  %v2888_v53 = vmul.f32 %v7180_v62, %v7180_v62  ;;  %v4438_v62 = vld [vmem:[#allocation2 + $0x100] sm:$0xf0]  ;;  %v4027_v8 = vld [vmem:[#allocation2 + $0x8] sm:$0xf] }
 0x47c   :  { %v7383_v58 = vadd.f32 %v2267_v18, %v2179_v35  ;;  %v2925_v13 = vadd.f32 %v2924_v21, %v2882_v46  ;;  %v2894_v46 = vmul.f32 %v7186_v52, %v7186_v52  ;;  %v4135_v52 = vld [vmem:[#allocation2 + $0xe0] sm:$0xf] }
 0x47d   :  { %v2270_v3 = vpop.f32.mrf.mxu0 }
 0x47e   :  { %2220 = vmatmul.bf16.gmra.mxu3 %v10249_v39  ;;  %v2926_v6 = vadd.f32 %v2925_v13, %v2885_v10  ;;  %v4148_v10 = vor.u32 %v4438_v62, %v4147_v17  ;;  %v7402_v13 = vpop.f32.mrf.mxu2  ;;  %v4051_v62 = vld [vmem:[#allocation2 + $0x38] sm:$0xf] }
 0x480   :  { %2309 = vmatmul.bf16.gmra.mxu0 %v10250_v29  ;;  %v2927_v35 = vadd.f32 %v2926_v6, %v2888_v53  ;;  %2419 = vmatpush.bf16.msra.mxu2 %v4148_v10  ;;  %v4231_v10 = vld [vmem:[#allocation2 + $0x1a0] sm:$0xf] }
 0x481   :  { %v2181_v18 = vpop.f32.mrf.mxu3 }
 0x482   :  { %v2182_v49 = vadd.f32 %v2181_v18, %v7310_v32  ;;  %v2928_v21 = vadd.f32 %v2927_v35, %v2891_v40  ;;  %v2897_v32 = vmul.f32 %v7189_v45, %v7189_v45  ;;  %v4465_v18 = vld [vmem:[#allocation2 + $0x1d8] sm:$0xf0]  ;;  %v4435_v40 = vld [vmem:[#allocation2 + $0xe8] sm:$0xf0]  ;;  %v4414_v35 = vld [vmem:[#allocation2 + $0x40] sm:$0xf0] }
 0x483   :  { %v4136_v54 = vor.u32 %v4435_v40, %v4135_v52  ;;  %v4052_v48 = vor.u32 %v4414_v35, %v4051_v62  ;;  %v4123_v52 = vld [vmem:[#allocation2 + $0xc8] sm:$0xf] }
 0x484   :  { %v7398_v31 = vadd.f32 %v2270_v3, %v2182_v49  ;;  %v2929_v57 = vadd.f32 %v2928_v21, %v2894_v46  ;;  %v4255_v3 = vld [vmem:[#allocation2 + $0x1d0] sm:$0xf]  ;;  %v4243_v46 = vld [vmem:[#allocation2 + $0x1b8] sm:$0xf]  ;;  %v4462_v21 = vld [vmem:[#allocation2 + $0x1c0] sm:$0xf0] }
 0x485   :  { %v2272_v51 = vpop.f32.mrf.mxu0  ;;  %v4256_v49 = vor.u32 %v4465_v18, %v4255_v3  ;;  %2420 = vmatpush.bf16.msra.mxu2 %v4136_v54  ;;  %v4244_v36 = vor.u32 %v4462_v21, %v4243_v46  ;;  %v4411_v3 = vld [vmem:[#allocation2 + $0x28] sm:$0xf0]  ;;  %2330 = vmatpush.bf16.msra.mxu1 %v4052_v48  ;;  %v4219_v62 = vld [vmem:[#allocation2 + $0x188] sm:$0xf]  ;;  %v4456_v54 = vld [vmem:[#allocation2 + $0x190] sm:$0xf0] }
 0x486   :  { %v7406_v6 = vadd.f32 %v2929_v57, %v2897_v32  ;;  %v4459_v32 = vld [vmem:[#allocation2 + $0x1a8] sm:$0xf0]  ;;  %v4039_v57 = vld [vmem:[#allocation2 + $0x20] sm:$0xf]  ;;  %v4408_v46 = vld [vmem:[#allocation2 + $0x10] sm:$0xf0]  ;;  %v4220_v48 = vor.u32 %v4456_v54, %v4219_v62 }
 0x487   :  { %2507 = vmatpush.bf16.msrb.mxu3 %v4256_v49  ;;  %v10251_v18 = vld [vmem:[#allocation61_spill] sm:$0xff]  ;;  %v10252_v49 = vld [vmem:[#allocation27_spill] sm:$0xff]  ;;  %v4232_v40 = vor.u32 %v4459_v32, %v4231_v10  ;;  %v4028_v12 = vor.u32 %v4408_v46, %v4027_v8  ;;  %v10256_v8 = vld [vmem:[#allocation34_spill] sm:$0xff] }
 0x488   :  { %v10257_v62 = vld [vmem:[#allocation18_spill] sm:$0xff] }
 0x489   :  { %v2183_v53 = vpop.f32.mrf.mxu3  ;;  %v10258_v46 = vld [vmem:[#allocation74_spill] sm:$0xff] }
 0x48a   :  { %v2184_v44 = vadd.f32 %v2183_v53, %v7341_v15  ;;  %v4040_v15 = vor.u32 %v4411_v3, %v4039_v57  ;;  %v4432_v53 = vld [vmem:[#allocation2 + $0xd0] sm:$0xf0] }
 0x48b   :  { %2508 = vmatpush.bf16.msrb.mxu3 %v4244_v36 }
 0x48c   :  { %v7409_v17 = vadd.f32 %v2272_v51, %v2184_v44  ;;  %v2104_v51 = vpop.f32.mrf.mxu2  ;;  %v4124_v44 = vor.u32 %v4432_v53, %v4123_v52  ;;  %2331 = vmatpush.bf16.msra.mxu1 %v4040_v15  ;;  %v10254_v52 = vld [vmem:[#allocation16_spill] sm:$0xff]  ;;  %v10255_v15 = vld [vmem:[#allocation31_spill] sm:$0xff] }
 0x48d   :  { %v2275_v45 = vpop.f32.mrf.mxu0 }
 0x48e   :  { %2225 = vmatmul.bf16.gmra.mxu3 %v10251_v18  ;;  %2421 = vmatpush.bf16.msra.mxu2 %v4124_v44 }
 0x48f   :  { %2509 = vmatpush.bf16.msrb.mxu3 %v4232_v40 }
 0x490   :  { %2314 = vmatmul.bf16.gmra.mxu0 %v10252_v49  ;;  %2332 = vmatpush.bf16.msra.mxu1 %v4028_v12 }
 0x491   :  { %v2186_v35 = vpop.f32.mrf.mxu3  ;;  %2422 = vmatmul.bf16.vlgmr.msra.gmra.mxu2 %v10253_v42 }
 0x492   :  { %v2187_v21 = vadd.f32 %v2186_v35, %v7371_v24 }
 0x493   :  { %2510 = vmatpush.bf16.msrb.mxu3 %v4220_v48  ;;  %2333 = vmatmul.bf16.vlgmr.msra.gmra.mxu1 %v10254_v52 }
 0x494   :  { %v7414_v57 = vadd.f32 %v2275_v45, %v2187_v21  ;;  %v2107_v36 = vpop.f32.mrf.mxu2 }
 0x495   :  { %v2277_v3 = vpop.f32.mrf.mxu0 }
 0x499   :  { %v2188_v10 = vpop.f32.mrf.mxu3 }
 0x49a   :  { %v2189_v32 = vadd.f32 %v2188_v10, %v7389_v60 }
 0x49c   :  { %v7419_v53 = vadd.f32 %v2277_v3, %v2189_v32  ;;  %v2109_v45 = vpop.f32.mrf.mxu2  ;;  %v10259_v3 = vld [vmem:[#allocation72_spill] sm:$0xff] }
 0x49d   :  { %v2280_v24 = vpop.f32.mrf.mxu0 }
 0x49e   :  { %2230 = vmatmul.bf16.gmra.mxu3 %v10255_v15 }
 0x4a0   :  { %2319 = vmatmul.bf16.gmra.mxu0 %v10256_v8  ;;  %v10268_v8 = vld [vmem:[#allocation69_spill] sm:$0xff] }
 0x4a1   :  { %v2191_v40 = vpop.f32.mrf.mxu3  ;;  %2427 = vmatmul.bf16.gmra.mxu2 %v10257_v62 }
 0x4a2   :  { %v2192_v44 = vadd.f32 %v2191_v40, %v7402_v13 }
 0x4a3   :  { %2338 = vmatmul.bf16.gmra.mxu1 %v10258_v46 }
 0x4a4   :  { %v7424_v42 = vadd.f32 %v2280_v24, %v2192_v44  ;;  %v2112_v54 = vpop.f32.mrf.mxu2  ;;  %v10260_v24 = vld [vmem:[#allocation28_spill] sm:$0xff] }
 0x4a5   :  { %v2282_v12 = vpop.f32.mrf.mxu0 }
 0x4a9   :  { %v2193_v60 = vpop.f32.mrf.mxu3 }
 0x4aa   :  { %v2194_v35 = vadd.f32 %v2193_v60, %v2104_v51  ;;  %v10262_v60 = vld [vmem:[#allocation25_spill] sm:$0xff] }
 0x4ac   :  { %v7428_v21 = vadd.f32 %v2282_v12, %v2194_v35  ;;  %v2114_v10 = vpop.f32.mrf.mxu2 }
 0x4ad   :  { %v2285_v48 = vpop.f32.mrf.mxu0 }
 0x4ae   :  { %2511 = vmatmul.bf16.vlgmr.msrb.gmra.mxu3 %v10259_v3 }
 0x4b1   :  { %v2196_v32 = vpop.f32.mrf.mxu3  ;;  %2432 = vmatmul.bf16.gmra.mxu2 %v10260_v24  ;;  %v10263_v24 = vld [vmem:[#allocation73_spill] sm:$0xff] }
 0x4b2   :  { %v2197_v52 = vadd.f32 %v2196_v32, %v2107_v36 }
 0x4b3   :  { %2343 = vmatmul.bf16.gmra.mxu1 %v10261_v43 }
 0x4b4   :  { %v7431_v47 = vadd.f32 %v2285_v48, %v2197_v52  ;;  %v2117_v40 = vpop.f32.mrf.mxu2 }
 0x4b5   :  { %v2287_v13 = vpop.f32.mrf.mxu0 }
 0x4b9   :  { %v2198_v44 = vpop.f32.mrf.mxu3 }
 0x4ba   :  { %v2199_v62 = vadd.f32 %v2198_v44, %v2109_v45 }
 0x4bc   :  { %v7435_v51 = vadd.f32 %v2287_v13, %v2199_v62  ;;  %v2119_v35 = vpop.f32.mrf.mxu2 }
 0x4bd   :  { %v2290_v12 = vpop.f32.mrf.mxu0 }
 0x4be   :  { %2516 = vmatmul.bf16.gmra.mxu3 %v10262_v60 }
 0x4c1   :  { %v2201_v46 = vpop.f32.mrf.mxu3  ;;  %2437 = vmatmul.bf16.gmra.mxu2 %v6751_v30 }
 0x4c2   :  { %v2202_v3 = vadd.f32 %v2201_v46, %v2112_v54 }
 0x4c3   :  { %2348 = vmatmul.bf16.gmra.mxu1 %v10263_v24 }
 0x4c4   :  { %v7438_v28 = vadd.f32 %v2290_v12, %v2202_v3  ;;  %v2122_v48 = vpop.f32.mrf.mxu2  ;;  %v10264_v3 = vld [vmem:[#allocation19_spill] sm:$0xff] }
 0x4c5   :  { %v2292_v36 = vpop.f32.mrf.mxu0 }
 0x4c9   :  { %v2203_v32 = vpop.f32.mrf.mxu3 }
 0x4ca   :  { %v2204_v52 = vadd.f32 %v2203_v32, %v2114_v10  ;;  %v2631_v10 = vadd.f32 %v7166_v33, %v7163_v20 }
 0x4cc   :  { %v7442_v45 = vadd.f32 %v2292_v36, %v2204_v52  ;;  %v2124_v13 = vpop.f32.mrf.mxu2  ;;  %v2632_v36 = vadd.f32 %v2631_v10, %v7228_v4  ;;  %v10265_v52 = vld [vmem:[#allocation30_spill] sm:$0xff] }
 0x4cd   :  { %v2295_v43 = vpop.f32.mrf.mxu0 }
 0x4ce   :  { %2521 = vmatmul.bf16.gmra.mxu3 %v6736_v37  ;;  %v2633_v37 = vadd.f32 %v2632_v36, %v7230_v56 }
 0x4d0   :  { %v2634_v24 = vadd.f32 %v2633_v37, %v7244_v19 }
 0x4d1   :  { %v2206_v44 = vpop.f32.mrf.mxu3  ;;  %2442 = vmatmul.bf16.gmra.mxu2 %v6772_v0 }
 0x4d2   :  { %v2207_v62 = vadd.f32 %v2206_v44, %v2117_v40  ;;  %v2635_v0 = vadd.f32 %v2634_v24, %v7273_v55 }
 0x4d3   :  { %2353 = vmatmul.bf16.gmra.mxu1 %v10264_v3 }
 0x4d4   :  { %v7445_v60 = vadd.f32 %v2295_v43, %v2207_v62  ;;  %v2127_v12 = vpop.f32.mrf.mxu2  ;;  %v2636_v62 = vadd.f32 %v2635_v0, %v7301_v38 }
 0x4d5   :  { %v2297_v54 = vpop.f32.mrf.mxu0 }
 0x4d9   :  { %v2208_v30 = vpop.f32.mrf.mxu3 }
 0x4da   :  { %v2209_v46 = vadd.f32 %v2208_v30, %v2119_v35  ;;  %v2637_v35 = vadd.f32 %v2636_v62, %v7331_v23 }
 0x4dc   :  { %v2129_v40 = vpop.f32.mrf.mxu2  ;;  %v2638_v10 = vadd.f32 %v2637_v35, %v7362_v26 }
 0x4dd   :  { %v2300_v32 = vpop.f32.mrf.mxu0 }
 0x4de   :  { %2526 = vmatmul.bf16.gmra.mxu3 %v10265_v52  ;;  %v2639_v36 = vadd.f32 %v2638_v10, %v7383_v58 }
 0x4e0   :  { %v2640_v37 = vadd.f32 %v2639_v36, %v7398_v31 }
 0x4e1   :  { %v2211_v43 = vpop.f32.mrf.mxu3  ;;  %2447 = vmatmul.bf16.gmra.mxu2 %v6793_v22 }
 0x4e2   :  { %v2212_v44 = vadd.f32 %v2211_v43, %v2122_v48  ;;  %v2641_v48 = vadd.f32 %v2640_v37, %v7409_v17  ;;  %v10267_v43 = vld [vmem:[#allocation33_spill] sm:$0xff] }
 0x4e3   :  { %2358 = vmatmul.bf16.gmra.mxu1 %v10266_v1 }
 0x4e4   :  { %v2132_v30 = vpop.f32.mrf.mxu2  ;;  %v2642_v22 = vadd.f32 %v2641_v48, %v7414_v57 }
 0x4e5   :  { %v2302_v27 = vpop.f32.mrf.mxu0 }
 0x4e6   :  { %v2643_v9 = vadd.f32 %v2642_v22, %v7419_v53 }
 0x4e8   :  { %v2644_v34 = vadd.f32 %v2643_v9, %v7424_v42  ;;  %v7475_v9 = vadd.f32 %v2297_v54, %v2209_v46 }
 0x4e9   :  { %v2213_v3 = vpop.f32.mrf.mxu3 }
 0x4ea   :  { %v2214_v52 = vadd.f32 %v2213_v3, %v2124_v13  ;;  %v2645_v1 = vadd.f32 %v2644_v34, %v7428_v21 }
 0x4ec   :  { %v2134_v0 = vpop.f32.mrf.mxu2  ;;  %v2646_v3 = vadd.f32 %v2645_v1, %v7431_v47 }
 0x4ed   :  { %v2305_v24 = vpop.f32.mrf.mxu0 }
 0x4ee   :  { %2531 = vmatmul.bf16.gmra.mxu3 %v10267_v43  ;;  %v2647_v37 = vadd.f32 %v2646_v3, %v7435_v51 }
 0x4f0   :  { %v2648_v48 = vadd.f32 %v2647_v37, %v7438_v28 }
 0x4f1   :  { %v2216_v62 = vpop.f32.mrf.mxu3  ;;  %2452 = vmatmul.bf16.gmra.mxu2 %v6814_v14 }
 0x4f2   :  { %v2217_v35 = vadd.f32 %v2216_v62, %v2127_v12  ;;  %v2649_v12 = vadd.f32 %v2648_v48, %v7442_v45  ;;  %v7479_v62 = vadd.f32 %v2300_v32, %v2212_v44 }
 0x4f3   :  { %2363 = vmatmul.bf16.gmra.mxu1 %v10268_v8 }
 0x4f4   :  { %v2137_v13 = vpop.f32.mrf.mxu2  ;;  %v2650_v34 = vadd.f32 %v2649_v12, %v7445_v60  ;;  %v7485_v37 = vadd.f32 %v2305_v24, %v2217_v35 }
 0x4f5   :  { %v2307_v10 = vpop.f32.mrf.mxu0 }
 0x4f6   :  { %v2651_v3 = vadd.f32 %v2650_v34, %v7475_v9 }
 0x4f9   :  { %v2218_v36 = vpop.f32.mrf.mxu3 }
 0x4fa   :  { %v2219_v43 = vadd.f32 %v2218_v36, %v2129_v40  ;;  %v7482_v40 = vadd.f32 %v2302_v27, %v2214_v52  ;;  %v2652_v36 = vadd.f32 %v2651_v3, %v7479_v62  ;;  %v10270_v52 = vld [vmem:[#allocation60_spill] sm:$0xff] }
 0x4fc   :  { %v2139_v14 = vpop.f32.mrf.mxu2  ;;  %v7489_v54 = vadd.f32 %v2307_v10, %v2219_v43 }
 0x4fd   :  { %v2310_v22 = vpop.f32.mrf.mxu0 }
 0x4fe   :  { %2536 = vmatmul.bf16.gmra.mxu3 %v6799_v7  ;;  %v2653_v7 = vadd.f32 %v2652_v36, %v7482_v40  ;;  %10269 = vst [vmem:[#allocation49_spill] sm:$0xff] %v7489_v54 }
 0x500   :  { %v2654_v32 = vadd.f32 %v2653_v7, %v7485_v37 }
 0x501   :  { %v2221_v1 = vpop.f32.mrf.mxu3  ;;  %2457 = vmatmul.bf16.gmra.mxu2 %v6835_v16 }
 0x502   :  { %v2222_v8 = vadd.f32 %v2221_v1, %v2132_v30  ;;  %v2655_v27 = vadd.f32 %v2654_v32, %v7489_v54  ;;  %v10271_v1 = vld [vmem:[#allocation43_spill] sm:$0xff] }
 0x503   :  { %2368 = vmatmul.bf16.gmra.mxu1 %v10270_v52 }
 0x504   :  { %v2142_v46 = vpop.f32.mrf.mxu2  ;;  %v7492_v44 = vadd.f32 %v2310_v22, %v2222_v8  ;;  %v10272_v22 = vld [vmem:[#allocation70_spill] sm:$0xff] }
 0x505   :  { %v2312_v48 = vpop.f32.mrf.mxu0 }
 0x506   :  { %v2656_v24 = vadd.f32 %v2655_v27, %v7492_v44 }
 0x509   :  { %v2223_v12 = vpop.f32.mrf.mxu3 }
 0x50a   :  { %v2224_v30 = vadd.f32 %v2223_v12, %v2134_v0 }
 0x50c   :  { %v2313_v35 = vadd.f32 %v2312_v48, %v2224_v30  ;;  %v2144_v10 = vpop.f32.mrf.mxu2  ;;  %v10274_v30 = vld [vmem:[#allocation42_spill] sm:$0xff] }
 0x50d   :  { %v2315_v34 = vpop.f32.mrf.mxu0 }
 0x50e   :  { %v2657_v16 = vadd.f32 %v2656_v24, %v2313_v35  ;;  %2541 = vmatmul.bf16.gmra.mxu3 %v10271_v1 }
 0x510   :  { %v2334_v49 = vpop.f32.mrf.mxu1 }
 0x511   :  { %v2226_v43 = vpop.f32.mrf.mxu3  ;;  %2462 = vmatmul.bf16.gmra.mxu2 %v10272_v22  ;;  %v10275_v22 = vld [vmem:[#allocation35_spill] sm:$0xff] }
 0x512   :  { %v2227_v3 = vadd.f32 %v2226_v43, %v2137_v13 }
 0x513   :  { %2373 = vmatmul.bf16.gmra.mxu1 %v10273_v2  ;;  %v10276_v2 = vld [vmem:[#allocation62_spill] sm:$0xff] }
 0x514   :  { %v2316_v36 = vadd.f32 %v2315_v34, %v2227_v3  ;;  %v2423_v32 = vpop.f32.mrf.mxu2 }
 0x515   :  { %v2317_v7 = vpop.f32.mrf.mxu0  ;;  %v2424_v12 = vadd.f32 %v2423_v32, %v2334_v49 }
 0x516   :  { %v2658_v8 = vadd.f32 %v2657_v16, %v2316_v36 }
 0x518   :  { %v2336_v1 = vpop.f32.mrf.mxu1 }
 0x519   :  { %v2228_v0 = vpop.f32.mrf.mxu3 }
 0x51a   :  { %v2229_v52 = vadd.f32 %v2228_v0, %v2139_v14  ;;  %v10277_v0 = vld [vmem:[#allocation45_spill] sm:$0xff] }
 0x51c   :  { %v2318_v48 = vadd.f32 %v2317_v7, %v2229_v52  ;;  %v2425_v15 = vpop.f32.mrf.mxu2 }
 0x51d   :  { %v2320_v24 = vpop.f32.mrf.mxu0  ;;  %v2426_v34 = vadd.f32 %v2425_v15, %v2336_v1 }
 0x51e   :  { %v2659_v27 = vadd.f32 %v2658_v8, %v2318_v48  ;;  %2546 = vmatmul.bf16.gmra.mxu3 %v10274_v30 }
 0x520   :  { %v2339_v29 = vpop.f32.mrf.mxu1 }
 0x521   :  { %v2231_v13 = vpop.f32.mrf.mxu3  ;;  %2467 = vmatmul.bf16.gmra.mxu2 %v10275_v22 }
 0x522   :  { %v2232_v43 = vadd.f32 %v2231_v13, %v2142_v46 }
 0x523   :  { %2378 = vmatmul.bf16.gmra.mxu1 %v10276_v2 }
 0x524   :  { %v2321_v3 = vadd.f32 %v2320_v24, %v2232_v43  ;;  %v2428_v59 = vpop.f32.mrf.mxu2 }
 0x525   :  { %v2322_v14 = vpop.f32.mrf.mxu0  ;;  %v2429_v54 = vadd.f32 %v2428_v59, %v2339_v29  ;;  %v10279_v59 = vld [vmem:[#allocation44_spill] sm:$0xff] }
 0x526   :  { %v2660_v16 = vadd.f32 %v2659_v27, %v2321_v3 }
 0x528   :  { %v2341_v52 = vpop.f32.mrf.mxu1 }
 0x529   :  { %v2233_v49 = vpop.f32.mrf.mxu3 }
 0x52a   :  { %v2234_v32 = vadd.f32 %v2233_v49, %v2144_v10 }
 0x52c   :  { %v2323_v7 = vadd.f32 %v2322_v14, %v2234_v32  ;;  %v2430_v15 = vpop.f32.mrf.mxu2  ;;  %v10278_v32 = vld [vmem:[#allocation48_spill] sm:$0xff] }
 0x52d   :  { %v2431_v24 = vadd.f32 %v2430_v15, %v2341_v52 }
 0x52e   :  { %v2661_v8 = vadd.f32 %v2660_v16, %v2323_v7  ;;  %2551 = vmatmul.bf16.gmra.mxu3 %v10277_v0 }
 0x530   :  { %v2662_v30 = vrot.slane %v2661_v8, 4  ;;  %v2344_v10 = vpop.f32.mrf.mxu1 }
 0x531   :  { %v2512_v46 = vpop.f32.mrf.mxu3  ;;  %2472 = vmatmul.bf16.gmra.mxu2 %v10220_v61 }
 0x532   :  { %v2663_v1 = vadd.f32 %v2662_v30, %v2661_v8  ;;  %v7504_v13 = vadd.f32 %v2512_v46, %v2424_v12 }
 0x533   :  { %2383 = vmatmul.bf16.gmra.mxu1 %v10278_v32 }
 0x534   :  { %v2664_v27 = vrot.slane %v2663_v1, 2  ;;  %v2433_v49 = vpop.f32.mrf.mxu2 }
 0x536   :  { %v2665_v43 = vadd.f32 %v2664_v27, %v2663_v1  ;;  %v10288_v27 = vld [vmem:[#allocation46_spill] sm:$0xff] }
 0x538   :  { %v2666_v22 = vrot.slane %v2665_v43, 1  ;;  %v2346_v29 = vpop.f32.mrf.mxu1 }
 0x539   :  { %v2514_v14 = vpop.f32.mrf.mxu3 }
 0x53a   :  { %v7507_v16 = vadd.f32 %v2514_v14, %v2426_v34  ;;  %v2667_v2 = vadd.f32 %v2666_v22, %v2665_v43  ;;  %v2434_v14 = vadd.f32 %v2433_v49, %v2344_v10 }
 0x53c   :  { %v7511_v0 = vmul.f32 0.00390625, %v2667_v2  ;;  %v2435_v12 = vpop.f32.mrf.mxu2 }
 0x53d   :  { %v2436_v2 = vadd.f32 %v2435_v12, %v2346_v29 }
 0x53e   :  { %2556 = vmatmul.bf16.gmra.mxu3 %v10279_v59  ;;  %v7515_v61 = vsub.f32 %v7492_v44, %v7511_v0  ;;  %v7518_v52 = vsub.f32 %v2313_v35, %v7511_v0  ;;  %v7521_v34 = vsub.f32 %v2316_v36, %v7511_v0  ;;  %v7524_v30 = vsub.f32 %v2318_v48, %v7511_v0 }
 0x53f   :  { %v7527_v15 = vsub.f32 %v2321_v3, %v7511_v0  ;;  %v7530_v46 = vsub.f32 %v2323_v7, %v7511_v0  ;;  %v7535_v44 = vsub.f32 %v7163_v20, %v7511_v0  ;;  %v7539_v35 = vsub.f32 %v7166_v33, %v7511_v0 }
 0x540   :  { %10280 = vst [vmem:[#allocation54_spill] sm:$0xff] %v7515_v61  ;;  %v2349_v36 = vpop.f32.mrf.mxu1  ;;  %v7543_v48 = vsub.f32 %v7228_v4, %v7511_v0  ;;  %v7552_v20 = vsub.f32 %v7230_v56, %v7511_v0  ;;  %v7556_v33 = vsub.f32 %v7244_v19, %v7511_v0  ;;  %v7567_v56 = vsub.f32 %v7273_v55, %v7511_v0 }
 0x541   :  { %v2517_v8 = vpop.f32.mrf.mxu3  ;;  %10281 = vst [vmem:[#allocation57_spill] sm:$0xff] %v7518_v52  ;;  %2477 = vmatmul.bf16.gmra.mxu2 %v10231_v11  ;;  %v2805_v7 = vmul.f32 %v7535_v44, %v7535_v44  ;;  %v2808_v11 = vmul.f32 %v7539_v35, %v7539_v35  ;;  %v7581_v55 = vsub.f32 %v7331_v23, %v7511_v0 }
 0x542   :  { %10282 = vst [vmem:[#allocation61_spill] sm:$0xff] %v7521_v34  ;;  %v2811_v4 = vmul.f32 %v7543_v48, %v7543_v48  ;;  %v7560_v22 = vadd.f32 %v2517_v8, %v2429_v54  ;;  %v2814_v19 = vmul.f32 %v7552_v20, %v7552_v20  ;;  %v2820_v29 = vmul.f32 %v7567_v56, %v7567_v56 }
 0x543   :  { %10283 = vst [vmem:[#allocation71_spill] sm:$0xff] %v7524_v30  ;;  %2388 = vmatmul.bf16.gmra.mxu1 %v10288_v27  ;;  %v2937_v43 = vadd.f32 %v2808_v11, %v2805_v7  ;;  %v2826_v23 = vmul.f32 %v7581_v55, %v7581_v55 }
 0x544   :  { %10284 = vst [vmem:[#allocation16_spill] sm:$0xff] %v7527_v15  ;;  %v2438_v1 = vpop.f32.mrf.mxu2 }
 0x545   :  { %10285 = vst [vmem:[#allocation18_spill] sm:$0xff] %v7530_v46  ;;  %v2938_v27 = vadd.f32 %v2937_v43, %v2811_v4 }
 0x546   :  { %10286 = vst [vmem:[#allocation74_spill] sm:$0xff] %v7539_v35  ;;  %v2439_v35 = vadd.f32 %v2438_v1, %v2349_v36 }
 0x547   :  { %10287 = vst [vmem:[#allocation72_spill] sm:$0xff] %v7543_v48  ;;  %v2939_v10 = vadd.f32 %v2938_v27, %v2814_v19 }
 0x548   :  { %10289 = vst [vmem:[#allocation28_spill] sm:$0xff] %v7556_v33  ;;  %v2351_v59 = vpop.f32.mrf.mxu1 }
 0x549   :  { %v2519_v3 = vpop.f32.mrf.mxu3  ;;  %10290 = vst [vmem:[#allocation13_spill] sm:$0xff] %v7567_v56 }
 0x54a   :  { %v7562_v32 = vadd.f32 %v2519_v3, %v2431_v24  ;;  %v7573_v24 = vsub.f32 %v7301_v38, %v7511_v0  ;;  %10292 = vst [vmem:[#allocation73_spill] sm:$0xff] %v7581_v55  ;;  %v7588_v38 = vsub.f32 %v7362_v26, %v7511_v0 }
 0x54c   :  { %v2440_v48 = vpop.f32.mrf.mxu2  ;;  %10291 = vst [vmem:[#allocation25_spill] sm:$0xff] %v7573_v24  ;;  %v2823_v8 = vmul.f32 %v7573_v24, %v7573_v24  ;;  %v2829_v26 = vmul.f32 %v7588_v38, %v7588_v38 }
 0x54d   :  { %v2441_v54 = vadd.f32 %v2440_v48, %v2351_v59  ;;  %10293 = vst [vmem:[#allocation19_spill] sm:$0xff] %v7588_v38  ;;  %v7594_v48 = vsub.f32 %v7383_v58, %v7511_v0  ;;  %v10296_v59 = vld [vmem:[#allocation52_spill] sm:$0xff]  ;;  %v7609_v58 = vsub.f32 %v7409_v17, %v7511_v0 }
 0x54e   :  { %2561 = vmatmul.bf16.gmra.mxu3 %v10222_v50  ;;  %v2817_v50 = vmul.f32 %v7556_v33, %v7556_v33 }
 0x54f   :  { %10294 = vst [vmem:[#allocation30_spill] sm:$0xff] %v7594_v48  ;;  %v2832_v19 = vmul.f32 %v7594_v48, %v7594_v48  ;;  %v2838_v17 = vmul.f32 %v7609_v58, %v7609_v58 }
 0x550   :  { %v2940_v12 = vadd.f32 %v2939_v10, %v2817_v50  ;;  %v2354_v1 = vpop.f32.mrf.mxu1  ;;  %10297 = vst [vmem:[#allocation33_spill] sm:$0xff] %v7609_v58  ;;  %v7622_v10 = vsub.f32 %v7419_v53, %v7511_v0  ;;  %v7636_v53 = vsub.f32 %v7428_v21, %v7511_v0 }
 0x551   :  { %v2522_v7 = vpop.f32.mrf.mxu3  ;;  %2482 = vmatmul.bf16.gmra.mxu2 %v10242_v41  ;;  %v7600_v41 = vsub.f32 %v7398_v31, %v7511_v0  ;;  %v7615_v31 = vsub.f32 %v7414_v57, %v7511_v0 }
 0x552   :  { %v7577_v49 = vadd.f32 %v2522_v7, %v2434_v14  ;;  %v2941_v36 = vadd.f32 %v2940_v12, %v2820_v29  ;;  %10299 = vst [vmem:[#allocation60_spill] sm:$0xff] %v7622_v10  ;;  %v2850_v21 = vmul.f32 %v7636_v53, %v7636_v53 }
 0x553   :  { %10295 = vst [vmem:[#allocation29_spill] sm:$0xff] %v7600_v41  ;;  %2393 = vmatmul.bf16.gmra.mxu1 %v10296_v59  ;;  %v2835_v7 = vmul.f32 %v7600_v41, %v7600_v41  ;;  %v7649_v59 = vsub.f32 %v7435_v51, %v7511_v0  ;;  %v7664_v51 = vsub.f32 %v7442_v45, %v7511_v0 }
 0x554   :  { %v2942_v3 = vadd.f32 %v2941_v36, %v2823_v8  ;;  %v2443_v11 = vpop.f32.mrf.mxu2  ;;  %10298 = vst [vmem:[#allocation69_spill] sm:$0xff] %v7615_v31 }
 0x555   :  { %v2444_v12 = vadd.f32 %v2443_v11, %v2354_v1  ;;  %10301 = vst [vmem:[#allocation70_spill] sm:$0xff] %v7636_v53  ;;  %v2844_v1 = vmul.f32 %v7622_v10, %v7622_v10  ;;  %v2862_v45 = vmul.f32 %v7664_v51, %v7664_v51 }
 0x556   :  { %v2943_v43 = vadd.f32 %v2942_v3, %v2826_v23  ;;  %v7628_v23 = vsub.f32 %v7424_v42, %v7511_v0  ;;  %v7643_v42 = vsub.f32 %v7431_v47, %v7511_v0  ;;  %10303 = vst [vmem:[#allocation42_spill] sm:$0xff] %v7649_v59 }
 0x557   :  { %10305 = vst [vmem:[#allocation62_spill] sm:$0xff] %v7664_v51 }
 0x558   :  { %v2944_v27 = vadd.f32 %v2943_v43, %v2829_v26  ;;  %10300 = vst [vmem:[#allocation43_spill] sm:$0xff] %v7628_v23  ;;  %v2847_v26 = vmul.f32 %v7628_v23, %v7628_v23  ;;  %v2853_v47 = vmul.f32 %v7643_v42, %v7643_v42 }
 0x559   :  { %v2524_v4 = vpop.f32.mrf.mxu3  ;;  %10302 = vst [vmem:[#allocation32_spill] sm:$0xff] %v7643_v42 }
 0x55a   :  { %v7604_v14 = vadd.f32 %v2524_v4, %v2436_v2  ;;  %v2945_v50 = vadd.f32 %v2944_v27, %v2832_v19  ;;  %v2356_v2 = vpop.f32.mrf.mxu1 }
 0x55c   :  { %v2946_v29 = vadd.f32 %v2945_v50, %v2835_v7  ;;  %v2445_v8 = vpop.f32.mrf.mxu2 }
 0x55d   :  { %v2446_v57 = vadd.f32 %v2445_v8, %v2356_v2 }
 0x55e   :  { %2566 = vmatmul.bf16.gmra.mxu3 %v10232_v63  ;;  %v2841_v63 = vmul.f32 %v7615_v31, %v7615_v31  ;;  %v2947_v3 = vadd.f32 %v2946_v29, %v2838_v17  ;;  %v2856_v17 = vmul.f32 %v7649_v59, %v7649_v59 }
 0x560   :  { %v2948_v11 = vadd.f32 %v2947_v3, %v2841_v63 }
 0x561   :  { %v2527_v36 = vpop.f32.mrf.mxu3  ;;  %2487 = vmatmul.bf16.gmra.mxu2 %v10249_v39  ;;  %v7655_v39 = vsub.f32 %v7438_v28, %v7511_v0  ;;  %v7670_v28 = vsub.f32 %v7445_v60, %v7511_v0  ;;  %v2931_v60 = vrot.slane %v7406_v6, 4 }
 0x562   :  { %v7632_v4 = vadd.f32 %v2527_v36, %v2439_v35  ;;  %v2949_v43 = vadd.f32 %v2948_v11, %v2844_v1  ;;  %v2359_v35 = vpop.f32.mrf.mxu1 }
 0x563   :  { %10304 = vst [vmem:[#allocation35_spill] sm:$0xff] %v7655_v39  ;;  %2398 = vmatmul.bf16.gmra.mxu1 %v10225_v5  ;;  %v2859_v8 = vmul.f32 %v7655_v39, %v7655_v39  ;;  %v7677_v5 = vsub.f32 %v7475_v9, %v7511_v0 }
 0x564   :  { %v2950_v19 = vadd.f32 %v2949_v43, %v2847_v26  ;;  %v2448_v27 = vpop.f32.mrf.mxu2  ;;  %10306 = vst [vmem:[#allocation45_spill] sm:$0xff] %v7670_v28  ;;  %v7684_v43 = vsub.f32 %v7479_v62, %v7511_v0  ;;  %v7700_v62 = vsub.f32 %v7485_v37, %v7511_v0 }
 0x565   :  { %10307 = vst [vmem:[#allocation48_spill] sm:$0xff] %v7677_v5  ;;  %v2449_v3 = vadd.f32 %v2448_v27, %v2359_v35  ;;  %v2868_v35 = vmul.f32 %v7677_v5, %v7677_v5 }
 0x566   :  { %v2951_v50 = vadd.f32 %v2950_v19, %v2850_v21  ;;  %10308 = vst [vmem:[#allocation44_spill] sm:$0xff] %v7684_v43  ;;  %v7692_v19 = vsub.f32 %v7482_v40, %v7511_v0  ;;  %v10311_v40 = vld [vmem:[#allocation49_spill] sm:$0xff]  ;;  %v2877_v37 = vmul.f32 %v7700_v62, %v7700_v62 }
 0x567   :  { %10310 = vst [vmem:[#allocation52_spill] sm:$0xff] %v7700_v62 }
 0x568   :  { %v2952_v29 = vadd.f32 %v2951_v50, %v2853_v47  ;;  %10309 = vst [vmem:[#allocation46_spill] sm:$0xff] %v7692_v19 }
 0x569   :  { %v2529_v7 = vpop.f32.mrf.mxu3 }
 0x56a   :  { %v7659_v2 = vadd.f32 %v2529_v7, %v2441_v54  ;;  %v2953_v36 = vadd.f32 %v2952_v29, %v2856_v17  ;;  %v2361_v54 = vpop.f32.mrf.mxu1  ;;  %v2932_v7 = vadd.f32 %v2931_v60, %v7406_v6  ;;  %v7706_v17 = vsub.f32 %v10311_v40, %v7511_v0 }
 0x56b   :  { %v2874_v29 = vmul.f32 %v7692_v19, %v7692_v19 }
 0x56c   :  { %v2954_v63 = vadd.f32 %v2953_v36, %v2859_v8  ;;  %v2450_v1 = vpop.f32.mrf.mxu2  ;;  %10312 = vst [vmem:[#allocation49_spill] sm:$0xff] %v7706_v17  ;;  %v2933_v6 = vrot.slane %v2932_v7, 2 }
 0x56d   :  { %v2451_v26 = vadd.f32 %v2450_v1, %v2361_v54  ;;  %v2880_v1 = vmul.f32 %v7706_v17, %v7706_v17 }
 0x56e   :  { %2571 = vmatmul.bf16.gmra.mxu3 %v10243_v25  ;;  %v2865_v25 = vmul.f32 %v7670_v28, %v7670_v28  ;;  %v2955_v21 = vadd.f32 %v2954_v63, %v2862_v45  ;;  %v10313_v63 = vld [vmem:[#allocation23_spill] sm:$0xff]  ;;  %v2934_v60 = vadd.f32 %v2933_v6, %v2932_v7 }
 0x570   :  { %v2956_v27 = vadd.f32 %v2955_v21, %v2865_v25  ;;  %v10314_v21 = vld [vmem:[#allocation59_spill] sm:$0xff] }
 0x571   :  { %v2532_v11 = vpop.f32.mrf.mxu3  ;;  %2492 = vmatmul.bf16.gmra.mxu2 %v10251_v18 }
 0x572   :  { %v7688_v9 = vadd.f32 %v2532_v11, %v2444_v12  ;;  %v2871_v12 = vmul.f32 %v7684_v43, %v7684_v43  ;;  %v2957_v47 = vadd.f32 %v2956_v27, %v2868_v35  ;;  %v2364_v50 = vpop.f32.mrf.mxu1  ;;  %v2883_v11 = vmul.f32 %v7515_v61, %v7515_v61 }
 0x573   :  { %2403 = vmatmul.bf16.gmra.mxu1 %v10313_v63  ;;  %v2886_v27 = vmul.f32 %v7518_v52, %v7518_v52  ;;  %v10315_v63 = vld [vmem:[#allocation31_spill] sm:$0xff] }
 0x574   :  { %v2958_v8 = vadd.f32 %v2957_v47, %v2871_v12  ;;  %v2453_v18 = vpop.f32.mrf.mxu2 }
 0x576   :  { %v2959_v54 = vadd.f32 %v2958_v8, %v2874_v29  ;;  %v2935_v8 = vrot.slane %v2934_v60, 1 }
 0x578   :  { %v2960_v0 = vadd.f32 %v2959_v54, %v2877_v37  ;;  %v2892_v37 = vmul.f32 %v7524_v30, %v7524_v30 }
 0x579   :  { %v2534_v36 = vpop.f32.mrf.mxu3 }
 0x57a   :  { %v7712_v45 = vadd.f32 %v2534_v36, %v2446_v57  ;;  %v2961_v25 = vadd.f32 %v2960_v0, %v2880_v1  ;;  %v2366_v35 = vpop.f32.mrf.mxu1  ;;  %v2454_v57 = vadd.f32 %v2453_v18, %v2364_v50  ;;  %v2889_v36 = vmul.f32 %v7521_v34, %v7521_v34 }
 0x57b   :  { %v2936_v1 = vadd.f32 %v2935_v8, %v2934_v60  ;;  %v2895_v50 = vmul.f32 %v7527_v15, %v7527_v15  ;;  %v10317_v8 = vld [vmem:[#allocation27_spill] sm:$0xff] }
 0x57c   :  { %v2962_v12 = vadd.f32 %v2961_v25, %v2883_v11  ;;  %v2455_v47 = vpop.f32.mrf.mxu2  ;;  %v2898_v11 = vmul.f32 %v7530_v46, %v7530_v46 }
 0x57d   :  { %v2456_v29 = vadd.f32 %v2455_v47, %v2366_v35  ;;  %v10316_v47 = vld [vmem:[#allocation21_spill] sm:$0xff] }
 0x57e   :  { %2576 = vmatmul.bf16.gmra.mxu3 %v10314_v21  ;;  %v2963_v7 = vadd.f32 %v2962_v12, %v2886_v27 }
 0x580   :  { %v2964_v54 = vadd.f32 %v2963_v7, %v2889_v36 }
 0x581   :  { %v2537_v40 = vpop.f32.mrf.mxu3  ;;  %2497 = vmatmul.bf16.gmra.mxu2 %v10315_v63 }
 0x582   :  { %v7724_v6 = vadd.f32 %v2537_v40, %v2449_v3  ;;  %v2965_v18 = vadd.f32 %v2964_v54, %v2892_v37  ;;  %v2369_v0 = vpop.f32.mrf.mxu1  ;;  %v3011_v3 = vmul.f32 0.00390625, %v2936_v1 }
 0x583   :  { %2408 = vmatmul.bf16.gmra.mxu1 %v10316_v47 }
 0x584   :  { %v2966_v25 = vadd.f32 %v2965_v18, %v2895_v50  ;;  %v2458_v21 = vpop.f32.mrf.mxu2  ;;  %v3014_v36 = vadd.f32 1e-05, %v3011_v3 }
 0x585   :  { %v2459_v54 = vadd.f32 %v2458_v21, %v2369_v0  ;;  %v10318_v0 = vld [vmem:[#allocation34_spill] sm:$0xff] }
 0x586   :  { %v2967_v27 = vadd.f32 %v2966_v25, %v2898_v11  ;;  %4512 = vrsqrt.f32 %v3014_v36  ;;  %vm3023_vm0 = vweird.f32 %v3014_v36 }
 0x588   :  { %v2968_v40 = vrot.slane %v2967_v27, 4 }
 0x589   :  { %v2539_v35 = vpop.f32.mrf.mxu3 }
 0x58a   :  { %v7733_v12 = vadd.f32 %v2539_v35, %v2451_v26  ;;  %v2969_v60 = vadd.f32 %v2968_v40, %v2967_v27  ;;  %v2371_v7 = vpop.f32.mrf.mxu1 }
 0x58c   :  { %v2970_v37 = vrot.slane %v2969_v60, 2  ;;  %v2460_v63 = vpop.f32.mrf.mxu2  ;;  %v4513_v25 = vpop.eup %4512 }
 0x58d   :  { %v2461_v46 = vadd.f32 %v2460_v63, %v2371_v7  ;;  %v3018_v30 = vmul.f32 %v4513_v25, %v3014_v36  ;;  %vm3024_vm13 = vweird.f32 %v4513_v25 }
 0x58e   :  { %2581 = vmatmul.bf16.gmra.mxu3 %v10317_v8  ;;  %v2971_v50 = vadd.f32 %v2970_v37, %v2969_v60  ;;  %vm3025_vm1 = vmor %vm3023_vm0, %vm3024_vm13 }
 0x58f   :  { %v3019_v21 = vmul.f32 %v4513_v25, %v3018_v30 }
 0x590   :  { %v2972_v1 = vrot.slane %v2971_v50, 1 }
 0x591   :  { %v2542_v15 = vpop.f32.mrf.mxu3 }
 0x592   :  { %v7737_v18 = vadd.f32 %v2542_v15, %v2454_v57  ;;  %v2973_v26 = vadd.f32 %v2972_v1, %v2971_v50  ;;  %v2374_v11 = vpop.f32.mrf.mxu1  ;;  %v3020_v50 = vmul.f32 0.5, %v3019_v21 }
 0x594   :  { %v3012_v35 = vmul.f32 0.00390625, %v2973_v26  ;;  %v2463_v47 = vpop.f32.mrf.mxu2  ;;  %v3021_v34 = vsub.f32 1.5, %v3020_v50 }
 0x595   :  { %v2464_v27 = vadd.f32 %v2463_v47, %v2374_v11 }
 0x596   :  { %v3015_v40 = vadd.f32 1e-05, %v3012_v35  ;;  %v3022_v30 = vmul.f32 %v4513_v25, %v3021_v34 }
 0x598   :  { %4514 = vrsqrt.f32 %v3015_v40  ;;  %vm3033_vm14 = vweird.f32 %v3015_v40 }
 0x599   :  { %v2544_v3 = vpop.f32.mrf.mxu3 }
 0x59a   :  { %v7739_v8 = vadd.f32 %v2544_v3, %v2456_v29  ;;  %v2376_v7 = vpop.f32.mrf.mxu1 }
 0x59c   :  { %v2465_v60 = vpop.f32.mrf.mxu2 }
 0x59d   :  { %v2466_v57 = vadd.f32 %v2465_v60, %v2376_v7  ;;  %v3026_v7 = vsel %vm3025_vm1, %v4513_v25, %v3022_v30 }
 0x59e   :  { %2586 = vmatmul.bf16.gmra.mxu3 %v10318_v0  ;;  %v4515_v37 = vpop.eup %4514 }
 0x59f   :  { %v3028_v1 = vmul.f32 %v4515_v37, %v3015_v40  ;;  %vm3034_vm12 = vweird.f32 %v4515_v37 }
 0x5a0   :  { %vm3035_vm15 = vmor %vm3033_vm14, %vm3034_vm12 }
 0x5a1   :  { %v2547_v15 = vpop.f32.mrf.mxu3  ;;  %v3029_v26 = vmul.f32 %v4515_v37, %v3028_v1 }
 0x5a2   :  { %v7742_v63 = vadd.f32 %v2547_v15, %v2459_v54  ;;  %v2379_v35 = vpop.f32.mrf.mxu1 }
 0x5a3   :  { %v3030_v11 = vmul.f32 0.5, %v3029_v26 }
 0x5a4   :  { %v2468_v29 = vpop.f32.mrf.mxu2 }
 0x5a5   :  { %v3031_v47 = vsub.f32 1.5, %v3030_v11  ;;  %v2469_v52 = vadd.f32 %v2468_v29, %v2379_v35 }
 0x5a7   :  { %v3032_v61 = vmul.f32 %v4515_v37, %v3031_v47 }
 0x5a9   :  { %v2549_v3 = vpop.f32.mrf.mxu3  ;;  %v3036_v54 = vsel %vm3035_vm15, %v4515_v37, %v3032_v61 }
 0x5aa   :  { %v7744_v0 = vadd.f32 %v2549_v3, %v2461_v46  ;;  %v3050_v21 = vrot.slane %v3036_v54, 7  ;;  %v2381_v60 = vpop.f32.mrf.mxu1 }
 0x5ac   :  { %v7747_v15 = vsel %vm951_vm6, %v3026_v7, %v3050_v21  ;;  %v2470_v50 = vpop.f32.mrf.mxu2 }
 0x5ad   :  { %v2471_v26 = vadd.f32 %v2470_v50, %v2381_v60 }
 0x5b1   :  { %v2552_v1 = vpop.f32.mrf.mxu3 }
 0x5b2   :  { %v7749_v11 = vadd.f32 %v2552_v1, %v2464_v27  ;;  %v2384_v46 = vpop.f32.mrf.mxu1 }
 0x5b4   :  { %v2473_v34 = vpop.f32.mrf.mxu2 }
 0x5b5   :  { %v2474_v29 = vadd.f32 %v2473_v34, %v2384_v46 }
 0x5b9   :  { %v2554_v35 = vpop.f32.mrf.mxu3 }
 0x5ba   :  { %v7751_v40 = vadd.f32 %v2554_v35, %v2466_v57  ;;  %v2386_v36 = vpop.f32.mrf.mxu1 }
 0x5bc   :  { %v2475_v37 = vpop.f32.mrf.mxu2 }
 0x5bd   :  { %v2476_v48 = vadd.f32 %v2475_v37, %v2386_v36 }
 0x5c1   :  { %v2557_v61 = vpop.f32.mrf.mxu3 }
 0x5c2   :  { %v7753_v47 = vadd.f32 %v2557_v61, %v2469_v52  ;;  %v2389_v30 = vpop.f32.mrf.mxu1  ;;  %v2668_v52 = vadd.f32 %v7507_v16, %v7504_v13 }
 0x5c4   :  { %v2478_v54 = vpop.f32.mrf.mxu2 }
 0x5c9   :  { %v2559_v25 = vpop.f32.mrf.mxu3 }
 0x5ca   :  { %v7755_v3 = vadd.f32 %v2559_v25, %v2471_v26  ;;  %v2391_v27 = vpop.f32.mrf.mxu1  ;;  %v2669_v26 = vadd.f32 %v2668_v52, %v7560_v22 }
 0x5cc   :  { %v2480_v60 = vpop.f32.mrf.mxu2 }
 0x5d1   :  { %v2562_v21 = vpop.f32.mrf.mxu3 }
 0x5d2   :  { %v7757_v7 = vadd.f32 %v2562_v21, %v2474_v29  ;;  %v2394_v1 = vpop.f32.mrf.mxu1  ;;  %v2670_v29 = vadd.f32 %v2669_v26, %v7562_v32 }
 0x5d4   :  { %v2483_v46 = vpop.f32.mrf.mxu2  ;;  %v2671_v21 = vadd.f32 %v2670_v29, %v7577_v49 }
 0x5d6   :  { %v2672_v19 = vadd.f32 %v2671_v21, %v7604_v14 }
 0x5d8   :  { %v2673_v5 = vadd.f32 %v2672_v19, %v7632_v4 }
 0x5d9   :  { %v2564_v50 = vpop.f32.mrf.mxu3 }
 0x5da   :  { %v2396_v34 = vpop.f32.mrf.mxu1  ;;  %v2674_v28 = vadd.f32 %v2673_v5, %v7659_v2  ;;  %v7779_v55 = vadd.f32 %v2564_v50, %v2476_v48 }
 0x5dc   :  { %v2485_v17 = vpop.f32.mrf.mxu2  ;;  %v2675_v59 = vadd.f32 %v2674_v28, %v7688_v9 }
 0x5de   :  { %v2676_v42 = vadd.f32 %v2675_v59, %v7712_v45 }
 0x5e0   :  { %v2677_v53 = vadd.f32 %v2676_v42, %v7724_v6 }
 0x5e1   :  { %v2567_v57 = vpop.f32.mrf.mxu3 }
 0x5e2   :  { %v2399_v25 = vpop.f32.mrf.mxu1  ;;  %v2678_v26 = vadd.f32 %v2677_v53, %v7733_v12 }
 0x5e4   :  { %v2488_v62 = vpop.f32.mrf.mxu2  ;;  %v2679_v29 = vadd.f32 %v2678_v26, %v7737_v18  ;;  %v2479_v26 = vadd.f32 %v2478_v54, %v2389_v30 }
 0x5e5   :  { %v2489_v37 = vadd.f32 %v2488_v62, %v2399_v25 }
 0x5e6   :  { %v2680_v10 = vadd.f32 %v2679_v29, %v7739_v8  ;;  %v7782_v24 = vadd.f32 %v2567_v57, %v2479_v26 }
 0x5e8   :  { %v2681_v5 = vadd.f32 %v2680_v10, %v7742_v63  ;;  %v2481_v10 = vadd.f32 %v2480_v60, %v2391_v27 }
 0x5e9   :  { %v2569_v35 = vpop.f32.mrf.mxu3 }
 0x5ea   :  { %v2401_v51 = vpop.f32.mrf.mxu1  ;;  %v2682_v31 = vadd.f32 %v2681_v5, %v7744_v0  ;;  %v2484_v5 = vadd.f32 %v2483_v46, %v2394_v1 }
 0x5ec   :  { %v2490_v39 = vpop.f32.mrf.mxu2  ;;  %v2683_v28 = vadd.f32 %v2682_v31, %v7749_v11 }
 0x5ed   :  { %v2491_v60 = vadd.f32 %v2490_v39, %v2401_v51 }
 0x5ee   :  { %v2684_v59 = vadd.f32 %v2683_v28, %v7751_v40  ;;  %v7785_v28 = vadd.f32 %v2569_v35, %v2481_v10 }
 0x5f0   :  { %v2685_v53 = vadd.f32 %v2684_v59, %v7753_v47  ;;  %v2486_v59 = vadd.f32 %v2485_v17, %v2396_v34 }
 0x5f1   :  { %v2572_v61 = vpop.f32.mrf.mxu3 }
 0x5f2   :  { %v2404_v23 = vpop.f32.mrf.mxu1  ;;  %v2686_v38 = vadd.f32 %v2685_v53, %v7755_v3  ;;  %v7788_v36 = vadd.f32 %v2572_v61, %v2484_v5 }
 0x5f4   :  { %v2493_v21 = vpop.f32.mrf.mxu2  ;;  %v2687_v29 = vadd.f32 %v2686_v38, %v7757_v7 }
 0x5f5   :  { %v2494_v1 = vadd.f32 %v2493_v21, %v2404_v23 }
 0x5f6   :  { %v2688_v31 = vadd.f32 %v2687_v29, %v7779_v55 }
 0x5f8   :  { %v2689_v33 = vadd.f32 %v2688_v31, %v7782_v24 }
 0x5f9   :  { %v2574_v43 = vpop.f32.mrf.mxu3 }
 0x5fa   :  { %v2406_v58 = vpop.f32.mrf.mxu1  ;;  %v2690_v54 = vadd.f32 %v2689_v33, %v7785_v28  ;;  %v7791_v38 = vadd.f32 %v2574_v43, %v2486_v59 }
 0x5fc   :  { %v2495_v41 = vpop.f32.mrf.mxu2  ;;  %v2691_v27 = vadd.f32 %v2690_v54, %v7788_v36 }
 0x5fd   :  { %v2496_v62 = vadd.f32 %v2495_v41, %v2406_v58 }
 0x5fe   :  { %v2692_v46 = vadd.f32 %v2691_v27, %v7791_v38 }
 0x601   :  { %v2577_v52 = vpop.f32.mrf.mxu3 }
 0x602   :  { %v2409_v30 = vpop.f32.mrf.mxu1  ;;  %v7794_v50 = vadd.f32 %v2577_v52, %v2489_v37 }
 0x604   :  { %v2498_v48 = vpop.f32.mrf.mxu2  ;;  %v2693_v34 = vadd.f32 %v2692_v46, %v7794_v50 }
 0x605   :  { %v2499_v61 = vadd.f32 %v2498_v48, %v2409_v30 }
 0x609   :  { %v2579_v19 = vpop.f32.mrf.mxu3 }
 0x60a   :  { %v7797_v57 = vadd.f32 %v2579_v19, %v2491_v60  ;;  %v2411_v25 = vpop.f32.mrf.mxu1 }
 0x60c   :  { %v2694_v33 = vadd.f32 %v2693_v34, %v7797_v57  ;;  %v2500_v39 = vpop.f32.mrf.mxu2 }
 0x60d   :  { %v2501_v21 = vadd.f32 %v2500_v39, %v2411_v25 }
 0x611   :  { %v2582_v42 = vpop.f32.mrf.mxu3 }
 0x612   :  { %v7800_v35 = vadd.f32 %v2582_v42, %v2494_v1 }
 0x614   :  { %v2695_v51 = vadd.f32 %v2694_v33, %v7800_v35 }
 0x619   :  { %v2584_v56 = vpop.f32.mrf.mxu3 }
 0x61a   :  { %v7803_v43 = vadd.f32 %v2584_v56, %v2496_v62 }
 0x61c   :  { %v2696_v52 = vadd.f32 %v2695_v51, %v7803_v43 }
 0x621   :  { %v2587_v17 = vpop.f32.mrf.mxu3 }
 0x622   :  { %v7806_v23 = vadd.f32 %v2587_v17, %v2499_v61 }
 0x624   :  { %v2697_v53 = vadd.f32 %v2696_v52, %v7806_v23 }
 0x629   :  { %v2589_v19 = vpop.f32.mrf.mxu3 }
 0x62a   :  { %v7810_v41 = vadd.f32 %v2589_v19, %v2501_v21 }
 0x62c   :  { %v2698_v58 = vadd.f32 %v2697_v53, %v7810_v41 }
 0x62e   :  { %v2699_v42 = vrot.slane %v2698_v58, 4 }
 0x630   :  { %v2700_v26 = vadd.f32 %v2699_v42, %v2698_v58 }
 0x632   :  { %v2701_v56 = vrot.slane %v2700_v26, 2 }
 0x634   :  { %v2702_v29 = vadd.f32 %v2701_v56, %v2700_v26 }
 0x636   :  { %v2703_v10 = vrot.slane %v2702_v29, 1 }
 0x638   :  { %v2704_v5 = vadd.f32 %v2703_v10, %v2702_v29 }
 0x63a   :  { %v7813_v31 = vmul.f32 0.00390625, %v2704_v5 }
 0x63c   :  { %v7817_v59 = vsub.f32 %v7504_v13, %v7813_v31  ;;  %v7821_v37 = vsub.f32 %v7507_v16, %v7813_v31  ;;  %v7825_v30 = vsub.f32 %v7560_v22, %v7813_v31  ;;  %v7833_v27 = vsub.f32 %v7562_v32, %v7813_v31 }
 0x63d   :  { %v7837_v13 = vsub.f32 %v7577_v49, %v7813_v31  ;;  %v7843_v22 = vsub.f32 %v7604_v14, %v7813_v31  ;;  %v7849_v32 = vsub.f32 %v7632_v4, %v7813_v31  ;;  %v7855_v34 = vsub.f32 %v7659_v2, %v7813_v31 }
 0x63e   :  { %v2806_v48 = vmul.f32 %v7817_v59, %v7817_v59  ;;  %v2809_v54 = vmul.f32 %v7821_v37, %v7821_v37  ;;  %v2812_v16 = vmul.f32 %v7825_v30, %v7825_v30  ;;  %v2815_v1 = vmul.f32 %v7833_v27, %v7833_v27 }
 0x63f   :  { %v2818_v49 = vmul.f32 %v7837_v13, %v7837_v13  ;;  %v2821_v14 = vmul.f32 %v7843_v22, %v7843_v22  ;;  %v7861_v61 = vsub.f32 %v7688_v9, %v7813_v31  ;;  %v2824_v4 = vmul.f32 %v7849_v32, %v7849_v32 }
 0x640   :  { %v2974_v60 = vadd.f32 %v2809_v54, %v2806_v48  ;;  %v7867_v25 = vsub.f32 %v7712_v45, %v7813_v31  ;;  %v2827_v2 = vmul.f32 %v7855_v34, %v7855_v34  ;;  %v7873_v51 = vsub.f32 %v7724_v6, %v7813_v31 }
 0x641   :  { %v2830_v9 = vmul.f32 %v7861_v61, %v7861_v61  ;;  %v7879_v21 = vsub.f32 %v7733_v12, %v7813_v31  ;;  %v7885_v53 = vsub.f32 %v7737_v18, %v7813_v31  ;;  %v7891_v42 = vsub.f32 %v7739_v8, %v7813_v31 }
 0x642   :  { %v2975_v46 = vadd.f32 %v2974_v60, %v2812_v16  ;;  %v2833_v45 = vmul.f32 %v7867_v25, %v7867_v25  ;;  %v2836_v6 = vmul.f32 %v7873_v51, %v7873_v51  ;;  %v7897_v56 = vsub.f32 %v7742_v63, %v7813_v31 }
 0x643   :  { %v2839_v12 = vmul.f32 %v7879_v21, %v7879_v21  ;;  %v2842_v18 = vmul.f32 %v7885_v53, %v7885_v53  ;;  %v7903_v10 = vsub.f32 %v7744_v0, %v7813_v31  ;;  %v2845_v8 = vmul.f32 %v7891_v42, %v7891_v42 }
 0x644   :  { %v2976_v17 = vadd.f32 %v2975_v46, %v2815_v1  ;;  %v7909_v48 = vsub.f32 %v7749_v11, %v7813_v31  ;;  %v2848_v63 = vmul.f32 %v7897_v56, %v7897_v56  ;;  %v7915_v16 = vsub.f32 %v7751_v40, %v7813_v31 }
 0x645   :  { %v2851_v0 = vmul.f32 %v7903_v10, %v7903_v10  ;;  %v7921_v1 = vsub.f32 %v7753_v47, %v7813_v31 }
 0x646   :  { %v2977_v62 = vadd.f32 %v2976_v17, %v2818_v49  ;;  %v2854_v11 = vmul.f32 %v7909_v48, %v7909_v48  ;;  %v7927_v49 = vsub.f32 %v7755_v3, %v7813_v31  ;;  %v2857_v40 = vmul.f32 %v7915_v16, %v7915_v16 }
 0x647   :  { %v2860_v47 = vmul.f32 %v7921_v1, %v7921_v1 }
 0x648   :  { %v2978_v33 = vadd.f32 %v2977_v62, %v2821_v14  ;;  %v7933_v14 = vsub.f32 %v7757_v7, %v7813_v31  ;;  %v2863_v3 = vmul.f32 %v7927_v49, %v7927_v49 }
 0x64a   :  { %v2979_v39 = vadd.f32 %v2978_v33, %v2824_v4  ;;  %v7939_v4 = vsub.f32 %v7779_v55, %v7813_v31  ;;  %v2866_v7 = vmul.f32 %v7933_v14, %v7933_v14 }
 0x64c   :  { %v2980_v52 = vadd.f32 %v2979_v39, %v2827_v2  ;;  %v7945_v2 = vsub.f32 %v7782_v24, %v7813_v31  ;;  %v2869_v55 = vmul.f32 %v7939_v4, %v7939_v4 }
 0x64e   :  { %v2981_v19 = vadd.f32 %v2980_v52, %v2830_v9  ;;  %v7951_v9 = vsub.f32 %v7785_v28, %v7813_v31  ;;  %v2872_v24 = vmul.f32 %v7945_v2, %v7945_v2 }
 0x650   :  { %v2982_v58 = vadd.f32 %v2981_v19, %v2833_v45  ;;  %v7957_v45 = vsub.f32 %v7788_v36, %v7813_v31  ;;  %v2875_v28 = vmul.f32 %v7951_v9, %v7951_v9 }
 0x652   :  { %v2983_v26 = vadd.f32 %v2982_v58, %v2836_v6  ;;  %v7963_v6 = vsub.f32 %v7791_v38, %v7813_v31  ;;  %v2878_v36 = vmul.f32 %v7957_v45, %v7957_v45 }
 0x654   :  { %v2984_v29 = vadd.f32 %v2983_v26, %v2839_v12  ;;  %v7969_v12 = vsub.f32 %v7794_v50, %v7813_v31  ;;  %v2881_v38 = vmul.f32 %v7963_v6, %v7963_v6 }
 0x656   :  { %v2985_v5 = vadd.f32 %v2984_v29, %v2842_v18  ;;  %v7975_v18 = vsub.f32 %v7797_v57, %v7813_v31  ;;  %v2884_v50 = vmul.f32 %v7969_v12, %v7969_v12 }
 0x658   :  { %v2986_v54 = vadd.f32 %v2985_v5, %v2845_v8  ;;  %v7981_v8 = vsub.f32 %v7800_v35, %v7813_v31  ;;  %v2887_v57 = vmul.f32 %v7975_v18, %v7975_v18 }
 0x65a   :  { %v2987_v60 = vadd.f32 %v2986_v54, %v2848_v63  ;;  %v7987_v63 = vsub.f32 %v7803_v43, %v7813_v31  ;;  %v2890_v35 = vmul.f32 %v7981_v8, %v7981_v8 }
 0x65c   :  { %v2988_v46 = vadd.f32 %v2987_v60, %v2851_v0  ;;  %v7993_v0 = vsub.f32 %v7806_v23, %v7813_v31  ;;  %v2893_v43 = vmul.f32 %v7987_v63, %v7987_v63 }
 0x65e   :  { %v2989_v17 = vadd.f32 %v2988_v46, %v2854_v11  ;;  %v7999_v11 = vsub.f32 %v7810_v41, %v7813_v31 }
 0x660   :  { %v2990_v62 = vadd.f32 %v2989_v17, %v2857_v40  ;;  %v2896_v40 = vmul.f32 %v7993_v0, %v7993_v0  ;;  %v2899_v23 = vmul.f32 %v7999_v11, %v7999_v11 }
 0x662   :  { %v2991_v33 = vadd.f32 %v2990_v62, %v2860_v47 }
 0x664   :  { %v2992_v39 = vadd.f32 %v2991_v33, %v2863_v3 }
 0x666   :  { %v2993_v52 = vadd.f32 %v2992_v39, %v2866_v7 }
 0x668   :  { %v2994_v19 = vadd.f32 %v2993_v52, %v2869_v55 }
 0x66a   :  { %v2995_v58 = vadd.f32 %v2994_v19, %v2872_v24 }
 0x66c   :  { %v2996_v26 = vadd.f32 %v2995_v58, %v2875_v28 }
 0x66e   :  { %v2997_v29 = vadd.f32 %v2996_v26, %v2878_v36 }
 0x670   :  { %v2998_v5 = vadd.f32 %v2997_v29, %v2881_v38  ;;  %v2592_v29 = vld [vmem:[%s9221_s5] sm:$0x7] }
 0x672   :  { %v2999_v54 = vadd.f32 %v2998_v5, %v2884_v50 }
 0x674   :  { %v3000_v60 = vadd.f32 %v2999_v54, %v2887_v57  ;;  %v2593_v57 = vld [vmem:[%s9222_s6] sm:$0x7] }
 0x676   :  { %v3001_v46 = vadd.f32 %v3000_v60, %v2890_v35 }
 0x678   :  { %v3002_v17 = vadd.f32 %v3001_v46, %v2893_v43  ;;  %v8021_v46 = vperm.slane %v2593_v57, 0 }
 0x67a   :  { %v3003_v47 = vadd.f32 %v3002_v17, %v2896_v40  ;;  %v8023_v40 = vperm.slane %v2593_v57, 1  ;;  %v8025_v17 = vperm.slane %v2593_v57, 2  ;;  %v10329_v57 = vld [vmem:[#allocation39_spill] sm:$0xff] }
 0x67c   :  { %v3004_v62 = vadd.f32 %v3003_v47, %v2899_v23  ;;  %v10319_v23 = vld [vmem:[#allocation12_spill] sm:$0xff] }
 0x67e   :  { %v3005_v3 = vrot.slane %v3004_v62, 4 }
 0x680   :  { %v3006_v33 = vadd.f32 %v3005_v3, %v3004_v62  ;;  %v10320_v3 = vld [vmem:[#allocation64_spill] sm:$0xff] }
 0x682   :  { %v3007_v7 = vrot.slane %v3006_v33, 2 }
 0x684   :  { %v3008_v39 = vadd.f32 %v3007_v7, %v3006_v33  ;;  %v10321_v7 = vld [vmem:[#allocation74_spill] sm:$0xff] }
 0x686   :  { %v3009_v55 = vrot.slane %v3008_v39, 1 }
 0x688   :  { %v3010_v41 = vadd.f32 %v3009_v55, %v3008_v39 }
 0x68a   :  { %v3013_v31 = vmul.f32 0.00390625, %v3010_v41  ;;  %v10322_v41 = vld [vmem:[#allocation15_spill] sm:$0xff] }
 0x68c   :  { %v3016_v52 = vadd.f32 1e-05, %v3013_v31  ;;  %v10323_v31 = vld [vmem:[#allocation72_spill] sm:$0xff] }
 0x68e   :  { %4516 = vrsqrt.f32 %v3016_v52  ;;  %vm3043_vm3 = vweird.f32 %v3016_v52 }
 0x694   :  { %v4517_v24 = vpop.eup %4516 }
 0x695   :  { %v3038_v19 = vmul.f32 %v4517_v24, %v3016_v52  ;;  %vm3044_vm2 = vweird.f32 %v4517_v24 }
 0x696   :  { %vm3045_vm4 = vmor %vm3043_vm3, %vm3044_vm2 }
 0x697   :  { %v3039_v28 = vmul.f32 %v4517_v24, %v3038_v19 }
 0x699   :  { %v3040_v58 = vmul.f32 0.5, %v3039_v28 }
 0x69b   :  { %v3041_v36 = vsub.f32 1.5, %v3040_v58  ;;  %v10325_v58 = vld [vmem:[#allocation55_spill] sm:$0xff] }
 0x69d   :  { %v3042_v26 = vmul.f32 %v4517_v24, %v3041_v36 }
 0x69f   :  { %v3046_v38 = vsel %vm3045_vm4, %v4517_v24, %v3042_v26  ;;  %v10324_v24 = vld [vmem:[#allocation47_spill] sm:$0xff]  ;;  %v10326_v26 = vld [vmem:[#allocation28_spill] sm:$0xff] }
 0x6a0   :  { %v3051_v50 = vrot.slane %v3046_v38, 6 }
 0x6a2   :  { %v3053_v5 = vsel %vm953_vm11, %v7747_v15, %v3051_v50  ;;  %v10328_v50 = vld [vmem:[#allocation13_spill] sm:$0xff] }
 0x6a3   :  { %v3055_v54 = vmul.f32 %v3053_v5, %v2592_v29  ;;  %v10327_v29 = vld [vmem:[#allocation22_spill] sm:$0xff] }
 0x6a5   :  { %v8015_v35 = vperm.slane %v3055_v54, 0  ;;  %v8017_v60 = vperm.slane %v3055_v54, 1  ;;  %v8019_v43 = vperm.slane %v3055_v54, 2 }
 0x6a7   :  { %v8029_v15 = vmul.f32 %v8015_v35, %v10319_v23  ;;  %v8033_v47 = vmul.f32 %v8017_v60, %v7535_v44  ;;  %v8037_v62 = vmul.f32 %v8019_v43, %v7817_v59  ;;  %v8041_v33 = vmul.f32 %v8015_v35, %v10320_v3  ;;  %v10330_v23 = vld [vmem:[#allocation25_spill] sm:$0xff] }
 0x6a8   :  { %v8045_v39 = vmul.f32 %v8017_v60, %v10321_v7  ;;  %v8049_v55 = vmul.f32 %v8019_v43, %v7821_v37  ;;  %v8053_v44 = vmul.f32 %v8015_v35, %v10322_v41  ;;  %v8057_v59 = vmul.f32 %v8017_v60, %v10323_v31  ;;  %v10331_v7 = vld [vmem:[#allocation36_spill] sm:$0xff]  ;;  %v10332_v31 = vld [vmem:[#allocation73_spill] sm:$0xff] }
 0x6a9   :  { %v8061_v52 = vmul.f32 %v8019_v43, %v7825_v30  ;;  %v8065_v19 = vmul.f32 %v8015_v35, %v10324_v24  ;;  %v8069_v37 = vmul.f32 %v8017_v60, %v7552_v20  ;;  %v8073_v28 = vmul.f32 %v8019_v43, %v7833_v27 }
 0x6aa   :  { %v8077_v36 = vmul.f32 %v8015_v35, %v10325_v58  ;;  %v8081_v30 = vmul.f32 %v8017_v60, %v10326_v26  ;;  %v8085_v38 = vmul.f32 %v8019_v43, %v7837_v13  ;;  %v8089_v20 = vmul.f32 %v8015_v35, %v10327_v29  ;;  %v10333_v58 = vld [vmem:[#allocation24_spill] sm:$0xff]  ;;  %v10334_v29 = vld [vmem:[#allocation19_spill] sm:$0xff] }
 0x6ab   :  { %v8093_v27 = vmul.f32 %v8017_v60, %v10328_v50  ;;  %v8097_v5 = vmul.f32 %v8019_v43, %v7843_v22  ;;  %v8101_v54 = vmul.f32 %v8015_v35, %v10329_v57  ;;  %v8105_v13 = vmul.f32 %v8017_v60, %v10330_v23  ;;  %v10336_v57 = vld [vmem:[#allocation65_spill] sm:$0xff] }
 0x6ac   :  { %v8109_v3 = vmul.f32 %v8019_v43, %v7849_v32  ;;  %v8113_v41 = vmul.f32 %v8015_v35, %v10331_v7  ;;  %v8117_v22 = vmul.f32 %v8017_v60, %v10332_v31  ;;  %v8121_v24 = vmul.f32 %v8019_v43, %v7855_v34  ;;  %v10338_v7 = vld [vmem:[#allocation30_spill] sm:$0xff] }
 0x6ad   :  { %v8125_v26 = vmul.f32 %v8015_v35, %v10333_v58  ;;  %v8129_v32 = vmul.f32 %v8017_v60, %v10334_v29  ;;  %v8133_v50 = vmul.f32 %v8019_v43, %v7861_v61  ;;  %v8137_v23 = vmul.f32 %v8015_v35, %v10336_v57  ;;  %v10340_v58 = vld [vmem:[#allocation26_spill] sm:$0xff] }
 0x6ae   :  { %v8141_v34 = vmul.f32 %v8017_v60, %v10338_v7  ;;  %v8145_v31 = vmul.f32 %v8019_v43, %v7867_v25  ;;  %v8149_v29 = vmul.f32 %v8015_v35, %v10340_v58  ;;  %v8157_v57 = vmul.f32 %v8019_v43, %v7873_v51 }
 0x6af   :  { %10335 = vst [vmem:[#allocation23_spill] sm:$0xff] %v8129_v32  ;;  %v10342_v32 = vld [vmem:[#allocation29_spill] sm:$0xff]  ;;  %v8169_v58 = vmul.f32 %v8019_v43, %v7879_v21 }
 0x6b0   :  { %10337 = vst [vmem:[#allocation59_spill] sm:$0xff] %v8137_v23  ;;  %v8153_v61 = vmul.f32 %v8017_v60, %v10342_v32  ;;  %v10344_v23 = vld [vmem:[#allocation56_spill] sm:$0xff] }
 0x6b1   :  { %10339 = vst [vmem:[#allocation31_spill] sm:$0xff] %v8141_v34  ;;  %v8161_v7 = vmul.f32 %v8015_v35, %v10344_v23  ;;  %v10346_v34 = vld [vmem:[#allocation33_spill] sm:$0xff]  ;;  %v8181_v23 = vmul.f32 %v8019_v43, %v7885_v53 }
 0x6b2   :  { %10341 = vst [vmem:[#allocation21_spill] sm:$0xff] %v8149_v29  ;;  %v8165_v25 = vmul.f32 %v8017_v60, %v10346_v34  ;;  %v10348_v29 = vld [vmem:[#allocation67_spill] sm:$0xff] }
 0x6b3   :  { %10343 = vst [vmem:[#allocation27_spill] sm:$0xff] %v8153_v61  ;;  %v8173_v32 = vmul.f32 %v8015_v35, %v10348_v29  ;;  %v10350_v61 = vld [vmem:[#allocation69_spill] sm:$0xff]  ;;  %v8193_v29 = vmul.f32 %v8019_v43, %v7891_v42 }
 0x6b4   :  { %10345 = vst [vmem:[#allocation34_spill] sm:$0xff] %v8161_v7  ;;  %v8177_v51 = vmul.f32 %v8017_v60, %v10350_v61  ;;  %v10352_v7 = vld [vmem:[#allocation66_spill] sm:$0xff] }
 0x6b5   :  { %10347 = vst [vmem:[#allocation12_spill] sm:$0xff] %v8165_v25  ;;  %v8185_v34 = vmul.f32 %v8015_v35, %v10352_v7  ;;  %v10354_v25 = vld [vmem:[#allocation60_spill] sm:$0xff]  ;;  %v8205_v7 = vmul.f32 %v8019_v43, %v7897_v56 }
 0x6b6   :  { %10349 = vst [vmem:[#allocation64_spill] sm:$0xff] %v8173_v32  ;;  %v8189_v21 = vmul.f32 %v8017_v60, %v10354_v25  ;;  %v10356_v32 = vld [vmem:[#allocation58_spill] sm:$0xff] }
 0x6b7   :  { %10351 = vst [vmem:[#allocation74_spill] sm:$0xff] %v8177_v51  ;;  %v8197_v61 = vmul.f32 %v8015_v35, %v10356_v32  ;;  %v10358_v51 = vld [vmem:[#allocation43_spill] sm:$0xff]  ;;  %v8217_v32 = vmul.f32 %v8019_v43, %v7903_v10 }
 0x6b8   :  { %10353 = vst [vmem:[#allocation15_spill] sm:$0xff] %v8185_v34  ;;  %v8201_v53 = vmul.f32 %v8017_v60, %v10358_v51  ;;  %v10360_v34 = vld [vmem:[#allocation40_spill] sm:$0xff] }
 0x6b9   :  { %10355 = vst [vmem:[#allocation72_spill] sm:$0xff] %v8189_v21  ;;  %v8209_v25 = vmul.f32 %v8015_v35, %v10360_v34  ;;  %v10362_v21 = vld [vmem:[#allocation70_spill] sm:$0xff]  ;;  %v8229_v34 = vmul.f32 %v8019_v43, %v7909_v48 }
 0x6ba   :  { %10357 = vst [vmem:[#allocation47_spill] sm:$0xff] %v8197_v61  ;;  %v8213_v42 = vmul.f32 %v8017_v60, %v10362_v21  ;;  %v10364_v61 = vld [vmem:[#allocation77_spill] sm:$0xff] }
 0x6bb   :  { %10359 = vst [vmem:[#allocation55_spill] sm:$0xff] %v8201_v53  ;;  %v8221_v51 = vmul.f32 %v8015_v35, %v10364_v61  ;;  %v10366_v53 = vld [vmem:[#allocation32_spill] sm:$0xff]  ;;  %v8241_v61 = vmul.f32 %v8019_v43, %v7915_v16 }
 0x6bc   :  { %10361 = vst [vmem:[#allocation28_spill] sm:$0xff] %v8209_v25  ;;  %v8225_v56 = vmul.f32 %v8017_v60, %v10366_v53  ;;  %v10368_v25 = vld [vmem:[#allocation68_spill] sm:$0xff] }
 0x6bd   :  { %10363 = vst [vmem:[#allocation22_spill] sm:$0xff] %v8213_v42  ;;  %v8233_v21 = vmul.f32 %v8015_v35, %v10368_v25  ;;  %v10370_v42 = vld [vmem:[#allocation42_spill] sm:$0xff]  ;;  %v8253_v25 = vmul.f32 %v8019_v43, %v7921_v1 }
 0x6be   :  { %10365 = vst [vmem:[#allocation13_spill] sm:$0xff] %v8221_v51  ;;  %v8237_v10 = vmul.f32 %v8017_v60, %v10370_v42  ;;  %v10372_v51 = vld [vmem:[#allocation78_spill] sm:$0xff] }
 0x6bf   :  { %10367 = vst [vmem:[#allocation39_spill] sm:$0xff] %v8225_v56  ;;  %v8245_v53 = vmul.f32 %v8015_v35, %v10372_v51  ;;  %v10374_v56 = vld [vmem:[#allocation35_spill] sm:$0xff]  ;;  %v8265_v51 = vmul.f32 %v8019_v43, %v7927_v49 }
 0x6c0   :  { %10369 = vst [vmem:[#allocation25_spill] sm:$0xff] %v8233_v21  ;;  %v8249_v48 = vmul.f32 %v8017_v60, %v10374_v56  ;;  %v10376_v21 = vld [vmem:[#allocation76_spill] sm:$0xff] }
 0x6c1   :  { %10371 = vst [vmem:[#allocation36_spill] sm:$0xff] %v8237_v10  ;;  %v8257_v42 = vmul.f32 %v8015_v35, %v10376_v21  ;;  %v10378_v10 = vld [vmem:[#allocation62_spill] sm:$0xff]  ;;  %v8277_v21 = vmul.f32 %v8019_v43, %v7933_v14 }
 0x6c2   :  { %10373 = vst [vmem:[#allocation73_spill] sm:$0xff] %v8245_v53  ;;  %v8261_v16 = vmul.f32 %v8017_v60, %v10378_v10  ;;  %v10380_v53 = vld [vmem:[#allocation79_spill] sm:$0xff] }
 0x6c3   :  { %10375 = vst [vmem:[#allocation24_spill] sm:$0xff] %v8249_v48  ;;  %v8269_v56 = vmul.f32 %v8015_v35, %v10380_v53  ;;  %v10382_v48 = vld [vmem:[#allocation45_spill] sm:$0xff]  ;;  %v8289_v53 = vmul.f32 %v8019_v43, %v7939_v4 }
 0x6c4   :  { %10377 = vst [vmem:[#allocation19_spill] sm:$0xff] %v8257_v42  ;;  %v8273_v1 = vmul.f32 %v8017_v60, %v10382_v48  ;;  %v10384_v42 = vld [vmem:[#allocation63_spill] sm:$0xff] }
 0x6c5   :  { %10379 = vst [vmem:[#allocation65_spill] sm:$0xff] %v8261_v16  ;;  %v8281_v10 = vmul.f32 %v8015_v35, %v10384_v42  ;;  %v10386_v16 = vld [vmem:[#allocation48_spill] sm:$0xff]  ;;  %v8301_v42 = vmul.f32 %v8019_v43, %v7945_v2 }
 0x6c6   :  { %10381 = vst [vmem:[#allocation30_spill] sm:$0xff] %v8269_v56  ;;  %v8285_v49 = vmul.f32 %v8017_v60, %v10386_v16  ;;  %v10388_v56 = vld [vmem:[#allocation38_spill] sm:$0xff] }
 0x6c7   :  { %10383 = vst [vmem:[#allocation26_spill] sm:$0xff] %v8273_v1  ;;  %v8293_v48 = vmul.f32 %v8015_v35, %v10388_v56  ;;  %v10390_v1 = vld [vmem:[#allocation44_spill] sm:$0xff]  ;;  %v8313_v56 = vmul.f32 %v8019_v43, %v7951_v9 }
 0x6c8   :  { %10385 = vst [vmem:[#allocation29_spill] sm:$0xff] %v8281_v10  ;;  %v8297_v14 = vmul.f32 %v8017_v60, %v10390_v1  ;;  %v10392_v10 = vld [vmem:[#allocation50_spill] sm:$0xff] }
 0x6c9   :  { %10387 = vst [vmem:[#allocation56_spill] sm:$0xff] %v8285_v49  ;;  %v8305_v16 = vmul.f32 %v8015_v35, %v10392_v10  ;;  %v10394_v49 = vld [vmem:[#allocation46_spill] sm:$0xff]  ;;  %v8325_v10 = vmul.f32 %v8019_v43, %v7957_v45 }
 0x6ca   :  { %10389 = vst [vmem:[#allocation33_spill] sm:$0xff] %v8293_v48  ;;  %v8309_v4 = vmul.f32 %v8017_v60, %v10394_v49  ;;  %v10396_v48 = vld [vmem:[#allocation75_spill] sm:$0xff] }
 0x6cb   :  { %10391 = vst [vmem:[#allocation67_spill] sm:$0xff] %v8297_v14  ;;  %v8317_v1 = vmul.f32 %v8015_v35, %v10396_v48  ;;  %v10398_v14 = vld [vmem:[#allocation52_spill] sm:$0xff]  ;;  %v8337_v48 = vmul.f32 %v8019_v43, %v7963_v6 }
 0x6cc   :  { %10393 = vst [vmem:[#allocation69_spill] sm:$0xff] %v8305_v16  ;;  %v8321_v2 = vmul.f32 %v8017_v60, %v10398_v14  ;;  %v10400_v16 = vld [vmem:[#allocation41_spill] sm:$0xff] }
 0x6cd   :  { %10395 = vst [vmem:[#allocation66_spill] sm:$0xff] %v8309_v4  ;;  %v8329_v49 = vmul.f32 %v8015_v35, %v10400_v16  ;;  %v10402_v4 = vld [vmem:[#allocation49_spill] sm:$0xff]  ;;  %v8349_v16 = vmul.f32 %v8019_v43, %v7969_v12 }
 0x6ce   :  { %10397 = vst [vmem:[#allocation60_spill] sm:$0xff] %v8317_v1  ;;  %v8333_v9 = vmul.f32 %v8017_v60, %v10402_v4  ;;  %v10404_v1 = vld [vmem:[#allocation53_spill] sm:$0xff] }
 0x6cf   :  { %10399 = vst [vmem:[#allocation58_spill] sm:$0xff] %v8321_v2  ;;  %v8341_v14 = vmul.f32 %v8015_v35, %v10404_v1  ;;  %v10406_v2 = vld [vmem:[#allocation54_spill] sm:$0xff]  ;;  %v8361_v1 = vmul.f32 %v8019_v43, %v7975_v18 }
 0x6d0   :  { %10401 = vst [vmem:[#allocation43_spill] sm:$0xff] %v8329_v49  ;;  %v8345_v45 = vmul.f32 %v8017_v60, %v10406_v2  ;;  %v10408_v49 = vld [vmem:[#allocation51_spill] sm:$0xff] }
 0x6d1   :  { %10403 = vst [vmem:[#allocation40_spill] sm:$0xff] %v8333_v9  ;;  %v8353_v4 = vmul.f32 %v8015_v35, %v10408_v49  ;;  %v10410_v9 = vld [vmem:[#allocation57_spill] sm:$0xff]  ;;  %v8373_v49 = vmul.f32 %v8019_v43, %v7981_v8 }
 0x6d2   :  { %10405 = vst [vmem:[#allocation70_spill] sm:$0xff] %v8341_v14  ;;  %v8357_v6 = vmul.f32 %v8017_v60, %v10410_v9  ;;  %v10412_v14 = vld [vmem:[#allocation14_spill] sm:$0xff] }
 0x6d3   :  { %10407 = vst [vmem:[#allocation77_spill] sm:$0xff] %v8345_v45  ;;  %v8365_v2 = vmul.f32 %v8015_v35, %v10412_v14  ;;  %v10414_v45 = vld [vmem:[#allocation61_spill] sm:$0xff]  ;;  %v8385_v14 = vmul.f32 %v8019_v43, %v7987_v63 }
 0x6d4   :  { %10409 = vst [vmem:[#allocation32_spill] sm:$0xff] %v8353_v4  ;;  %v8369_v12 = vmul.f32 %v8017_v60, %v10414_v45  ;;  %v10416_v4 = vld [vmem:[#allocation37_spill] sm:$0xff] }
 0x6d5   :  { %10411 = vst [vmem:[#allocation68_spill] sm:$0xff] %v8357_v6  ;;  %v8377_v9 = vmul.f32 %v8015_v35, %v10416_v4  ;;  %v10418_v6 = vld [vmem:[#allocation71_spill] sm:$0xff]  ;;  %v8397_v4 = vmul.f32 %v8019_v43, %v7993_v0  ;;  %v8417_v0 = vadd.f32 %v8023_v40, %v8033_v47  ;;  %v8441_v47 = vadd.f32 %v8023_v40, %v8057_v59 }
 0x6d6   :  { %10413 = vst [vmem:[#allocation42_spill] sm:$0xff] %v8365_v2  ;;  %v8381_v18 = vmul.f32 %v8017_v60, %v10418_v6  ;;  %v10420_v2 = vld [vmem:[#allocation17_spill] sm:$0xff]  ;;  %v8465_v59 = vadd.f32 %v8023_v40, %v8081_v30  ;;  %v8489_v30 = vadd.f32 %v8023_v40, %v8105_v13  ;;  %v10432_v13 = vld [vmem:[#allocation23_spill] sm:$0xff] }
 0x6d7   :  { %10415 = vst [vmem:[#allocation78_spill] sm:$0xff] %v8369_v12  ;;  %v8389_v45 = vmul.f32 %v8015_v35, %v10420_v2  ;;  %v10421_v12 = vld [vmem:[#allocation16_spill] sm:$0xff]  ;;  %v8409_v2 = vmul.f32 %v8019_v43, %v7999_v11  ;;  %v8429_v11 = vadd.f32 %v8023_v40, %v8045_v39  ;;  %v8433_v43 = vadd.f32 %v8025_v17, %v8049_v55 }
 0x6d8   :  { %10417 = vst [vmem:[#allocation35_spill] sm:$0xff] %v8377_v9  ;;  %v8393_v8 = vmul.f32 %v8017_v60, %v10421_v12  ;;  %v10422_v9 = vld [vmem:[#allocation20_spill] sm:$0xff]  ;;  %v8413_v12 = vadd.f32 %v8021_v46, %v8029_v15  ;;  %v8437_v15 = vadd.f32 %v8021_v46, %v8053_v44  ;;  %v8453_v39 = vadd.f32 %v8023_v40, %v8069_v37 }
 0x6d9   :  { %10419 = vst [vmem:[#allocation76_spill] sm:$0xff] %v8381_v18  ;;  %v8401_v6 = vmul.f32 %v8015_v35, %v10422_v9  ;;  %v10423_v18 = vld [vmem:[#allocation18_spill] sm:$0xff]  ;;  %v8421_v35 = vadd.f32 %v8025_v17, %v8037_v62  ;;  %v8445_v62 = vadd.f32 %v8025_v17, %v8061_v52  ;;  %v8457_v55 = vadd.f32 %v8025_v17, %v8073_v28  ;;  %v10435_v9 = vld [vmem:[#allocation59_spill] sm:$0xff] }
 0x6da   :  { %v8405_v63 = vmul.f32 %v8017_v60, %v10423_v18  ;;  %v8425_v60 = vadd.f32 %v8021_v46, %v8041_v33  ;;  %v8449_v33 = vadd.f32 %v8021_v46, %v8065_v19  ;;  %v8461_v44 = vadd.f32 %v8021_v46, %v8077_v36  ;;  %10427 = vst [vmem:[#allocation63_spill] sm:$0xff] %v8489_v30  ;;  %v10437_v18 = vld [vmem:[#allocation31_spill] sm:$0xff] }
 0x6db   :  { %v8469_v52 = vadd.f32 %v8025_v17, %v8085_v38  ;;  %v8473_v19 = vadd.f32 %v8021_v46, %v8089_v20  ;;  %v8477_v37 = vadd.f32 %v8023_v40, %v8093_v27  ;;  %v8481_v28 = vadd.f32 %v8025_v17, %v8097_v5 }
 0x6dc   :  { %v8485_v36 = vadd.f32 %v8021_v46, %v8101_v54  ;;  %v8493_v38 = vadd.f32 %v8025_v17, %v8109_v3  ;;  %v8497_v20 = vadd.f32 %v8021_v46, %v8113_v41  ;;  %v8501_v27 = vadd.f32 %v8023_v40, %v8117_v22 }
 0x6dd   :  { %10424 = vst [vmem:[#allocation62_spill] sm:$0xff] %v8469_v52  ;;  %v8505_v5 = vadd.f32 %v8025_v17, %v8121_v24  ;;  %v8509_v54 = vadd.f32 %v8021_v46, %v8125_v26  ;;  %v8513_v3 = vadd.f32 %v8023_v40, %v10432_v13  ;;  %v8517_v41 = vadd.f32 %v8025_v17, %v8133_v50 }
 0x6de   :  { %10425 = vst [vmem:[#allocation79_spill] sm:$0xff] %v8477_v37  ;;  %v8521_v22 = vadd.f32 %v8021_v46, %v10435_v9  ;;  %v8525_v24 = vadd.f32 %v8023_v40, %v10437_v18  ;;  %v8529_v26 = vadd.f32 %v8025_v17, %v8145_v31  ;;  %v8541_v9 = vadd.f32 %v8025_v17, %v8157_v57 }
 0x6df   :  { %10426 = vst [vmem:[#allocation45_spill] sm:$0xff] %v8481_v28 }
 0x6e0   :  { %10428 = vst [vmem:[#allocation48_spill] sm:$0xff] %v8493_v38 }
 0x6e1   :  { %10429 = vst [vmem:[#allocation38_spill] sm:$0xff] %v8501_v27 }
 0x6e2   :  { %10430 = vst [vmem:[#allocation44_spill] sm:$0xff] %v8505_v5 }
 0x6e3   :  { %10431 = vst [vmem:[#allocation50_spill] sm:$0xff] %v8509_v54  ;;  %v10440_v54 = vld [vmem:[#allocation21_spill] sm:$0xff] }
 0x6e4   :  { %10433 = vst [vmem:[#allocation46_spill] sm:$0xff] %v8513_v3  ;;  %v8533_v13 = vadd.f32 %v8021_v46, %v10440_v54  ;;  %v10442_v3 = vld [vmem:[#allocation27_spill] sm:$0xff]  ;;  %v8553_v54 = vadd.f32 %v8025_v17, %v8169_v58 }
 0x6e5   :  { %10434 = vst [vmem:[#allocation75_spill] sm:$0xff] %v8517_v41  ;;  %v8537_v50 = vadd.f32 %v8023_v40, %v10442_v3 }
 0x6e6   :  { %10436 = vst [vmem:[#allocation52_spill] sm:$0xff] %v8521_v22  ;;  %v10445_v22 = vld [vmem:[#allocation34_spill] sm:$0xff] }
 0x6e7   :  { %10438 = vst [vmem:[#allocation41_spill] sm:$0xff] %v8525_v24  ;;  %v8545_v18 = vadd.f32 %v8021_v46, %v10445_v22  ;;  %v10447_v24 = vld [vmem:[#allocation12_spill] sm:$0xff]  ;;  %v8565_v22 = vadd.f32 %v8025_v17, %v8181_v23 }
 0x6e8   :  { %10439 = vst [vmem:[#allocation49_spill] sm:$0xff] %v8529_v26  ;;  %v8549_v31 = vadd.f32 %v8023_v40, %v10447_v24 }
 0x6e9   :  { %10441 = vst [vmem:[#allocation53_spill] sm:$0xff] %v8533_v13  ;;  %v10450_v13 = vld [vmem:[#allocation64_spill] sm:$0xff] }
 0x6ea   :  { %10443 = vst [vmem:[#allocation54_spill] sm:$0xff] %v8537_v50  ;;  %v8557_v3 = vadd.f32 %v8021_v46, %v10450_v13  ;;  %v10452_v50 = vld [vmem:[#allocation74_spill] sm:$0xff]  ;;  %v8577_v13 = vadd.f32 %v8025_v17, %v8193_v29 }
 0x6eb   :  { %10444 = vst [vmem:[#allocation51_spill] sm:$0xff] %v8541_v9  ;;  %v8561_v57 = vadd.f32 %v8023_v40, %v10452_v50 }
 0x6ec   :  { %10446 = vst [vmem:[#allocation57_spill] sm:$0xff] %v8545_v18  ;;  %v10455_v18 = vld [vmem:[#allocation15_spill] sm:$0xff] }
 0x6ed   :  { %10448 = vst [vmem:[#allocation14_spill] sm:$0xff] %v8549_v31  ;;  %v8569_v24 = vadd.f32 %v8021_v46, %v10455_v18  ;;  %v10457_v31 = vld [vmem:[#allocation72_spill] sm:$0xff]  ;;  %v8589_v18 = vadd.f32 %v8025_v17, %v8205_v7 }
 0x6ee   :  { %10449 = vst [vmem:[#allocation61_spill] sm:$0xff] %v8553_v54  ;;  %v8573_v58 = vadd.f32 %v8023_v40, %v10457_v31  ;;  %v10538_v37 = vld [vmem:[#allocation52_spill] sm:$0xff] }
 0x6ef   :  { %10451 = vst [vmem:[#allocation37_spill] sm:$0xff] %v8557_v3  ;;  %v10460_v3 = vld [vmem:[#allocation47_spill] sm:$0xff] }
 0x6f0   :  { %10453 = vst [vmem:[#allocation71_spill] sm:$0xff] %v8561_v57  ;;  %v8581_v50 = vadd.f32 %v8021_v46, %v10460_v3  ;;  %v10462_v57 = vld [vmem:[#allocation55_spill] sm:$0xff]  ;;  %v8601_v3 = vadd.f32 %v8025_v17, %v8217_v32  ;;  %v10540_v30 = vld [vmem:[#allocation53_spill] sm:$0xff] }
 0x6f1   :  { %10454 = vst [vmem:[#allocation17_spill] sm:$0xff] %v8565_v22  ;;  %v8585_v23 = vadd.f32 %v8023_v40, %v10462_v57 }
 0x6f2   :  { %10456 = vst [vmem:[#allocation16_spill] sm:$0xff] %v8569_v24  ;;  %v10465_v24 = vld [vmem:[#allocation28_spill] sm:$0xff] }
 0x6f3   :  { %10458 = vst [vmem:[#allocation20_spill] sm:$0xff] %v8573_v58  ;;  %v8593_v31 = vadd.f32 %v8021_v46, %v10465_v24  ;;  %v10467_v58 = vld [vmem:[#allocation22_spill] sm:$0xff]  ;;  %v8613_v24 = vadd.f32 %v8025_v17, %v8229_v34  ;;  %v10542_v27 = vld [vmem:[#allocation57_spill] sm:$0xff] }
 0x6f4   :  { %10459 = vst [vmem:[#allocation18_spill] sm:$0xff] %v8577_v13  ;;  %v8597_v29 = vadd.f32 %v8023_v40, %v10467_v58 }
 0x6f5   :  { %10461 = vst [vmem:[#allocation23_spill] sm:$0xff] %v8581_v50  ;;  %v10470_v50 = vld [vmem:[#allocation13_spill] sm:$0xff] }
 0x6f6   :  { %10463 = vst [vmem:[#allocation59_spill] sm:$0xff] %v8585_v23  ;;  %v8605_v57 = vadd.f32 %v8021_v46, %v10470_v50  ;;  %v10472_v23 = vld [vmem:[#allocation39_spill] sm:$0xff]  ;;  %v8625_v50 = vadd.f32 %v8025_v17, %v8241_v61  ;;  %v10544_v52 = vld [vmem:[#allocation37_spill] sm:$0xff] }
 0x6f7   :  { %10464 = vst [vmem:[#allocation31_spill] sm:$0xff] %v8589_v18  ;;  %v8609_v7 = vadd.f32 %v8023_v40, %v10472_v23 }
 0x6f8   :  { %10466 = vst [vmem:[#allocation21_spill] sm:$0xff] %v8593_v31  ;;  %v10475_v31 = vld [vmem:[#allocation25_spill] sm:$0xff] }
 0x6f9   :  { %10468 = vst [vmem:[#allocation27_spill] sm:$0xff] %v8597_v29  ;;  %v8617_v58 = vadd.f32 %v8021_v46, %v10475_v31  ;;  %v10477_v29 = vld [vmem:[#allocation36_spill] sm:$0xff]  ;;  %v8637_v31 = vadd.f32 %v8025_v17, %v8253_v25 }
 0x6fa   :  { %10469 = vst [vmem:[#allocation34_spill] sm:$0xff] %v8601_v3  ;;  %v8621_v32 = vadd.f32 %v8023_v40, %v10477_v29  ;;  %v10546_v28 = vld [vmem:[#allocation16_spill] sm:$0xff] }
 0x6fb   :  { %10471 = vst [vmem:[#allocation12_spill] sm:$0xff] %v8605_v57  ;;  %v10480_v57 = vld [vmem:[#allocation73_spill] sm:$0xff] }
 0x6fc   :  { %10473 = vst [vmem:[#allocation64_spill] sm:$0xff] %v8609_v7  ;;  %v8629_v23 = vadd.f32 %v8021_v46, %v10480_v57  ;;  %v10482_v7 = vld [vmem:[#allocation24_spill] sm:$0xff]  ;;  %v8649_v57 = vadd.f32 %v8025_v17, %v8265_v51  ;;  %v10548_v38 = vld [vmem:[#allocation23_spill] sm:$0xff] }
 0x6fd   :  { %10474 = vst [vmem:[#allocation74_spill] sm:$0xff] %v8613_v24  ;;  %v8633_v34 = vadd.f32 %v8023_v40, %v10482_v7 }
 0x6fe   :  { %10476 = vst [vmem:[#allocation15_spill] sm:$0xff] %v8617_v58  ;;  %v10485_v58 = vld [vmem:[#allocation19_spill] sm:$0xff] }
 0x6ff   :  { %10478 = vst [vmem:[#allocation72_spill] sm:$0xff] %v8621_v32  ;;  %v8641_v29 = vadd.f32 %v8021_v46, %v10485_v58  ;;  %v10487_v32 = vld [vmem:[#allocation65_spill] sm:$0xff]  ;;  %v8661_v58 = vadd.f32 %v8025_v17, %v8277_v21 }
 0x700   :  { %10479 = vst [vmem:[#allocation47_spill] sm:$0xff] %v8625_v50  ;;  %v8645_v61 = vadd.f32 %v8023_v40, %v10487_v32  ;;  %v10550_v5 = vld [vmem:[#allocation21_spill] sm:$0xff] }
 0x701   :  { %10481 = vst [vmem:[#allocation55_spill] sm:$0xff] %v8629_v23  ;;  %v10490_v23 = vld [vmem:[#allocation30_spill] sm:$0xff] }
 0x702   :  { %10483 = vst [vmem:[#allocation28_spill] sm:$0xff] %v8633_v34  ;;  %v8653_v7 = vadd.f32 %v8021_v46, %v10490_v23  ;;  %v10492_v34 = vld [vmem:[#allocation26_spill] sm:$0xff]  ;;  %v8673_v23 = vadd.f32 %v8025_v17, %v8289_v53  ;;  %v10552_v41 = vld [vmem:[#allocation12_spill] sm:$0xff] }
 0x703   :  { %10484 = vst [vmem:[#allocation22_spill] sm:$0xff] %v8637_v31  ;;  %v8657_v25 = vadd.f32 %v8023_v40, %v10492_v34 }
 0x704   :  { %10486 = vst [vmem:[#allocation13_spill] sm:$0xff] %v8641_v29  ;;  %v10495_v29 = vld [vmem:[#allocation29_spill] sm:$0xff] }
 0x705   :  { %10488 = vst [vmem:[#allocation39_spill] sm:$0xff] %v8645_v61  ;;  %v8665_v32 = vadd.f32 %v8021_v46, %v10495_v29  ;;  %v10497_v61 = vld [vmem:[#allocation56_spill] sm:$0xff]  ;;  %v8685_v29 = vadd.f32 %v8025_v17, %v8301_v42  ;;  %v10554_v26 = vld [vmem:[#allocation15_spill] sm:$0xff] }
 0x706   :  { %10489 = vst [vmem:[#allocation25_spill] sm:$0xff] %v8649_v57  ;;  %v8669_v51 = vadd.f32 %v8023_v40, %v10497_v61 }
 0x707   :  { %10491 = vst [vmem:[#allocation36_spill] sm:$0xff] %v8653_v7  ;;  %v10500_v7 = vld [vmem:[#allocation33_spill] sm:$0xff] }
 0x708   :  { %10493 = vst [vmem:[#allocation73_spill] sm:$0xff] %v8657_v25  ;;  %v8677_v34 = vadd.f32 %v8021_v46, %v10500_v7  ;;  %v10502_v25 = vld [vmem:[#allocation67_spill] sm:$0xff]  ;;  %v8697_v7 = vadd.f32 %v8025_v17, %v8313_v56 }
 0x709   :  { %10494 = vst [vmem:[#allocation24_spill] sm:$0xff] %v8661_v58  ;;  %v8681_v21 = vadd.f32 %v8023_v40, %v10502_v25  ;;  %v10556_v9 = vld [vmem:[#allocation55_spill] sm:$0xff] }
 0x70a   :  { %10496 = vst [vmem:[#allocation19_spill] sm:$0xff] %v8665_v32  ;;  %v10505_v32 = vld [vmem:[#allocation69_spill] sm:$0xff] }
 0x70b   :  { %10498 = vst [vmem:[#allocation65_spill] sm:$0xff] %v8669_v51  ;;  %v8689_v61 = vadd.f32 %v8021_v46, %v10505_v32  ;;  %v10507_v51 = vld [vmem:[#allocation66_spill] sm:$0xff]  ;;  %v8709_v32 = vadd.f32 %v8025_v17, %v8325_v10  ;;  %v10558_v54 = vld [vmem:[#allocation13_spill] sm:$0xff] }
 0x70c   :  { %10499 = vst [vmem:[#allocation30_spill] sm:$0xff] %v8673_v23  ;;  %v8693_v53 = vadd.f32 %v8023_v40, %v10507_v51 }
 0x70d   :  { %10501 = vst [vmem:[#allocation26_spill] sm:$0xff] %v8677_v34  ;;  %v10510_v34 = vld [vmem:[#allocation60_spill] sm:$0xff] }
 0x70e   :  { %10503 = vst [vmem:[#allocation29_spill] sm:$0xff] %v8681_v21  ;;  %v8701_v25 = vadd.f32 %v8021_v46, %v10510_v34  ;;  %v10512_v21 = vld [vmem:[#allocation58_spill] sm:$0xff]  ;;  %v8721_v34 = vadd.f32 %v8025_v17, %v8337_v48  ;;  %v10560_v22 = vld [vmem:[#allocation36_spill] sm:$0xff] }
 0x70f   :  { %10504 = vst [vmem:[#allocation56_spill] sm:$0xff] %v8685_v29  ;;  %v8705_v42 = vadd.f32 %v8023_v40, %v10512_v21 }
 0x710   :  { %10506 = vst [vmem:[#allocation33_spill] sm:$0xff] %v8689_v61  ;;  %v10514_v61 = vld [vmem:[#allocation43_spill] sm:$0xff] }
 0x711   :  { %10508 = vst [vmem:[#allocation67_spill] sm:$0xff] %v8693_v53  ;;  %v8713_v51 = vadd.f32 %v8021_v46, %v10514_v61  ;;  %v10516_v53 = vld [vmem:[#allocation40_spill] sm:$0xff]  ;;  %v8733_v61 = vadd.f32 %v8025_v17, %v8349_v16  ;;  %v10562_v13 = vld [vmem:[#allocation19_spill] sm:$0xff] }
 0x712   :  { %10509 = vst [vmem:[#allocation69_spill] sm:$0xff] %v8697_v7  ;;  %v8717_v56 = vadd.f32 %v8023_v40, %v10516_v53 }
 0x713   :  { %10511 = vst [vmem:[#allocation66_spill] sm:$0xff] %v8701_v25  ;;  %v10518_v25 = vld [vmem:[#allocation70_spill] sm:$0xff] }
 0x714   :  { %10513 = vst [vmem:[#allocation60_spill] sm:$0xff] %v8705_v42  ;;  %v8725_v21 = vadd.f32 %v8021_v46, %v10518_v25  ;;  %v10520_v42 = vld [vmem:[#allocation77_spill] sm:$0xff]  ;;  %v8745_v25 = vadd.f32 %v8025_v17, %v8361_v1  ;;  %v10564_v18 = vld [vmem:[#allocation26_spill] sm:$0xff] }
 0x715   :  { %10515 = vst [vmem:[#allocation58_spill] sm:$0xff] %v8713_v51  ;;  %v8729_v10 = vadd.f32 %v8023_v40, %v10520_v42  ;;  %v10523_v51 = vld [vmem:[#allocation32_spill] sm:$0xff] }
 0x716   :  { %10517 = vst [vmem:[#allocation43_spill] sm:$0xff] %v8717_v56  ;;  %v8737_v53 = vadd.f32 %v8021_v46, %v10523_v51  ;;  %v10525_v56 = vld [vmem:[#allocation68_spill] sm:$0xff]  ;;  %v8757_v51 = vadd.f32 %v8025_v17, %v8373_v49  ;;  %v8777_v49 = vadd.f32 %v8023_v40, %v8393_v8 }
 0x717   :  { %10519 = vst [vmem:[#allocation40_spill] sm:$0xff] %v8725_v21  ;;  %v8741_v48 = vadd.f32 %v8023_v40, %v10525_v56  ;;  %v10527_v21 = vld [vmem:[#allocation42_spill] sm:$0xff]  ;;  %v10566_v3 = vld [vmem:[#allocation33_spill] sm:$0xff] }
 0x718   :  { %10521 = vst [vmem:[#allocation70_spill] sm:$0xff] %v8729_v10  ;;  %v8749_v42 = vadd.f32 %v8021_v46, %v10527_v21  ;;  %v10528_v10 = vld [vmem:[#allocation78_spill] sm:$0xff]  ;;  %v8769_v21 = vadd.f32 %v8025_v17, %v8385_v14  ;;  %v8789_v14 = vadd.f32 %v8023_v40, %v8405_v63 }
 0x719   :  { %10522 = vst [vmem:[#allocation77_spill] sm:$0xff] %v8733_v61  ;;  %v8753_v16 = vadd.f32 %v8023_v40, %v10528_v10  ;;  %v8773_v10 = vadd.f32 %v8021_v46, %v8389_v45  ;;  %v8793_v45 = vadd.f32 %v8025_v17, %v8409_v2  ;;  %v10577_v61 = vmov %v8777_v49 }
 0x71a   :  { %10524 = vst [vmem:[#allocation32_spill] sm:$0xff] %v8737_v53  ;;  %v10530_v53 = vld [vmem:[#allocation35_spill] sm:$0xff]  ;;  %v10568_v24 = vld [vmem:[#allocation66_spill] sm:$0xff] }
 0x71b   :  { %10526 = vst [vmem:[#allocation68_spill] sm:$0xff] %v8741_v48  ;;  %v8761_v56 = vadd.f32 %v8021_v46, %v10530_v53  ;;  %v10531_v48 = vld [vmem:[#allocation76_spill] sm:$0xff]  ;;  %v8781_v53 = vadd.f32 %v8025_v17, %v8397_v4 }
 0x71c   :  { %10529 = vst [vmem:[#allocation42_spill] sm:$0xff] %v8757_v51  ;;  %v8765_v1 = vadd.f32 %v8023_v40, %v10531_v48  ;;  %v8785_v48 = vadd.f32 %v8021_v46, %v8401_v6  ;;  %v10569_v58 = vld [vmem:[#allocation60_spill] sm:$0xff]  ;;  %v10570_v50 = vld [vmem:[#allocation58_spill] sm:$0xff] }
 0x71d   :  { %10532 = vst [vmem:[#allocation78_spill] sm:$0xff] %v8773_v10  ;;  %v10536_v10 = vld [vmem:[#allocation50_spill] sm:$0xff]  ;;  %v10571_v23 = vld [vmem:[#allocation43_spill] sm:$0xff] }
 0x71e   :  { %10533 = vst [vmem:[#allocation35_spill] sm:$0xff] %v8777_v49  ;;  %v10572_v31 = vld [vmem:[#allocation40_spill] sm:$0xff] }
 0x71f   :  { %10534 = vst [vmem:[#allocation76_spill] sm:$0xff] %v8781_v53 }
 0x720   :  { %10535 = vst [vmem:[#allocation80_spill] sm:$0xff] %v8793_v45 }
 0x722   :  { %v10575_v7 = vld [vmem:[#allocation68_spill] sm:$0xff] }
 0x724   :  { %v10576_v29 = vld [vmem:[#allocation78_spill] sm:$0xff] }
 0x725   :  { %4609 = dma.done.wait [#allocation4 + $0x1], 3072 }
 0x726   :  { %4610 = vsyncadd [#allocation4 + $0x1], 4294964224  ;;  %v4485_v6 = vld [vmem:[#allocation3 + $0x78] sm:$0xff]  ;;  %v4493_v40 = vld [vmem:[#allocation3 + $0xa0] sm:$0xff] }
 0x727   :  { %v4501_v51 = vld [vmem:[#allocation3 + $0x8] sm:$0xff]  ;;  %3605 = vmatpush.bf16.msrb.mxu0 %v4485_v6  ;;  %3694 = vmatpush.bf16.msrb.mxu1 %v4493_v40  ;;  %v4484_v17 = vld [vmem:[#allocation3 + $0x40] sm:$0xff]  ;;  %v4492_v63 = vld [vmem:[#allocation3 + $0x70] sm:$0xff] }
 0x728   :  { %3783 = vmatpush.bf16.msrb.mxu2 %v4501_v51  ;;  %v4500_v2 = vld [vmem:[#allocation3 + $0x20] sm:$0xff]  ;;  %v4483_v49 = vld [vmem:[#allocation3 + $0x28] sm:$0xff]  ;;  %v4491_v8 = vld [vmem:[#allocation3 + $0x50] sm:$0xff] }
 0x729   :  { %v4499_v4 = vld [vmem:[#allocation3 + $0xb8] sm:$0xff]  ;;  %v4482_v46 = vld [vmem:[#allocation3 + $0x60] sm:$0xff]  ;;  %v4481_v6 = vld [vmem:[#allocation3 + $0x48] sm:$0xff] }
 0x72a   :  { %v4490_v53 = vld [vmem:[#allocation3 + $0x38] sm:$0xff]  ;;  %v4498_v45 = vld [vmem:[#allocation3 + $0x80] sm:$0xff]  ;;  %v4480_v51 = vld [vmem:[#allocation3 + $0x10] sm:$0xff] }
 0x72b   :  { %3606 = vmatpush.bf16.msrb.mxu0 %v4484_v17  ;;  %3695 = vmatpush.bf16.msrb.mxu1 %v4492_v63  ;;  %v4489_v40 = vld [vmem:[#allocation3 + $0x98] sm:$0xff]  ;;  %v4496_v17 = vld [vmem:[#allocation3 + $0x30] sm:$0xff] }
 0x72c   :  { %3784 = vmatpush.bf16.msrb.mxu2 %v4500_v2  ;;  %v4497_v57 = vld [vmem:[#allocation3 + $0x58] sm:$0xff]  ;;  %v4495_v2 = vld [vmem:[#allocation3 + $0x68] sm:$0xff] }
 0x72d   :  { %v4488_v63 = vld [vmem:[#allocation3 + $0x18] sm:$0xff] }
 0x72f   :  { %3607 = vmatpush.bf16.msrb.mxu0 %v4483_v49  ;;  %3696 = vmatpush.bf16.msrb.mxu1 %v4491_v8  ;;  %v4479_v49 = vld [vmem:[#allocation3] sm:$0xff]  ;;  %v4487_v8 = vld [vmem:[#allocation3 + $0x90] sm:$0xff] }
 0x730   :  { %3785 = vmatpush.bf16.msrb.mxu2 %v4499_v4  ;;  %v4478_v4 = vld [vmem:[#allocation3 + $0xb0] sm:$0xff] }
 0x733   :  { %3608 = vmatpush.bf16.msrb.mxu0 %v4482_v46  ;;  %3697 = vmatpush.bf16.msrb.mxu1 %v4490_v53  ;;  %v4486_v53 = vld [vmem:[#allocation3 + $0x88] sm:$0xff] }
 0x734   :  { %3786 = vmatpush.bf16.msrb.mxu2 %v4498_v45  ;;  %v4494_v46 = vld [vmem:[#allocation3 + $0xa8] sm:$0xff]  ;;  %v10579_v45 = vmax.f32 %v8413_v12, 0.0  ;;  %v10585_v12 = vmax.f32 %v8437_v15, 0.0  ;;  %v10592_v15 = vmax.f32 %v8473_v19, 0.0  ;;  %v10602_v19 = vld [vmem:[#allocation63_spill] sm:$0xff] }
 0x737   :  { %3609 = vmatpush.bf16.msrb.mxu0 %v4481_v6  ;;  %3698 = vmatpush.bf16.msrb.mxu1 %v4489_v40  ;;  %v10580_v6 = vmax.f32 %v8425_v60, 0.0  ;;  %v10586_v60 = vmax.f32 %v8449_v33, 0.0  ;;  %v10593_v33 = vmax.f32 %v8465_v59, 0.0 }
 0x738   :  { %3787 = vmatpush.bf16.msrb.mxu2 %v4497_v57  ;;  %v10581_v57 = vmax.f32 %v8417_v0, 0.0  ;;  %v10587_v0 = vmax.f32 %v8441_v47, 0.0 }
 0x739   :  { %v3361_v40 = vpack.c.bf16 %v10580_v6, %v10579_v45  ;;  %v10594_v6 = vld [vmem:[#allocation79_spill] sm:$0xff] }
 0x73a   :  { %v10595_v47 = vmax.f32 %v10594_v6, 0.0 }
 0x73b   :  { %3610 = vmatpush.bf16.msrb.mxu0 %v4480_v51  ;;  %3699 = vmatpush.bf16.msrb.mxu1 %v4488_v63  ;;  %v10582_v51 = vmax.f32 %v8429_v11, 0.0  ;;  %v10588_v11 = vmax.f32 %v8453_v39, 0.0  ;;  %v10596_v39 = vld [vmem:[#allocation62_spill] sm:$0xff] }
 0x73c   :  { %3788 = vmatpush.bf16.msrb.mxu2 %v4496_v17  ;;  %v10583_v17 = vmax.f32 %v8421_v35, 0.0  ;;  %v10590_v35 = vmax.f32 %v8457_v55, 0.0  ;;  %v10600_v55 = vmax.f32 %v8485_v36, 0.0  ;;  %v10611_v36 = vmax.f32 %v10538_v37, 0.0  ;;  %v10622_v37 = vld [vmem:[#allocation54_spill] sm:$0xff] }
 0x73d   :  { %v3362_v63 = vpack.c.bf16 %v10582_v51, %v10581_v57  ;;  %v10597_v57 = vmax.f32 %v10596_v39, 0.0  ;;  %v10598_v51 = vld [vmem:[#allocation45_spill] sm:$0xff] }
 0x73f   :  { %3611 = vmatpush.bf16.msrb.mxu0 %v4479_v49  ;;  %3700 = vmatpush.bf16.msrb.mxu1 %v4487_v8  ;;  %v10584_v49 = vmax.f32 %v8433_v43, 0.0 }
 0x740   :  { %3789 = vmatpush.bf16.msrb.mxu2 %v4495_v2  ;;  %v3364_v2 = vpack.c.bf16 %v10586_v60, %v10585_v12  ;;  %v10606_v60 = vld [vmem:[#allocation48_spill] sm:$0xff] }
 0x741   :  { %v3363_v8 = vpack.c.bf16 %v10584_v49, %v10583_v17  ;;  %v10603_v49 = vmax.f32 %v10602_v19, 0.0 }
 0x743   :  { %3612 = vmatpush.bf16.msrb.mxu0 %v4478_v4  ;;  %3701 = vmatpush.bf16.msrb.mxu1 %v4486_v53  ;;  %v3365_v4 = vpack.c.bf16 %v10588_v11, %v10587_v0  ;;  %v10589_v53 = vmax.f32 %v8445_v62, 0.0  ;;  %v10599_v62 = vmax.f32 %v10598_v51, 0.0  ;;  %v10608_v0 = vld [vmem:[#allocation44_spill] sm:$0xff] }
 0x744   :  { %3790 = vmatpush.bf16.msrb.mxu2 %v4494_v46  ;;  %v10591_v46 = vmax.f32 %v8461_v44, 0.0  ;;  %v10601_v44 = vmax.f32 %v8497_v20, 0.0  ;;  %v10609_v11 = vmax.f32 %v10608_v0, 0.0  ;;  %v10612_v20 = vld [vmem:[#allocation46_spill] sm:$0xff]  ;;  %v10634_v0 = vld [vmem:[#allocation20_spill] sm:$0xff] }
 0x745   :  { %v3366_v43 = vpack.c.bf16 %v10590_v35, %v10589_v53  ;;  %v10610_v53 = vmax.f32 %v10536_v10, 0.0  ;;  %v10621_v10 = vmax.f32 %v10542_v27, 0.0  ;;  %v10632_v27 = vld [vmem:[#allocation71_spill] sm:$0xff] }
 0x746   :  { %3613 = vmatmul.bf16.vlgmr.msrb.gmra.mxu0 %v3361_v40  ;;  %3702 = vmatmul.bf16.vlgmr.msrb.gmra.mxu1 %v3362_v63  ;;  %v3367_v45 = vpack.c.bf16 %v10592_v15, %v10591_v46  ;;  %v3368_v40 = vpack.c.bf16 %v10595_v47, %v10593_v33  ;;  %v3369_v63 = vpack.c.bf16 %v10599_v62, %v10597_v57  ;;  %v10614_v46 = vld [vmem:[#allocation41_spill] sm:$0xff]  ;;  %v10616_v33 = vld [vmem:[#allocation75_spill] sm:$0xff]  ;;  %v10620_v57 = vmax.f32 %v10540_v30, 0.0 }
 0x747   :  { %3791 = vmatmul.bf16.vlgmr.msrb.gmra.mxu2 %v3363_v8  ;;  %v3370_v17 = vpack.c.bf16 %v10601_v44, %v10600_v55  ;;  %v10604_v8 = vld [vmem:[#allocation38_spill] sm:$0xff]  ;;  %v3373_v35 = vpack.c.bf16 %v10611_v36, %v10610_v53  ;;  %v10615_v15 = vmax.f32 %v10614_v46, 0.0  ;;  %v10617_v6 = vmax.f32 %v10616_v33, 0.0  ;;  %v10618_v47 = vld [vmem:[#allocation49_spill] sm:$0xff]  ;;  %v10644_v33 = vld [vmem:[#allocation27_spill] sm:$0xff] }
 0x748   :  { %v10605_v59 = vmax.f32 %v10604_v8, 0.0  ;;  %v3376_v51 = vpack.c.bf16 %v10621_v10, %v10620_v57  ;;  %v10623_v62 = vmax.f32 %v10622_v37, 0.0  ;;  %v10631_v30 = vmax.f32 %v10546_v28, 0.0  ;;  %v10636_v53 = vld [vmem:[#allocation17_spill] sm:$0xff]  ;;  %v10642_v28 = vld [vmem:[#allocation59_spill] sm:$0xff]  ;;  %v10648_v57 = vld [vmem:[#allocation34_spill] sm:$0xff] }
 0x749   :  { %v10637_v36 = vmax.f32 %v10636_v53, 0.0  ;;  %v10640_v46 = vmax.f32 %v10548_v38, 0.0  ;;  %v10649_v10 = vmax.f32 %v10648_v57, 0.0  ;;  %v8990_v38 = vld [vmem:[%s9223_s8] ss:$0 sm:$0xff]  ;;  %v10651_v37 = vmax.f32 %v10554_v26, 0.0 }
 0x74a   :  { %v3371_v12 = vpack.c.bf16 %v10605_v59, %v10603_v49  ;;  %v10628_v49 = vld [vmem:[#allocation61_spill] sm:$0xff]  ;;  %v10666_v57 = vld [vmem:[#allocation22_spill] sm:$0xff] }
 0x74b   :  { %v10629_v8 = vmax.f32 %v10628_v49, 0.0 }
 0x756   :  { %3618 = vmatmul.bf16.gmra.mxu0 %v3364_v2  ;;  %3707 = vmatmul.bf16.gmra.mxu1 %v3365_v4  ;;  %v10607_v2 = vmax.f32 %v10606_v60, 0.0 }
 0x757   :  { %3796 = vmatmul.bf16.gmra.mxu2 %v3366_v43  ;;  %v10613_v43 = vmax.f32 %v10612_v20, 0.0 }
 0x758   :  { %v3372_v4 = vpack.c.bf16 %v10609_v11, %v10607_v2  ;;  %v10633_v2 = vmax.f32 %v10632_v27, 0.0  ;;  %v10635_v11 = vmax.f32 %v10634_v0, 0.0 }
 0x766   :  { %3623 = vmatmul.bf16.gmra.mxu0 %v3367_v45  ;;  %3712 = vmatmul.bf16.gmra.mxu1 %v3368_v40  ;;  %v3374_v45 = vpack.c.bf16 %v10615_v15, %v10613_v43  ;;  %v10619_v40 = vmax.f32 %v10618_v47, 0.0 }
 0x767   :  { %3801 = vmatmul.bf16.gmra.mxu2 %v3369_v63  ;;  %v10624_v63 = vld [vmem:[#allocation14_spill] sm:$0xff] }
 0x768   :  { %v3375_v39 = vpack.c.bf16 %v10619_v40, %v10617_v6  ;;  %v10625_v55 = vmax.f32 %v10624_v63, 0.0  ;;  %v10645_v6 = vmax.f32 %v10644_v33, 0.0  ;;  %v10646_v40 = vld [vmem:[#allocation31_spill] sm:$0xff]  ;;  %v10652_v63 = vld [vmem:[#allocation64_spill] sm:$0xff] }
 0x76a   :  { %v3377_v44 = vpack.c.bf16 %v10625_v55, %v10623_v62  ;;  %v10653_v55 = vmax.f32 %v10652_v63, 0.0 }
 0x776   :  { %3628 = vmatmul.bf16.gmra.mxu0 %v3370_v17  ;;  %3717 = vmatmul.bf16.gmra.mxu1 %v3371_v12  ;;  %v10626_v17 = vld [vmem:[#allocation51_spill] sm:$0xff]  ;;  %v10630_v12 = vmax.f32 %v10544_v52, 0.0  ;;  %v10641_v52 = vmax.f32 %v10550_v5, 0.0  ;;  %v10650_v5 = vmax.f32 %v10552_v41, 0.0 }
 0x777   :  { %3806 = vmatmul.bf16.gmra.mxu2 %v3372_v4  ;;  %v10627_v19 = vmax.f32 %v10626_v17, 0.0  ;;  %v3380_v4 = vpack.c.bf16 %v10635_v11, %v10633_v2 }
 0x778   :  { %v3379_v60 = vpack.c.bf16 %v10631_v30, %v10630_v12  ;;  %v3382_v15 = vpack.c.bf16 %v10641_v52, %v10640_v46  ;;  %v3385_v62 = vpack.c.bf16 %v10651_v37, %v10650_v5  ;;  %v10658_v30 = vld [vmem:[#allocation47_spill] sm:$0xff]  ;;  %v10662_v52 = vld [vmem:[#allocation28_spill] sm:$0xff] }
 0x779   :  { %v3378_v59 = vpack.c.bf16 %v10629_v8, %v10627_v19 }
 0x786   :  { %3633 = vmatmul.bf16.gmra.mxu0 %v3373_v35  ;;  %3722 = vmatmul.bf16.gmra.mxu1 %v3374_v45  ;;  %v10638_v35 = vld [vmem:[#allocation18_spill] sm:$0xff]  ;;  %v10643_v45 = vmax.f32 %v10642_v28, 0.0  ;;  %v10664_v28 = vld [vmem:[#allocation39_spill] sm:$0xff] }
 0x787   :  { %3811 = vmatmul.bf16.gmra.mxu2 %v3375_v39  ;;  %v10639_v20 = vmax.f32 %v10638_v35, 0.0  ;;  %v10647_v39 = vmax.f32 %v10646_v40, 0.0 }
 0x788   :  { %v3383_v47 = vpack.c.bf16 %v10645_v6, %v10643_v45  ;;  %v10665_v45 = vmax.f32 %v10664_v28, 0.0 }
 0x789   :  { %v3381_v43 = vpack.c.bf16 %v10639_v20, %v10637_v36  ;;  %v10660_v20 = vmax.f32 %v10556_v9, 0.0 }
 0x796   :  { %3638 = vmatmul.bf16.gmra.mxu0 %v3376_v51  ;;  %3727 = vmatmul.bf16.gmra.mxu1 %v3377_v44  ;;  %v3384_v51 = vpack.c.bf16 %v10649_v10, %v10647_v39  ;;  %v10654_v44 = vld [vmem:[#allocation72_spill] sm:$0xff]  ;;  %v10667_v10 = vmax.f32 %v10666_v57, 0.0  ;;  %v10681_v57 = vmax.f32 %v10566_v3, 0.0 }
 0x797   :  { %3816 = vmatmul.bf16.gmra.mxu2 %v3378_v59  ;;  %v10655_v17 = vmax.f32 %v10654_v44, 0.0  ;;  %v10656_v59 = vld [vmem:[#allocation74_spill] sm:$0xff] }
 0x798   :  { %v10657_v12 = vmax.f32 %v10656_v59, 0.0  ;;  %v10670_v59 = vmax.f32 %v10560_v22, 0.0 }
 0x799   :  { %v3386_v19 = vpack.c.bf16 %v10655_v17, %v10653_v55 }
 0x7a6   :  { %3643 = vmatmul.bf16.gmra.mxu0 %v3379_v60  ;;  %3732 = vmatmul.bf16.gmra.mxu1 %v3380_v4  ;;  %v10659_v60 = vmax.f32 %v10658_v30, 0.0 }
 0x7a7   :  { %3821 = vmatmul.bf16.gmra.mxu2 %v3381_v43  ;;  %v10661_v43 = vmax.f32 %v10558_v54, 0.0 }
 0x7a8   :  { %v3387_v27 = vpack.c.bf16 %v10659_v60, %v10657_v12  ;;  %v10671_v12 = vmax.f32 %v10562_v13, 0.0  ;;  %v10672_v60 = vld [vmem:[#allocation73_spill] sm:$0xff] }
 0x7a9   :  { %v3388_v46 = vpack.c.bf16 %v10661_v43, %v10660_v20  ;;  %v10678_v20 = vld [vmem:[#allocation30_spill] sm:$0xff] }
 0x7aa   :  { %v3391_v30 = vpack.c.bf16 %v10671_v12, %v10670_v59  ;;  %v10679_v43 = vmax.f32 %v10678_v20, 0.0 }
 0x7b6   :  { %3648 = vmatmul.bf16.gmra.mxu0 %v3382_v15  ;;  %3737 = vmatmul.bf16.gmra.mxu1 %v3383_v47  ;;  %v10663_v15 = vmax.f32 %v10662_v52, 0.0 }
 0x7b7   :  { %3826 = vmatmul.bf16.gmra.mxu2 %v3384_v51  ;;  %v10668_v51 = vld [vmem:[#allocation25_spill] sm:$0xff] }
 0x7b8   :  { %v3389_v33 = vpack.c.bf16 %v10665_v45, %v10663_v15  ;;  %v10669_v5 = vmax.f32 %v10668_v51, 0.0  ;;  %v10682_v51 = vld [vmem:[#allocation29_spill] sm:$0xff] }
 0x7ba   :  { %v3390_v37 = vpack.c.bf16 %v10669_v5, %v10667_v10  ;;  %v10683_v5 = vmax.f32 %v10682_v51, 0.0  ;;  %v10699_v51 = vld [vmem:[#allocation70_spill] sm:$0xff] }
 0x7c3   :  { %v3614_v49 = vpop.f32.mrf.mxu0  ;;  %v3703_v8 = vpop.f32.mrf.mxu1 }
 0x7c4   :  { %v3615_v2 = vadd.f32 %v8990_v38, %v3614_v49 }
 0x7c6   :  { %3653 = vmatmul.bf16.gmra.mxu0 %v3385_v62  ;;  %3742 = vmatmul.bf16.gmra.mxu1 %v3386_v19  ;;  %v3704_v41 = vadd.f32 %v3703_v8, %v3615_v2  ;;  %v10674_v2 = vld [vmem:[#allocation65_spill] sm:$0xff] }
 0x7c7   :  { %3831 = vmatmul.bf16.gmra.mxu2 %v3387_v27  ;;  %v10673_v27 = vmax.f32 %v10672_v60, 0.0 }
 0x7ca   :  { %v3792_v26 = vpop.f32.mrf.mxu2 }
 0x7cb   :  { %v3793_v0 = vadd.f32 %v3792_v26, %v3704_v41  ;;  %v3616_v11 = vpop.f32.mrf.mxu0  ;;  %v3705_v4 = vpop.f32.mrf.mxu1  ;;  %v10675_v41 = vmax.f32 %v10674_v2, 0.0 }
 0x7cc   :  { %v3617_v53 = vadd.f32 %v8990_v38, %v3616_v11 }
 0x7cd   :  { %4519 = vtanh.f32 %v3793_v0  ;;  %v3392_v26 = vpack.c.bf16 %v10675_v41, %v10673_v27 }
 0x7ce   :  { %v3706_v36 = vadd.f32 %v3705_v4, %v3617_v53 }
 0x7d2   :  { %v3794_v35 = vpop.f32.mrf.mxu2 }
 0x7d3   :  { %v4520_v6 = vpop.eup %4519  ;;  %v3795_v47 = vadd.f32 %v3794_v35, %v3706_v36  ;;  %v3619_v40 = vpop.f32.mrf.mxu0  ;;  %v10676_v36 = vld [vmem:[#allocation24_spill] sm:$0xff] }
 0x7d4   :  { %v3708_v39 = vpop.f32.mrf.mxu1  ;;  %3904 = vst [vmem:[%s9224_s9] sm:$0xff] %v4520_v6  ;;  %v3620_v9 = vadd.f32 %v8990_v38, %v3619_v40  ;;  %v10677_v35 = vmax.f32 %v10676_v36, 0.0  ;;  %v10692_v36 = vmax.f32 %v10569_v58, 0.0 }
 0x7d5   :  { %4521 = vtanh.f32 %v3795_v47 }
 0x7d6   :  { %3658 = vmatmul.bf16.gmra.mxu0 %v3388_v46  ;;  %3747 = vmatmul.bf16.gmra.mxu1 %v3389_v33  ;;  %v3709_v54 = vadd.f32 %v3708_v39, %v3620_v9  ;;  %v3393_v46 = vpack.c.bf16 %v10679_v43, %v10677_v35  ;;  %v10680_v39 = vmax.f32 %v10564_v18, 0.0  ;;  %v10693_v35 = vmax.f32 %v10571_v23, 0.0 }
 0x7d7   :  { %3836 = vmatmul.bf16.gmra.mxu2 %v3390_v37  ;;  %v10684_v37 = vld [vmem:[#allocation67_spill] sm:$0xff] }
 0x7d8   :  { %v3394_v10 = vpack.c.bf16 %v10681_v57, %v10680_v39  ;;  %v10685_v9 = vmax.f32 %v10684_v37, 0.0  ;;  %v3398_v20 = vpack.c.bf16 %v10693_v35, %v10692_v36  ;;  %v10697_v39 = vld [vmem:[#allocation32_spill] sm:$0xff]  ;;  %v10701_v37 = vmax.f32 %v10575_v7, 0.0 }
 0x7d9   :  { %v10698_v57 = vmax.f32 %v10697_v39, 0.0  ;;  %v10716_v39 = vld [vmem:[#allocation76_spill] sm:$0xff] }
 0x7da   :  { %v3797_v62 = vpop.f32.mrf.mxu2 }
 0x7db   :  { %v4522_v63 = vpop.eup %4521  ;;  %v3798_v55 = vadd.f32 %v3797_v62, %v3709_v54  ;;  %v3621_v44 = vpop.f32.mrf.mxu0  ;;  %v3395_v54 = vpack.c.bf16 %v10685_v9, %v10683_v5  ;;  %v10700_v5 = vmax.f32 %v10699_v51, 0.0 }
 0x7dc   :  { %v3710_v17 = vpop.f32.mrf.mxu1  ;;  %3905 = vst [vmem:[%s9224_s9 + $0x8] sm:$0xff] %v4522_v63  ;;  %v3622_v19 = vadd.f32 %v8990_v38, %v3621_v44 }
 0x7dd   :  { %4523 = vtanh.f32 %v3798_v55  ;;  %v3401_v9 = vpack.c.bf16 %v10701_v37, %v10700_v5 }
 0x7de   :  { %v3711_v49 = vadd.f32 %v3710_v17, %v3622_v19  ;;  %v10686_v17 = vld [vmem:[#allocation56_spill] sm:$0xff] }
 0x7df   :  { %v10687_v19 = vmax.f32 %v10686_v17, 0.0 }
 0x7e2   :  { %v3799_v8 = vpop.f32.mrf.mxu2 }
 0x7e3   :  { %v4524_v0 = vpop.eup %4523  ;;  %v3800_v11 = vadd.f32 %v3799_v8, %v3711_v49  ;;  %v3624_v4 = vpop.f32.mrf.mxu0  ;;  %v10688_v49 = vld [vmem:[#allocation69_spill] sm:$0xff] }
 0x7e4   :  { %v3713_v53 = vpop.f32.mrf.mxu1  ;;  %3906 = vst [vmem:[%s9224_s9 + $0x10] sm:$0xff] %v4524_v0  ;;  %v3625_v22 = vadd.f32 %v8990_v38, %v3624_v4  ;;  %v10689_v8 = vmax.f32 %v10688_v49, 0.0  ;;  %v10691_v4 = vmax.f32 %v10570_v50, 0.0 }
 0x7e5   :  { %4525 = vtanh.f32 %v3800_v11  ;;  %v10690_v11 = vmax.f32 %v10568_v24, 0.0 }
 0x7e6   :  { %3663 = vmatmul.bf16.gmra.mxu0 %v3391_v30  ;;  %3752 = vmatmul.bf16.gmra.mxu1 %v3392_v26  ;;  %v3714_v13 = vadd.f32 %v3713_v53, %v3625_v22  ;;  %v3396_v59 = vpack.c.bf16 %v10689_v8, %v10687_v19  ;;  %v10704_v19 = vmax.f32 %v8745_v25, 0.0 }
 0x7e7   :  { %3841 = vmatmul.bf16.gmra.mxu2 %v3393_v46  ;;  %v3397_v53 = vpack.c.bf16 %v10691_v4, %v10690_v11 }
 0x7ea   :  { %v3802_v52 = vpop.f32.mrf.mxu2 }
 0x7eb   :  { %v4526_v15 = vpop.eup %4525  ;;  %v3803_v28 = vadd.f32 %v3802_v52, %v3714_v13  ;;  %v3626_v45 = vpop.f32.mrf.mxu0  ;;  %v10694_v52 = vmax.f32 %v8709_v32, 0.0 }
 0x7ec   :  { %v3715_v33 = vpop.f32.mrf.mxu1  ;;  %3907 = vst [vmem:[%s9224_s9 + $0x18] sm:$0xff] %v4526_v15  ;;  %v3627_v6 = vadd.f32 %v8990_v38, %v3626_v45  ;;  %v10695_v15 = vmax.f32 %v8721_v34, 0.0 }
 0x7ed   :  { %4527 = vtanh.f32 %v3803_v28 }
 0x7ee   :  { %v3716_v47 = vadd.f32 %v3715_v33, %v3627_v6  ;;  %v3399_v28 = vpack.c.bf16 %v10695_v15, %v10694_v52 }
 0x7f2   :  { %v3804_v40 = vpop.f32.mrf.mxu2 }
 0x7f3   :  { %v4528_v62 = vpop.eup %4527  ;;  %v3805_v63 = vadd.f32 %v3804_v40, %v3716_v47  ;;  %v3629_v55 = vpop.f32.mrf.mxu0  ;;  %v10696_v40 = vmax.f32 %v10572_v31, 0.0 }
 0x7f4   :  { %v3718_v44 = vpop.f32.mrf.mxu1  ;;  %3908 = vst [vmem:[%s9224_s9 + $0x20] sm:$0xff] %v4528_v62  ;;  %v3630_v18 = vadd.f32 %v8990_v38, %v3629_v55 }
 0x7f5   :  { %4529 = vtanh.f32 %v3805_v63 }
 0x7f6   :  { %3668 = vmatmul.bf16.gmra.mxu0 %v3394_v10  ;;  %3757 = vmatmul.bf16.gmra.mxu1 %v3395_v54  ;;  %v3719_v3 = vadd.f32 %v3718_v44, %v3630_v18  ;;  %v3400_v10 = vpack.c.bf16 %v10698_v57, %v10696_v40  ;;  %v10702_v44 = vld [vmem:[#allocation77_spill] sm:$0xff]  ;;  %v10717_v57 = vmax.f32 %v10716_v39, 0.0 }
 0x7f7   :  { %3846 = vmatmul.bf16.gmra.mxu2 %v3396_v59  ;;  %v10703_v17 = vmax.f32 %v10702_v44, 0.0 }
 0x7f9   :  { %v3402_v49 = vpack.c.bf16 %v10704_v19, %v10703_v17 }
 0x7fa   :  { %v3807_v12 = vpop.f32.mrf.mxu2 }
 0x7fb   :  { %v4530_v30 = vpop.eup %4529  ;;  %v3808_v60 = vadd.f32 %v3807_v12, %v3719_v3  ;;  %v3631_v27 = vpop.f32.mrf.mxu0 }
 0x7fc   :  { %v3720_v2 = vpop.f32.mrf.mxu1  ;;  %3909 = vst [vmem:[%s9224_s9 + $0x28] sm:$0xff] %v4530_v30  ;;  %v3632_v41 = vadd.f32 %v8990_v38, %v3631_v27  ;;  %v10705_v27 = vmax.f32 %v8749_v42, 0.0 }
 0x7fd   :  { %4531 = vtanh.f32 %v3808_v60 }
 0x7fe   :  { %v3721_v26 = vadd.f32 %v3720_v2, %v3632_v41  ;;  %v10706_v2 = vmax.f32 %v8761_v56, 0.0 }
 0x800   :  { %v3403_v41 = vpack.c.bf16 %v10706_v2, %v10705_v27 }
 0x802   :  { %v3809_v0 = vpop.f32.mrf.mxu2 }
 0x803   :  { %v4532_v43 = vpop.eup %4531  ;;  %v3810_v46 = vadd.f32 %v3809_v0, %v3721_v26  ;;  %v3634_v22 = vpop.f32.mrf.mxu0  ;;  %v10707_v26 = vmax.f32 %v8753_v16, 0.0  ;;  %v10708_v0 = vmax.f32 %v8765_v1, 0.0 }
 0x804   :  { %v3723_v13 = vpop.f32.mrf.mxu1  ;;  %3910 = vst [vmem:[%s9224_s9 + $0x30] sm:$0xff] %v4532_v43  ;;  %v3635_v24 = vadd.f32 %v8990_v38, %v3634_v22 }
 0x805   :  { %4533 = vtanh.f32 %v3810_v46  ;;  %v3404_v11 = vpack.c.bf16 %v10708_v0, %v10707_v26  ;;  %v10711_v46 = vmax.f32 %v8769_v21, 0.0 }
 0x806   :  { %3673 = vmatmul.bf16.gmra.mxu0 %v3397_v53  ;;  %3762 = vmatmul.bf16.gmra.mxu1 %v3398_v20  ;;  %v3724_v50 = vadd.f32 %v3723_v13, %v3635_v24  ;;  %v10709_v20 = vld [vmem:[#allocation42_spill] sm:$0xff] }
 0x807   :  { %3851 = vmatmul.bf16.gmra.mxu2 %v3399_v28  ;;  %v10710_v43 = vmax.f32 %v10709_v20, 0.0 }
 0x809   :  { %v3405_v22 = vpack.c.bf16 %v10711_v46, %v10710_v43 }
 0x80a   :  { %v3812_v58 = vpop.f32.mrf.mxu2 }
 0x80b   :  { %v4534_v23 = vpop.eup %4533  ;;  %v3813_v45 = vadd.f32 %v3812_v58, %v3724_v50  ;;  %v3636_v33 = vpop.f32.mrf.mxu0  ;;  %v10712_v50 = vmax.f32 %v10576_v29, 0.0  ;;  %v10713_v58 = vmax.f32 %v8785_v48, 0.0 }
 0x80c   :  { %v3725_v6 = vpop.f32.mrf.mxu1  ;;  %3911 = vst [vmem:[%s9224_s9 + $0x38] sm:$0xff] %v4534_v23  ;;  %v3637_v32 = vadd.f32 %v8990_v38, %v3636_v33  ;;  %v10715_v33 = vmax.f32 %v8789_v14, 0.0 }
 0x80d   :  { %4535 = vtanh.f32 %v3813_v45  ;;  %v3406_v23 = vpack.c.bf16 %v10713_v58, %v10712_v50  ;;  %v10714_v45 = vmax.f32 %v10577_v61, 0.0 }
 0x80e   :  { %v3726_v34 = vadd.f32 %v3725_v6, %v3637_v32 }
 0x80f   :  { %v3407_v6 = vpack.c.bf16 %v10715_v33, %v10714_v45 }
 0x812   :  { %v3814_v47 = vpop.f32.mrf.mxu2 }
 0x813   :  { %v4536_v54 = vpop.eup %4535  ;;  %v3815_v62 = vadd.f32 %v3814_v47, %v3726_v34  ;;  %v3639_v63 = vpop.f32.mrf.mxu0 }
 0x814   :  { %v3728_v55 = vpop.f32.mrf.mxu1  ;;  %3912 = vst [vmem:[%s9224_s9 + $0x40] sm:$0xff] %v4536_v54  ;;  %v3640_v31 = vadd.f32 %v8990_v38, %v3639_v63 }
 0x815   :  { %4537 = vtanh.f32 %v3815_v62 }
 0x816   :  { %3678 = vmatmul.bf16.gmra.mxu0 %v3400_v10  ;;  %3767 = vmatmul.bf16.gmra.mxu1 %v3401_v9  ;;  %v3729_v7 = vadd.f32 %v3728_v55, %v3640_v31  ;;  %v10718_v10 = vld [vmem:[#allocation80_spill] sm:$0xff] }
 0x817   :  { %3856 = vmatmul.bf16.gmra.mxu2 %v3402_v49  ;;  %v10719_v51 = vmax.f32 %v10718_v10, 0.0 }
 0x819   :  { %v3408_v5 = vpack.c.bf16 %v10719_v51, %v10717_v57 }
 0x81a   :  { %v3817_v8 = vpop.f32.mrf.mxu2 }
 0x81b   :  { %v4538_v59 = vpop.eup %4537  ;;  %v3818_v18 = vadd.f32 %v3817_v8, %v3729_v7  ;;  %v3641_v3 = vpop.f32.mrf.mxu0 }
 0x81c   :  { %v3730_v12 = vpop.f32.mrf.mxu1  ;;  %3913 = vst [vmem:[%s9224_s9 + $0x48] sm:$0xff] %v4538_v59  ;;  %v3642_v25 = vadd.f32 %v8990_v38, %v3641_v3 }
 0x81d   :  { %4539 = vtanh.f32 %v3818_v18 }
 0x81e   :  { %v3731_v30 = vadd.f32 %v3730_v12, %v3642_v25 }
 0x822   :  { %v3819_v60 = vpop.f32.mrf.mxu2 }
 0x823   :  { %v4540_v4 = vpop.eup %4539  ;;  %v3820_v53 = vadd.f32 %v3819_v60, %v3731_v30  ;;  %v3644_v36 = vpop.f32.mrf.mxu0 }
 0x824   :  { %v3733_v35 = vpop.f32.mrf.mxu1  ;;  %3914 = vst [vmem:[%s9224_s9 + $0x50] sm:$0xff] %v4540_v4  ;;  %v3645_v42 = vadd.f32 %v8990_v38, %v3644_v36 }
 0x825   :  { %4541 = vtanh.f32 %v3820_v53 }
 0x826   :  { %3683 = vmatmul.bf16.gmra.mxu0 %v3403_v41  ;;  %3772 = vmatmul.bf16.gmra.mxu1 %v3404_v11  ;;  %v3734_v16 = vadd.f32 %v3733_v35, %v3645_v42 }
 0x827   :  { %3861 = vmatmul.bf16.gmra.mxu2 %v3405_v22 }
 0x82a   :  { %v3822_v56 = vpop.f32.mrf.mxu2 }
 0x82b   :  { %v4542_v1 = vpop.eup %4541  ;;  %v3823_v13 = vadd.f32 %v3822_v56, %v3734_v16  ;;  %v3646_v52 = vpop.f32.mrf.mxu0 }
 0x82c   :  { %v3735_v15 = vpop.f32.mrf.mxu1  ;;  %3915 = vst [vmem:[%s9224_s9 + $0x58] sm:$0xff] %v4542_v1  ;;  %v3647_v21 = vadd.f32 %v8990_v38, %v3646_v52 }
 0x82d   :  { %4543 = vtanh.f32 %v3823_v13 }
 0x82e   :  { %v3736_v28 = vadd.f32 %v3735_v15, %v3647_v21 }
 0x832   :  { %v3824_v24 = vpop.f32.mrf.mxu2 }
 0x833   :  { %v4544_v32 = vpop.eup %4543  ;;  %v3825_v34 = vadd.f32 %v3824_v24, %v3736_v28  ;;  %v3649_v47 = vpop.f32.mrf.mxu0 }
 0x834   :  { %v3738_v40 = vpop.f32.mrf.mxu1  ;;  %3916 = vst [vmem:[%s9224_s9 + $0x60] sm:$0xff] %v4544_v32  ;;  %v3650_v29 = vadd.f32 %v8990_v38, %v3649_v47 }
 0x835   :  { %4545 = vtanh.f32 %v3825_v34 }
 0x836   :  { %3688 = vmatmul.bf16.gmra.mxu0 %v3406_v23  ;;  %3777 = vmatmul.bf16.gmra.mxu1 %v3407_v6  ;;  %v3739_v61 = vadd.f32 %v3738_v40, %v3650_v29 }
 0x837   :  { %3866 = vmatmul.bf16.gmra.mxu2 %v3408_v5 }
 0x83a   :  { %v3827_v48 = vpop.f32.mrf.mxu2 }
 0x83b   :  { %v4546_v14 = vpop.eup %4545  ;;  %v3828_v37 = vadd.f32 %v3827_v48, %v3739_v61  ;;  %v3651_v9 = vpop.f32.mrf.mxu0 }
 0x83c   :  { %v3740_v54 = vpop.f32.mrf.mxu1  ;;  %3917 = vst [vmem:[%s9224_s9 + $0x68] sm:$0xff] %v4546_v14  ;;  %v3652_v62 = vadd.f32 %v8990_v38, %v3651_v9 }
 0x83d   :  { %4547 = vtanh.f32 %v3828_v37 }
 0x83e   :  { %v3741_v63 = vadd.f32 %v3740_v54, %v3652_v62 }
 0x842   :  { %v3829_v55 = vpop.f32.mrf.mxu2 }
 0x843   :  { %v4548_v44 = vpop.eup %4547  ;;  %v3830_v17 = vadd.f32 %v3829_v55, %v3741_v63  ;;  %v3654_v19 = vpop.f32.mrf.mxu0 }
 0x844   :  { %v3743_v49 = vpop.f32.mrf.mxu1  ;;  %3918 = vst [vmem:[%s9224_s9 + $0x70] sm:$0xff] %v4548_v44  ;;  %v3655_v31 = vadd.f32 %v8990_v38, %v3654_v19 }
 0x845   :  { %4549 = vtanh.f32 %v3830_v17 }
 0x846   :  { %v3744_v7 = vadd.f32 %v3743_v49, %v3655_v31 }
 0x84a   :  { %v3832_v8 = vpop.f32.mrf.mxu2 }
 0x84b   :  { %v4550_v59 = vpop.eup %4549  ;;  %v3833_v18 = vadd.f32 %v3832_v8, %v3744_v7  ;;  %v3656_v3 = vpop.f32.mrf.mxu0 }
 0x84c   :  { %v3745_v12 = vpop.f32.mrf.mxu1  ;;  %3919 = vst [vmem:[%s9224_s9 + $0x78] sm:$0xff] %v4550_v59  ;;  %v3657_v25 = vadd.f32 %v8990_v38, %v3656_v3 }
 0x84d   :  { %4551 = vtanh.f32 %v3833_v18 }
 0x84e   :  { %v3746_v30 = vadd.f32 %v3745_v12, %v3657_v25 }
 0x852   :  { %v3834_v60 = vpop.f32.mrf.mxu2 }
 0x853   :  { %v4552_v27 = vpop.eup %4551  ;;  %v3835_v2 = vadd.f32 %v3834_v60, %v3746_v30  ;;  %v3659_v41 = vpop.f32.mrf.mxu0 }
 0x854   :  { %v3748_v26 = vpop.f32.mrf.mxu1  ;;  %3920 = vst [vmem:[%s9224_s9 + $0x80] sm:$0xff] %v4552_v27  ;;  %v3660_v0 = vadd.f32 %v8990_v38, %v3659_v41 }
 0x855   :  { %4553 = vtanh.f32 %v3835_v2 }
 0x856   :  { %v3749_v11 = vadd.f32 %v3748_v26, %v3660_v0 }
 0x85a   :  { %v3837_v4 = vpop.f32.mrf.mxu2 }
 0x85b   :  { %v4554_v53 = vpop.eup %4553  ;;  %v3838_v36 = vadd.f32 %v3837_v4, %v3749_v11  ;;  %v3661_v35 = vpop.f32.mrf.mxu0 }
 0x85c   :  { %v3750_v20 = vpop.f32.mrf.mxu1  ;;  %3921 = vst [vmem:[%s9224_s9 + $0x88] sm:$0xff] %v4554_v53  ;;  %v3662_v43 = vadd.f32 %v8990_v38, %v3661_v35 }
 0x85d   :  { %4555 = vtanh.f32 %v3838_v36 }
 0x85e   :  { %v3751_v46 = vadd.f32 %v3750_v20, %v3662_v43 }
 0x862   :  { %v3839_v22 = vpop.f32.mrf.mxu2 }
 0x863   :  { %v4556_v42 = vpop.eup %4555  ;;  %v3840_v16 = vadd.f32 %v3839_v22, %v3751_v46  ;;  %v3664_v56 = vpop.f32.mrf.mxu0 }
 0x864   :  { %v3753_v1 = vpop.f32.mrf.mxu1  ;;  %3922 = vst [vmem:[%s9224_s9 + $0x90] sm:$0xff] %v4556_v42  ;;  %v3665_v13 = vadd.f32 %v8990_v38, %v3664_v56 }
 0x865   :  { %4557 = vtanh.f32 %v3840_v16 }
 0x866   :  { %v3754_v52 = vadd.f32 %v3753_v1, %v3665_v13 }
 0x86a   :  { %v3842_v15 = vpop.f32.mrf.mxu2 }
 0x86b   :  { %v4558_v21 = vpop.eup %4557  ;;  %v3843_v28 = vadd.f32 %v3842_v15, %v3754_v52  ;;  %v3666_v24 = vpop.f32.mrf.mxu0 }
 0x86c   :  { %v3755_v50 = vpop.f32.mrf.mxu1  ;;  %3923 = vst [vmem:[%s9224_s9 + $0x98] sm:$0xff] %v4558_v21  ;;  %v3667_v58 = vadd.f32 %v8990_v38, %v3666_v24 }
 0x86d   :  { %4559 = vtanh.f32 %v3843_v28 }
 0x86e   :  { %v3756_v23 = vadd.f32 %v3755_v50, %v3667_v58 }
 0x872   :  { %v3844_v45 = vpop.f32.mrf.mxu2 }
 0x873   :  { %v4560_v33 = vpop.eup %4559  ;;  %v3845_v6 = vadd.f32 %v3844_v45, %v3756_v23  ;;  %v3669_v32 = vpop.f32.mrf.mxu0 }
 0x874   :  { %v3758_v34 = vpop.f32.mrf.mxu1  ;;  %3924 = vst [vmem:[%s9224_s9 + $0xa0] sm:$0xff] %v4560_v33  ;;  %v3670_v47 = vadd.f32 %v8990_v38, %v3669_v32 }
 0x875   :  { %4561 = vtanh.f32 %v3845_v6 }
 0x876   :  { %v3759_v40 = vadd.f32 %v3758_v34, %v3670_v47 }
 0x87a   :  { %v3847_v39 = vpop.f32.mrf.mxu2 }
 0x87b   :  { %v4562_v57 = vpop.eup %4561  ;;  %v3848_v10 = vadd.f32 %v3847_v39, %v3759_v40  ;;  %v3671_v51 = vpop.f32.mrf.mxu0 }
 0x87c   :  { %v3760_v5 = vpop.f32.mrf.mxu1  ;;  %3925 = vst [vmem:[%s9224_s9 + $0xa8] sm:$0xff] %v4562_v57  ;;  %v3672_v29 = vadd.f32 %v8990_v38, %v3671_v51 }
 0x87d   :  { %4563 = vtanh.f32 %v3848_v10 }
 0x87e   :  { %v3761_v61 = vadd.f32 %v3760_v5, %v3672_v29 }
 0x882   :  { %v3849_v48 = vpop.f32.mrf.mxu2 }
 0x883   :  { %v4564_v14 = vpop.eup %4563  ;;  %v3850_v37 = vadd.f32 %v3849_v48, %v3761_v61  ;;  %v3674_v9 = vpop.f32.mrf.mxu0 }
 0x884   :  { %v3763_v54 = vpop.f32.mrf.mxu1  ;;  %3926 = vst [vmem:[%s9224_s9 + $0xb0] sm:$0xff] %v4564_v14  ;;  %v3675_v62 = vadd.f32 %v8990_v38, %v3674_v9 }
 0x885   :  { %4565 = vtanh.f32 %v3850_v37 }
 0x886   :  { %v3764_v63 = vadd.f32 %v3763_v54, %v3675_v62 }
 0x88a   :  { %v3852_v55 = vpop.f32.mrf.mxu2 }
 0x88b   :  { %v4566_v44 = vpop.eup %4565  ;;  %v3853_v17 = vadd.f32 %v3852_v55, %v3764_v63  ;;  %v3676_v19 = vpop.f32.mrf.mxu0 }
 0x88c   :  { %v3765_v49 = vpop.f32.mrf.mxu1  ;;  %3927 = vst [vmem:[%s9224_s9 + $0xb8] sm:$0xff] %v4566_v44  ;;  %v3677_v31 = vadd.f32 %v8990_v38, %v3676_v19 }
 0x88d   :  { %4567 = vtanh.f32 %v3853_v17 }
 0x88e   :  { %v3766_v7 = vadd.f32 %v3765_v49, %v3677_v31 }
 0x892   :  { %v3854_v8 = vpop.f32.mrf.mxu2 }
 0x893   :  { %v4568_v59 = vpop.eup %4567  ;;  %v3855_v18 = vadd.f32 %v3854_v8, %v3766_v7  ;;  %v3679_v3 = vpop.f32.mrf.mxu0 }
 0x894   :  { %v3768_v12 = vpop.f32.mrf.mxu1  ;;  %3928 = vst [vmem:[%s9224_s9 + $0xc0] sm:$0xff] %v4568_v59  ;;  %v3680_v25 = vadd.f32 %v8990_v38, %v3679_v3 }
 0x895   :  { %4569 = vtanh.f32 %v3855_v18 }
 0x896   :  { %v3769_v30 = vadd.f32 %v3768_v12, %v3680_v25 }
 0x89a   :  { %v3857_v60 = vpop.f32.mrf.mxu2 }
 0x89b   :  { %v4570_v27 = vpop.eup %4569  ;;  %v3858_v2 = vadd.f32 %v3857_v60, %v3769_v30  ;;  %v3681_v41 = vpop.f32.mrf.mxu0 }
 0x89c   :  { %v3770_v26 = vpop.f32.mrf.mxu1  ;;  %3929 = vst [vmem:[%s9224_s9 + $0xc8] sm:$0xff] %v4570_v27  ;;  %v3682_v0 = vadd.f32 %v8990_v38, %v3681_v41 }
 0x89d   :  { %4571 = vtanh.f32 %v3858_v2 }
 0x89e   :  { %v3771_v11 = vadd.f32 %v3770_v26, %v3682_v0 }
 0x8a2   :  { %v3859_v4 = vpop.f32.mrf.mxu2 }
 0x8a3   :  { %v4572_v53 = vpop.eup %4571  ;;  %v3860_v36 = vadd.f32 %v3859_v4, %v3771_v11  ;;  %v3684_v35 = vpop.f32.mrf.mxu0 }
 0x8a4   :  { %v3773_v20 = vpop.f32.mrf.mxu1  ;;  %3930 = vst [vmem:[%s9224_s9 + $0xd0] sm:$0xff] %v4572_v53  ;;  %v3685_v43 = vadd.f32 %v8990_v38, %v3684_v35 }
 0x8a5   :  { %4573 = vtanh.f32 %v3860_v36 }
 0x8a6   :  { %v3774_v46 = vadd.f32 %v3773_v20, %v3685_v43 }
 0x8aa   :  { %v3862_v22 = vpop.f32.mrf.mxu2 }
 0x8ab   :  { %v4574_v42 = vpop.eup %4573  ;;  %v3863_v16 = vadd.f32 %v3862_v22, %v3774_v46  ;;  %v3686_v56 = vpop.f32.mrf.mxu0 }
 0x8ac   :  { %3931 = vst [vmem:[%s9224_s9 + $0xd8] sm:$0xff] %v4574_v42  ;;  %v3775_v1 = vpop.f32.mrf.mxu1  ;;  %v3687_v13 = vadd.f32 %v8990_v38, %v3686_v56 }
 0x8ad   :  { %4575 = vtanh.f32 %v3863_v16 }
 0x8ae   :  { %v3776_v52 = vadd.f32 %v3775_v1, %v3687_v13 }
 0x8b2   :  { %v3864_v15 = vpop.f32.mrf.mxu2 }
 0x8b3   :  { %v4576_v21 = vpop.eup %4575  ;;  %v3865_v28 = vadd.f32 %v3864_v15, %v3776_v52  ;;  %v3689_v24 = vpop.f32.mrf.mxu0 }
 0x8b4   :  { %3932 = vst [vmem:[%s9224_s9 + $0xe0] sm:$0xff] %v4576_v21  ;;  %v3690_v50 = vadd.f32 %v8990_v38, %v3689_v24  ;;  %v3778_v58 = vpop.f32.mrf.mxu1 }
 0x8b5   :  { %4577 = vtanh.f32 %v3865_v28 }
 0x8b6   :  { %v3779_v23 = vadd.f32 %v3778_v58, %v3690_v50 }
 0x8ba   :  { %v3867_v45 = vpop.f32.mrf.mxu2 }
 0x8bb   :  { %v4578_v33 = vpop.eup %4577  ;;  %v3868_v6 = vadd.f32 %v3867_v45, %v3779_v23  ;;  %v3691_v32 = vpop.f32.mrf.mxu0 }
 0x8bc   :  { %3933 = vst [vmem:[%s9224_s9 + $0xe8] sm:$0xff] %v4578_v33  ;;  %v3692_v34 = vadd.f32 %v8990_v38, %v3691_v32  ;;  %v3780_v47 = vpop.f32.mrf.mxu1 }
 0x8bd   :  { %4579 = vtanh.f32 %v3868_v6 }
 0x8be   :  { %v3781_v40 = vadd.f32 %v3780_v47, %v3692_v34 }
 0x8c2   :  { %v3869_v39 = vpop.f32.mrf.mxu2 }
 0x8c3   :  { %v4580_v57 = vpop.eup %4579  ;;  %v3870_v10 = vadd.f32 %v3869_v39, %v3781_v40 }
 0x8c4   :  { %3934 = vst [vmem:[%s9224_s9 + $0xf0] sm:$0xff] %v4580_v57 }
 0x8c5   :  { %4581 = vtanh.f32 %v3870_v10 }
 0x8cb   :  { %v4582_v51 = vpop.eup %4581 }
 0x8cc   :  { %3935 = vst [vmem:[%s9224_s9 + $0xf8] sm:$0xff] %v4582_v51 }
 0x8cd   :  { %3940 = vsyncmov [#allocation4] }
 0x8d0   :  { %s3941_s28 = vpop.sfrf %3940 }
 0x8d1   :  { %p4401_p0 = scmp.ne.s32.totalorder %s3941_s28, 0 }
 0x8d3   :  { %3945 = shalt.err (%p4401_p0)  }
 0x8d4   :  { %3947 = vsyncmov [#allocation4 + $0x1] }
 0x8d7   :  { %s3948_s29 = vpop.sfrf %3947 }
 0x8d8   :  { %p4402_p1 = scmp.ne.s32.totalorder %s3948_s29, 0 }
 0x8da   :  { %3952 = shalt.err (%p4402_p1)  }

</bundles_post_ra>
